<compile_context>
chip_gen: v7x
topology: tpu7x:2x2x1
jax: 0.10.0
libtpu: 0.0.40
codegen_flags: <defaults>
</compile_context>

<pallas_src>
import functools
import math

import jax
import jax.numpy as jnp
from jax.experimental import pallas as pl
from jax.experimental.pallas import tpu as pltpu


# ----------------------------------------------------------------------------
# In-kernel helpers (pure jnp, traced into the Pallas kernel)
# ----------------------------------------------------------------------------
def _layernorm(z, g, b, eps=1e-6):
    # torch.nn.LayerNorm(eps=1e-6) semantics (biased variance).
    mu = jnp.mean(z, axis=-1, keepdims=True)
    var = jnp.mean(jnp.square(z - mu), axis=-1, keepdims=True)
    return (z - mu) * jax.lax.rsqrt(var + eps) * g + b


def _erf(x):
    # Abramowitz & Stegun 7.1.26 rational approximation (|err| <= 1.5e-7):
    # matches torch.nn.GELU()'s exact erf-GELU to ~float32 precision while
    # using only exp / mul / add / where (guaranteed Mosaic lowering).
    a1, a2, a3, a4, a5 = (0.254829592, -0.284496736, 1.421413741,
                          -1.453152027, 1.061405429)
    p = 0.3275911
    sgn = jnp.where(x >= 0.0, 1.0, -1.0)
    ax = x * sgn
    t = 1.0 / (1.0 + p * ax)
    poly = ((((a5 * t + a4) * t + a3) * t + a2) * t + a1) * t
    return sgn * (1.0 - poly * jnp.exp(-(ax * ax)))


def _gelu_exact(x):
    return 0.5 * x * (1.0 + _erf(x * (1.0 / math.sqrt(2.0))))


# ----------------------------------------------------------------------------
# Fused forward kernel: patch-embed -> [encoder block] x L -> LN -> head
# ----------------------------------------------------------------------------
def _vit_fused_kernel(
    patches_ref, wconv_ref, base_ref,
    ln1g_ref, ln1b_ref, wqkv_ref, bqkv_ref, wo_ref, bo_ref,
    ln2g_ref, ln2b_ref, w1_ref, b1_ref, w2_ref, b2_ref,
    encg_ref, encb_ref, whead_ref, bhead_ref,
    out_ref,
    *, num_layers, num_heads,
):
    patches = patches_ref[...]                    # (N, S, C*K); row 0 is zeros
    N, S, _ = patches.shape
    D = wconv_ref.shape[-1]
    hd = D // num_heads

    def bmm(a, w):
        # (N, S, F) = batched (N, S, K) @ (K, F); weight broadcast over batch.
        wb = jnp.broadcast_to(w, (N,) + w.shape)
        return jax.lax.dot_general(
            a, wb, (((2,), (1,)), ((0,), (0,))),
            preferred_element_type=jnp.float32)

    # Patch embedding: Conv1d(kernel==stride) expressed as a matmul over
    # non-overlapping patches.  The class-token slot (seq position 0) has a
    # zero "patch"; its content plus conv bias and positional embedding come
    # from the host-precomputed `base` array.
    x = bmm(patches, wconv_ref[...]) + base_ref[...]          # (N, S, D)

    for l in range(num_layers):
        # --- self-attention on LN1(x) ---------------------------------------
        xn = _layernorm(x, ln1g_ref[l], ln1b_ref[l])
        qkv = bmm(xn, wqkv_ref[l]) + bqkv_ref[l]              # (N, S, 3D)
        q = qkv[:, :, :D]            # 1/sqrt(hd) already folded into W_q, b_q
        k = qkv[:, :, D:2 * D]
        v = qkv[:, :, 2 * D:]
        wo_l = wo_ref[l]                                      # (D, D)

        attn = jnp.zeros((N, S, D), jnp.float32)
        for h in range(num_heads):
            sl = slice(h * hd, (h + 1) * hd)
            # scores: (N, S, S)
            s = jax.lax.dot_general(
                q[:, :, sl], k[:, :, sl], (((2,), (2,)), ((0,), (0,))),
                preferred_element_type=jnp.float32)
            s = s - jnp.max(s, axis=-1, keepdims=True)
            p = jnp.exp(s)
            p = p / jnp.sum(p, axis=-1, keepdims=True)
            # context: (N, S, hd)
            ctx = jax.lax.dot_general(
                p, v[:, :, sl], (((2,), (1,)), ((0,), (0,))),
                preferred_element_type=jnp.float32)
            # accumulate output projection per head (avoids lane-axis concat)
            attn = attn + bmm(ctx, wo_l[sl, :])
        x = x + attn + bo_ref[l]                              # residual 1

        # --- MLP on LN2(x) ---------------------------------------------------
        y = _layernorm(x, ln2g_ref[l], ln2b_ref[l])
        h1 = bmm(y, w1_ref[l]) + b1_ref[l]
        h1 = _gelu_exact(h1)
        x = x + bmm(h1, w2_ref[l]) + b2_ref[l]                # residual 2

    # Final encoder LayerNorm + classification head on the class token.
    cls = x[:, 0:1, :]                                        # (N, 1, D)
    cls = _layernorm(cls, encg_ref[...], encb_ref[...])
    out_ref[...] = bmm(cls, whead_ref[...]) + bhead_ref[...]  # (N, 1, out_dims)


# ----------------------------------------------------------------------------
# Wrapper: one pallas_call for the whole forward pass
# ----------------------------------------------------------------------------
def vit1d_forward(x, age, packed, *, patch_size, num_heads, num_layers):
    # x: (N, C, L) float32 (PyTorch NCL conv input); age unused (use_age='no').
    del age
    N, C, L = x.shape
    K = patch_size
    P = L // K
    CK = C * K
    D = packed["w_conv"].shape[1]
    S = P + 1
    O = packed["head_w"].shape[1]
    Md = packed["w1"].shape[-1]
    Lyr = num_layers

    # Conv1d(kernel==stride) -> non-overlapping patches laid out for a matmul;
    # prepend one zero row per batch element for the class-token slot.
    patches = x.reshape(N, C, P, K).transpose(0, 2, 1, 3).reshape(N, P, CK)
    patches = jnp.concatenate([jnp.zeros((N, 1, CK), x.dtype), patches], axis=1)

    def full(shape):
        return pl.BlockSpec(shape, lambda i: (0,) * len(shape))

    kern = functools.partial(
        _vit_fused_kernel, num_layers=num_layers, num_heads=num_heads)

    out = pl.pallas_call(
        kern,
        out_shape=jax.ShapeDtypeStruct((N, 1, O), jnp.float32),
        grid=(1,),
        in_specs=[
            full((N, S, CK)), full((CK, D)), full((1, S, D)),
            full((Lyr, 1, D)), full((Lyr, 1, D)),
            full((Lyr, D, 3 * D)), full((Lyr, 1, 3 * D)),
            full((Lyr, D, D)), full((Lyr, 1, D)),
            full((Lyr, 1, D)), full((Lyr, 1, D)),
            full((Lyr, D, Md)), full((Lyr, 1, Md)),
            full((Lyr, Md, D)), full((Lyr, 1, D)),
            full((1, D)), full((1, D)),
            full((D, O)), full((1, O)),
        ],
        out_specs=full((N, 1, O)),
        compiler_params=pltpu.CompilerParams(
            dimension_semantics=("arbitrary",)),
    )(
        patches, packed["w_conv"], packed["base"],
        packed["ln1_g"], packed["ln1_b"],
        packed["w_qkv"], packed["b_qkv"],
        packed["w_o"], packed["b_o"],
        packed["ln2_g"], packed["ln2_b"],
        packed["w1"], packed["b1"],
        packed["w2"], packed["b2"],
        packed["enc_ln_g"], packed["enc_ln_b"],
        packed["head_w"], packed["head_b"],
    )
    return out.reshape(N, O)


# ----------------------------------------------------------------------------
# Deterministic synthetic parameters (PyTorch-layout) + host-side packing
# ----------------------------------------------------------------------------
def init_params(key, *, in_channels, patch_size, n_patches, hidden_dim, mlp_dim,
                num_layers, out_dims):
    C, K, D, M = in_channels, patch_size, hidden_dim, mlp_dim
    S = n_patches + 1
    keys = iter(jax.random.split(key, 8 + 8 * num_layers))

    def nrm(shape, std):
        return jax.random.normal(next(keys), shape, jnp.float32) * std

    # conv_proj: weight (D, C, K), trunc_normal std=sqrt(1/fan_in), bias zeros.
    conv_w = nrm((D, C, K), math.sqrt(1.0 / (C * K)))
    conv_w_mat = jnp.transpose(conv_w, (1, 2, 0)).reshape(C * K, D)   # (C*K, D)
    conv_b = jnp.zeros((1, D), jnp.float32)

    class_token = jnp.zeros((1, 1, D), jnp.float32)
    pos_embedding = nrm((1, S, D), 0.02)

    layers = []
    for _ in range(num_layers):
        layers.append(dict(
            ln1_g=jnp.ones((1, D), jnp.float32), ln1_b=jnp.zeros((1, D), jnp.float32),
            w_qkv=nrm((D, 3 * D), 0.02), b_qkv=jnp.zeros((1, 3 * D), jnp.float32),
            w_o=nrm((D, D), 0.02), b_o=jnp.zeros((1, D), jnp.float32),
            ln2_g=jnp.ones((1, D), jnp.float32), ln2_b=jnp.zeros((1, D), jnp.float32),
            w1=nrm((D, M), math.sqrt(2.0 / (D + M))), b1=nrm((1, M), 1e-6),
            w2=nrm((M, D), math.sqrt(2.0 / (D + M))), b2=nrm((1, D), 1e-6),
        ))

    # NOTE: reset_weights() zero-inits the classification head; use a small
    # deterministic normal instead so the synthetic output is non-trivial.
    return dict(
        conv_w_mat=conv_w_mat, conv_b=conv_b,
        class_token=class_token, pos_embedding=pos_embedding,
        layers=layers,
        enc_ln_g=jnp.ones((1, D), jnp.float32), enc_ln_b=jnp.zeros((1, D), jnp.float32),
        head_w=nrm((D, out_dims), 0.02), head_b=jnp.zeros((1, out_dims), jnp.float32),
    )


def pack_params(params, *, num_heads):
    """Host-side prep: stack per-layer weights, fold 1/sqrt(head_dim) into the
    Q projection, and fold conv bias + class token + pos embedding into one
    per-position `base` array (so the kernel needs no concat/scale)."""
    D = params["conv_w_mat"].shape[1]
    hd = D // num_heads
    scale = 1.0 / math.sqrt(hd)

    pos = params["pos_embedding"]                     # (1, S, D)
    S = pos.shape[1]
    conv_b = params["conv_b"].reshape(1, 1, D)
    base = pos + jnp.concatenate(
        [params["class_token"], jnp.broadcast_to(conv_b, (1, S - 1, D))], axis=1)

    def stack(name):
        return jnp.stack([lp[name] for lp in params["layers"]], axis=0)

    q_scale = jnp.concatenate(
        [jnp.full((D,), scale, jnp.float32), jnp.ones((2 * D,), jnp.float32)])
    w_qkv = stack("w_qkv") * q_scale
    b_qkv = stack("b_qkv") * q_scale

    return dict(
        w_conv=params["conv_w_mat"], base=base,
        ln1_g=stack("ln1_g"), ln1_b=stack("ln1_b"),
        w_qkv=w_qkv, b_qkv=b_qkv,
        w_o=stack("w_o"), b_o=stack("b_o"),
        ln2_g=stack("ln2_g"), ln2_b=stack("ln2_b"),
        w1=stack("w1"), b1=stack("b1"),
        w2=stack("w2"), b2=stack("b2"),
        enc_ln_g=params["enc_ln_g"], enc_ln_b=params["enc_ln_b"],
        head_w=params["head_w"], head_b=params["head_b"],
    )


if __name__ == "__main__":
    # Small config consistent with the module's forward.
    N, C, L = 2, 4, 16           # batch, in_channels, seq_length
    patch_size = 4               # kernel_size == stride -> n_patches = 4, S = 5
    n_patches = L // patch_size
    hidden_dim, mlp_dim = 32, 64
    num_layers, num_heads = 2, 4
    out_dims = 3

    key = jax.random.PRNGKey(0)
    kx, ka, kp = jax.random.split(key, 3)
    x = jax.random.normal(kx, (N, C, L), jnp.float32)
    age = jax.random.uniform(ka, (N,), jnp.float32)   # unused (use_age='no')

    params = init_params(
        kp, in_channels=C, patch_size=patch_size, n_patches=n_patches,
        hidden_dim=hidden_dim, mlp_dim=mlp_dim, num_layers=num_layers,
        out_dims=out_dims,
    )
    packed = pack_params(params, num_heads=num_heads)

    fwd = jax.jit(functools.partial(
        vit1d_forward, patch_size=patch_size, num_heads=num_heads,
        num_layers=num_layers))

    out = fwd(x, age, packed)
    out = jax.block_until_ready(out)
    assert out.shape == (N, out_dims) and out.dtype == jnp.float32
    assert bool(jnp.all(jnp.isfinite(out)))
    print("KERNEL_OK")
</pallas_src>

<mosaic_0001>
module attributes {stable_mosaic.version = 11 : i64} {
  func.func @_vit_fused_kernel(%arg0: i32, %arg1: memref<2x5x16xf32, #tpu.memory_space<vmem>>, %arg2: memref<16x32xf32, #tpu.memory_space<vmem>>, %arg3: memref<1x5x32xf32, #tpu.memory_space<vmem>>, %arg4: memref<2x1x32xf32, #tpu.memory_space<vmem>>, %arg5: memref<2x1x32xf32, #tpu.memory_space<vmem>>, %arg6: memref<2x32x96xf32, #tpu.memory_space<vmem>>, %arg7: memref<2x1x96xf32, #tpu.memory_space<vmem>>, %arg8: memref<2x32x32xf32, #tpu.memory_space<vmem>>, %arg9: memref<2x1x32xf32, #tpu.memory_space<vmem>>, %arg10: memref<2x1x32xf32, #tpu.memory_space<vmem>>, %arg11: memref<2x1x32xf32, #tpu.memory_space<vmem>>, %arg12: memref<2x32x64xf32, #tpu.memory_space<vmem>>, %arg13: memref<2x1x64xf32, #tpu.memory_space<vmem>>, %arg14: memref<2x64x32xf32, #tpu.memory_space<vmem>>, %arg15: memref<2x1x32xf32, #tpu.memory_space<vmem>>, %arg16: memref<1x32xf32, #tpu.memory_space<vmem>>, %arg17: memref<1x32xf32, #tpu.memory_space<vmem>>, %arg18: memref<32x3xf32, #tpu.memory_space<vmem>>, %arg19: memref<1x3xf32, #tpu.memory_space<vmem>>, %arg20: memref<2x1x3xf32, #tpu.memory_space<vmem>>) attributes {dimension_semantics = [#tpu.dimension_semantics<arbitrary>], iteration_bounds = array<i64: 1>, scalar_prefetch = 0 : i64, scratch_operands = 0 : i64, tpu.core_type = #tpu.core_type<tc>, window_params = [{pipeline_mode = #tpu.pipeline_mode<synchronous>, transform_indices = @transform_0, window_bounds = array<i64: 2, 5, 16>}, {pipeline_mode = #tpu.pipeline_mode<synchronous>, transform_indices = @transform_1, window_bounds = array<i64: 16, 32>}, {pipeline_mode = #tpu.pipeline_mode<synchronous>, transform_indices = @transform_2, window_bounds = array<i64: 1, 5, 32>}, {pipeline_mode = #tpu.pipeline_mode<synchronous>, transform_indices = @transform_3, window_bounds = array<i64: 2, 1, 32>}, {pipeline_mode = #tpu.pipeline_mode<synchronous>, transform_indices = @transform_4, window_bounds = array<i64: 2, 1, 32>}, {pipeline_mode = #tpu.pipeline_mode<synchronous>, transform_indices = @transform_5, window_bounds = array<i64: 2, 32, 96>}, {pipeline_mode = #tpu.pipeline_mode<synchronous>, transform_indices = @transform_6, window_bounds = array<i64: 2, 1, 96>}, {pipeline_mode = #tpu.pipeline_mode<synchronous>, transform_indices = @transform_7, window_bounds = array<i64: 2, 32, 32>}, {pipeline_mode = #tpu.pipeline_mode<synchronous>, transform_indices = @transform_8, window_bounds = array<i64: 2, 1, 32>}, {pipeline_mode = #tpu.pipeline_mode<synchronous>, transform_indices = @transform_9, window_bounds = array<i64: 2, 1, 32>}, {pipeline_mode = #tpu.pipeline_mode<synchronous>, transform_indices = @transform_10, window_bounds = array<i64: 2, 1, 32>}, {pipeline_mode = #tpu.pipeline_mode<synchronous>, transform_indices = @transform_11, window_bounds = array<i64: 2, 32, 64>}, {pipeline_mode = #tpu.pipeline_mode<synchronous>, transform_indices = @transform_12, window_bounds = array<i64: 2, 1, 64>}, {pipeline_mode = #tpu.pipeline_mode<synchronous>, transform_indices = @transform_13, window_bounds = array<i64: 2, 64, 32>}, {pipeline_mode = #tpu.pipeline_mode<synchronous>, transform_indices = @transform_14, window_bounds = array<i64: 2, 1, 32>}, {pipeline_mode = #tpu.pipeline_mode<synchronous>, transform_indices = @transform_15, window_bounds = array<i64: 1, 32>}, {pipeline_mode = #tpu.pipeline_mode<synchronous>, transform_indices = @transform_16, window_bounds = array<i64: 1, 32>}, {pipeline_mode = #tpu.pipeline_mode<synchronous>, transform_indices = @transform_17, window_bounds = array<i64: 32, 3>}, {pipeline_mode = #tpu.pipeline_mode<synchronous>, transform_indices = @transform_18, window_bounds = array<i64: 1, 3>}, {pipeline_mode = #tpu.pipeline_mode<synchronous>, transform_indices = @transform_19, window_bounds = array<i64: 2, 1, 3>}]} {
    %c0 = arith.constant 0 : index
    %c0_0 = arith.constant 0 : index
    %c0_1 = arith.constant 0 : index
    %0 = vector.load %arg1[%c0, %c0_0, %c0_1] : memref<2x5x16xf32, #tpu.memory_space<vmem>>, vector<2x5x16xf32>
    %c0_2 = arith.constant 0 : index
    %c0_3 = arith.constant 0 : index
    %1 = vector.load %arg2[%c0_2, %c0_3] : memref<16x32xf32, #tpu.memory_space<vmem>>, vector<16x32xf32>
    %2 = vector.shape_cast %1 : vector<16x32xf32> to vector<1x16x32xf32>
    %3 = vector.broadcast %2 : vector<1x16x32xf32> to vector<2x16x32xf32>
    %cst = arith.constant dense<0.000000e+00> : vector<2x5x32xf32>
    %4 = tpu.matmul %0, %3, %cst {dimension_numbers = #tpu.dot_dimension_numbers<[2], [1], [1], [2], [0, 0, 0, 1, 1, 2], [0], [0]>} : vector<2x5x16xf32>, vector<2x16x32xf32>, vector<2x5x32xf32> -> vector<2x5x32xf32>
    %c0_4 = arith.constant 0 : index
    %c0_5 = arith.constant 0 : index
    %c0_6 = arith.constant 0 : index
    %5 = vector.load %arg3[%c0_4, %c0_5, %c0_6] : memref<1x5x32xf32, #tpu.memory_space<vmem>>, vector<1x5x32xf32>
    %6 = vector.broadcast %5 : vector<1x5x32xf32> to vector<2x5x32xf32>
    %7 = arith.addf %4, %6 : vector<2x5x32xf32>
    %c0_7 = arith.constant 0 : index
    %c0_8 = arith.constant 0 : index
    %c0_9 = arith.constant 0 : index
    %8 = vector.load %arg4[%c0_7, %c0_8, %c0_9] : memref<2x1x32xf32, #tpu.memory_space<vmem>>, vector<1x1x32xf32>
    %9 = vector.shape_cast %8 : vector<1x1x32xf32> to vector<1x32xf32>
    %c0_10 = arith.constant 0 : index
    %c0_11 = arith.constant 0 : index
    %c0_12 = arith.constant 0 : index
    %10 = vector.load %arg5[%c0_10, %c0_11, %c0_12] : memref<2x1x32xf32, #tpu.memory_space<vmem>>, vector<1x1x32xf32>
    %11 = vector.shape_cast %10 : vector<1x1x32xf32> to vector<1x32xf32>
    %cst_13 = arith.constant dense<0.000000e+00> : vector<2x5xf32>
    %12 = vector.multi_reduction <add>, %7, %cst_13 [2] : vector<2x5x32xf32> to vector<2x5xf32>
    %13 = vector.shape_cast %12 : vector<2x5xf32> to vector<2x5x1xf32>
    %cst_14 = arith.constant 3.200000e+01 : f32
    %14 = vector.broadcast %cst_14 : f32 to vector<2x5x1xf32>
    %15 = arith.divf %13, %14 : vector<2x5x1xf32>
    %16 = vector.broadcast %15 : vector<2x5x1xf32> to vector<2x5x32xf32>
    %17 = arith.subf %7, %16 : vector<2x5x32xf32>
    %18 = arith.mulf %17, %17 : vector<2x5x32xf32>
    %cst_15 = arith.constant dense<0.000000e+00> : vector<2x5xf32>
    %19 = vector.multi_reduction <add>, %18, %cst_15 [2] : vector<2x5x32xf32> to vector<2x5xf32>
    %20 = vector.shape_cast %19 : vector<2x5xf32> to vector<2x5x1xf32>
    %cst_16 = arith.constant 3.200000e+01 : f32
    %21 = vector.broadcast %cst_16 : f32 to vector<2x5x1xf32>
    %22 = arith.divf %20, %21 : vector<2x5x1xf32>
    %23 = vector.broadcast %15 : vector<2x5x1xf32> to vector<2x5x32xf32>
    %24 = arith.subf %7, %23 : vector<2x5x32xf32>
    %cst_17 = arith.constant 9.99999997E-7 : f32
    %25 = vector.broadcast %cst_17 : f32 to vector<2x5x1xf32>
    %26 = arith.addf %22, %25 : vector<2x5x1xf32>
    %27 = math.rsqrt %26 : vector<2x5x1xf32>
    %28 = vector.broadcast %27 : vector<2x5x1xf32> to vector<2x5x32xf32>
    %29 = arith.mulf %24, %28 : vector<2x5x32xf32>
    %30 = vector.shape_cast %9 : vector<1x32xf32> to vector<1x1x32xf32>
    %31 = vector.broadcast %30 : vector<1x1x32xf32> to vector<2x5x32xf32>
    %32 = arith.mulf %29, %31 : vector<2x5x32xf32>
    %33 = vector.shape_cast %11 : vector<1x32xf32> to vector<1x1x32xf32>
    %34 = vector.broadcast %33 : vector<1x1x32xf32> to vector<2x5x32xf32>
    %35 = arith.addf %32, %34 : vector<2x5x32xf32>
    %c0_18 = arith.constant 0 : index
    %c0_19 = arith.constant 0 : index
    %c0_20 = arith.constant 0 : index
    %36 = vector.load %arg6[%c0_18, %c0_19, %c0_20] : memref<2x32x96xf32, #tpu.memory_space<vmem>>, vector<1x32x96xf32>
    %37 = vector.shape_cast %36 : vector<1x32x96xf32> to vector<32x96xf32>
    %38 = vector.shape_cast %37 : vector<32x96xf32> to vector<1x32x96xf32>
    %39 = vector.broadcast %38 : vector<1x32x96xf32> to vector<2x32x96xf32>
    %cst_21 = arith.constant dense<0.000000e+00> : vector<2x5x96xf32>
    %40 = tpu.matmul %35, %39, %cst_21 {dimension_numbers = #tpu.dot_dimension_numbers<[2], [1], [1], [2], [0, 0, 0, 1, 1, 2], [0], [0]>} : vector<2x5x32xf32>, vector<2x32x96xf32>, vector<2x5x96xf32> -> vector<2x5x96xf32>
    %c0_22 = arith.constant 0 : index
    %c0_23 = arith.constant 0 : index
    %c0_24 = arith.constant 0 : index
    %41 = vector.load %arg7[%c0_22, %c0_23, %c0_24] : memref<2x1x96xf32, #tpu.memory_space<vmem>>, vector<1x1x96xf32>
    %42 = vector.shape_cast %41 : vector<1x1x96xf32> to vector<1x96xf32>
    %43 = vector.shape_cast %42 : vector<1x96xf32> to vector<1x1x96xf32>
    %44 = vector.broadcast %43 : vector<1x1x96xf32> to vector<2x5x96xf32>
    %45 = arith.addf %40, %44 : vector<2x5x96xf32>
    %46 = vector.extract_strided_slice %45 {offsets = [0, 0, 0], sizes = [2, 5, 32], strides = [1, 1, 1]} : vector<2x5x96xf32> to vector<2x5x32xf32>
    %47 = vector.extract_strided_slice %45 {offsets = [0, 0, 32], sizes = [2, 5, 32], strides = [1, 1, 1]} : vector<2x5x96xf32> to vector<2x5x32xf32>
    %48 = vector.extract_strided_slice %45 {offsets = [0, 0, 64], sizes = [2, 5, 32], strides = [1, 1, 1]} : vector<2x5x96xf32> to vector<2x5x32xf32>
    %c0_25 = arith.constant 0 : index
    %c0_26 = arith.constant 0 : index
    %c0_27 = arith.constant 0 : index
    %49 = vector.load %arg8[%c0_25, %c0_26, %c0_27] : memref<2x32x32xf32, #tpu.memory_space<vmem>>, vector<1x32x32xf32>
    %50 = vector.shape_cast %49 : vector<1x32x32xf32> to vector<32x32xf32>
    %cst_28 = arith.constant 0.000000e+00 : f32
    %51 = vector.broadcast %cst_28 : f32 to vector<2x5x32xf32>
    %52 = vector.extract_strided_slice %46 {offsets = [0, 0, 0], sizes = [2, 5, 8], strides = [1, 1, 1]} : vector<2x5x32xf32> to vector<2x5x8xf32>
    %53 = vector.extract_strided_slice %47 {offsets = [0, 0, 0], sizes = [2, 5, 8], strides = [1, 1, 1]} : vector<2x5x32xf32> to vector<2x5x8xf32>
    %cst_29 = arith.constant dense<0.000000e+00> : vector<2x5x5xf32>
    %54 = tpu.matmul %52, %53, %cst_29 {dimension_numbers = #tpu.dot_dimension_numbers<[2], [2], [1], [1], [0, 0, 0, 1, 1, 1], [0], [0]>} : vector<2x5x8xf32>, vector<2x5x8xf32>, vector<2x5x5xf32> -> vector<2x5x5xf32>
    %cst_30 = arith.constant dense<0xFF800000> : vector<2x5xf32>
    %55 = vector.multi_reduction <maximumf>, %54, %cst_30 [2] : vector<2x5x5xf32> to vector<2x5xf32>
    %56 = vector.shape_cast %55 : vector<2x5xf32> to vector<2x5x1xf32>
    %57 = vector.broadcast %56 : vector<2x5x1xf32> to vector<2x5x5xf32>
    %58 = arith.subf %54, %57 : vector<2x5x5xf32>
    %59 = math.exp %58 : vector<2x5x5xf32>
    %cst_31 = arith.constant dense<0.000000e+00> : vector<2x5xf32>
    %60 = vector.multi_reduction <add>, %59, %cst_31 [2] : vector<2x5x5xf32> to vector<2x5xf32>
    %61 = vector.shape_cast %60 : vector<2x5xf32> to vector<2x5x1xf32>
    %62 = vector.broadcast %61 : vector<2x5x1xf32> to vector<2x5x5xf32>
    %63 = arith.divf %59, %62 : vector<2x5x5xf32>
    %64 = vector.extract_strided_slice %48 {offsets = [0, 0, 0], sizes = [2, 5, 8], strides = [1, 1, 1]} : vector<2x5x32xf32> to vector<2x5x8xf32>
    %cst_32 = arith.constant dense<0.000000e+00> : vector<2x5x8xf32>
    %65 = tpu.matmul %63, %64, %cst_32 {dimension_numbers = #tpu.dot_dimension_numbers<[2], [1], [1], [2], [0, 0, 0, 1, 1, 2], [0], [0]>} : vector<2x5x5xf32>, vector<2x5x8xf32>, vector<2x5x8xf32> -> vector<2x5x8xf32>
    %66 = vector.extract_strided_slice %50 {offsets = [0, 0], sizes = [8, 32], strides = [1, 1]} : vector<32x32xf32> to vector<8x32xf32>
    %67 = vector.shape_cast %66 : vector<8x32xf32> to vector<1x8x32xf32>
    %68 = vector.broadcast %67 : vector<1x8x32xf32> to vector<2x8x32xf32>
    %cst_33 = arith.constant dense<0.000000e+00> : vector<2x5x32xf32>
    %69 = tpu.matmul %65, %68, %cst_33 {dimension_numbers = #tpu.dot_dimension_numbers<[2], [1], [1], [2], [0, 0, 0, 1, 1, 2], [0], [0]>} : vector<2x5x8xf32>, vector<2x8x32xf32>, vector<2x5x32xf32> -> vector<2x5x32xf32>
    %70 = arith.addf %51, %69 : vector<2x5x32xf32>
    %71 = vector.extract_strided_slice %46 {offsets = [0, 0, 8], sizes = [2, 5, 8], strides = [1, 1, 1]} : vector<2x5x32xf32> to vector<2x5x8xf32>
    %72 = vector.extract_strided_slice %47 {offsets = [0, 0, 8], sizes = [2, 5, 8], strides = [1, 1, 1]} : vector<2x5x32xf32> to vector<2x5x8xf32>
    %cst_34 = arith.constant dense<0.000000e+00> : vector<2x5x5xf32>
    %73 = tpu.matmul %71, %72, %cst_34 {dimension_numbers = #tpu.dot_dimension_numbers<[2], [2], [1], [1], [0, 0, 0, 1, 1, 1], [0], [0]>} : vector<2x5x8xf32>, vector<2x5x8xf32>, vector<2x5x5xf32> -> vector<2x5x5xf32>
    %cst_35 = arith.constant dense<0xFF800000> : vector<2x5xf32>
    %74 = vector.multi_reduction <maximumf>, %73, %cst_35 [2] : vector<2x5x5xf32> to vector<2x5xf32>
    %75 = vector.shape_cast %74 : vector<2x5xf32> to vector<2x5x1xf32>
    %76 = vector.broadcast %75 : vector<2x5x1xf32> to vector<2x5x5xf32>
    %77 = arith.subf %73, %76 : vector<2x5x5xf32>
    %78 = math.exp %77 : vector<2x5x5xf32>
    %cst_36 = arith.constant dense<0.000000e+00> : vector<2x5xf32>
    %79 = vector.multi_reduction <add>, %78, %cst_36 [2] : vector<2x5x5xf32> to vector<2x5xf32>
    %80 = vector.shape_cast %79 : vector<2x5xf32> to vector<2x5x1xf32>
    %81 = vector.broadcast %80 : vector<2x5x1xf32> to vector<2x5x5xf32>
    %82 = arith.divf %78, %81 : vector<2x5x5xf32>
    %83 = vector.extract_strided_slice %48 {offsets = [0, 0, 8], sizes = [2, 5, 8], strides = [1, 1, 1]} : vector<2x5x32xf32> to vector<2x5x8xf32>
    %cst_37 = arith.constant dense<0.000000e+00> : vector<2x5x8xf32>
    %84 = tpu.matmul %82, %83, %cst_37 {dimension_numbers = #tpu.dot_dimension_numbers<[2], [1], [1], [2], [0, 0, 0, 1, 1, 2], [0], [0]>} : vector<2x5x5xf32>, vector<2x5x8xf32>, vector<2x5x8xf32> -> vector<2x5x8xf32>
    %85 = vector.extract_strided_slice %50 {offsets = [8, 0], sizes = [8, 32], strides = [1, 1]} : vector<32x32xf32> to vector<8x32xf32>
    %86 = vector.shape_cast %85 : vector<8x32xf32> to vector<1x8x32xf32>
    %87 = vector.broadcast %86 : vector<1x8x32xf32> to vector<2x8x32xf32>
    %cst_38 = arith.constant dense<0.000000e+00> : vector<2x5x32xf32>
    %88 = tpu.matmul %84, %87, %cst_38 {dimension_numbers = #tpu.dot_dimension_numbers<[2], [1], [1], [2], [0, 0, 0, 1, 1, 2], [0], [0]>} : vector<2x5x8xf32>, vector<2x8x32xf32>, vector<2x5x32xf32> -> vector<2x5x32xf32>
    %89 = arith.addf %70, %88 : vector<2x5x32xf32>
    %90 = vector.extract_strided_slice %46 {offsets = [0, 0, 16], sizes = [2, 5, 8], strides = [1, 1, 1]} : vector<2x5x32xf32> to vector<2x5x8xf32>
    %91 = vector.extract_strided_slice %47 {offsets = [0, 0, 16], sizes = [2, 5, 8], strides = [1, 1, 1]} : vector<2x5x32xf32> to vector<2x5x8xf32>
    %cst_39 = arith.constant dense<0.000000e+00> : vector<2x5x5xf32>
    %92 = tpu.matmul %90, %91, %cst_39 {dimension_numbers = #tpu.dot_dimension_numbers<[2], [2], [1], [1], [0, 0, 0, 1, 1, 1], [0], [0]>} : vector<2x5x8xf32>, vector<2x5x8xf32>, vector<2x5x5xf32> -> vector<2x5x5xf32>
    %cst_40 = arith.constant dense<0xFF800000> : vector<2x5xf32>
    %93 = vector.multi_reduction <maximumf>, %92, %cst_40 [2] : vector<2x5x5xf32> to vector<2x5xf32>
    %94 = vector.shape_cast %93 : vector<2x5xf32> to vector<2x5x1xf32>
    %95 = vector.broadcast %94 : vector<2x5x1xf32> to vector<2x5x5xf32>
    %96 = arith.subf %92, %95 : vector<2x5x5xf32>
    %97 = math.exp %96 : vector<2x5x5xf32>
    %cst_41 = arith.constant dense<0.000000e+00> : vector<2x5xf32>
    %98 = vector.multi_reduction <add>, %97, %cst_41 [2] : vector<2x5x5xf32> to vector<2x5xf32>
    %99 = vector.shape_cast %98 : vector<2x5xf32> to vector<2x5x1xf32>
    %100 = vector.broadcast %99 : vector<2x5x1xf32> to vector<2x5x5xf32>
    %101 = arith.divf %97, %100 : vector<2x5x5xf32>
    %102 = vector.extract_strided_slice %48 {offsets = [0, 0, 16], sizes = [2, 5, 8], strides = [1, 1, 1]} : vector<2x5x32xf32> to vector<2x5x8xf32>
    %cst_42 = arith.constant dense<0.000000e+00> : vector<2x5x8xf32>
    %103 = tpu.matmul %101, %102, %cst_42 {dimension_numbers = #tpu.dot_dimension_numbers<[2], [1], [1], [2], [0, 0, 0, 1, 1, 2], [0], [0]>} : vector<2x5x5xf32>, vector<2x5x8xf32>, vector<2x5x8xf32> -> vector<2x5x8xf32>
    %104 = vector.extract_strided_slice %50 {offsets = [16, 0], sizes = [8, 32], strides = [1, 1]} : vector<32x32xf32> to vector<8x32xf32>
    %105 = vector.shape_cast %104 : vector<8x32xf32> to vector<1x8x32xf32>
    %106 = vector.broadcast %105 : vector<1x8x32xf32> to vector<2x8x32xf32>
    %cst_43 = arith.constant dense<0.000000e+00> : vector<2x5x32xf32>
    %107 = tpu.matmul %103, %106, %cst_43 {dimension_numbers = #tpu.dot_dimension_numbers<[2], [1], [1], [2], [0, 0, 0, 1, 1, 2], [0], [0]>} : vector<2x5x8xf32>, vector<2x8x32xf32>, vector<2x5x32xf32> -> vector<2x5x32xf32>
    %108 = arith.addf %89, %107 : vector<2x5x32xf32>
    %109 = vector.extract_strided_slice %46 {offsets = [0, 0, 24], sizes = [2, 5, 8], strides = [1, 1, 1]} : vector<2x5x32xf32> to vector<2x5x8xf32>
    %110 = vector.extract_strided_slice %47 {offsets = [0, 0, 24], sizes = [2, 5, 8], strides = [1, 1, 1]} : vector<2x5x32xf32> to vector<2x5x8xf32>
    %cst_44 = arith.constant dense<0.000000e+00> : vector<2x5x5xf32>
    %111 = tpu.matmul %109, %110, %cst_44 {dimension_numbers = #tpu.dot_dimension_numbers<[2], [2], [1], [1], [0, 0, 0, 1, 1, 1], [0], [0]>} : vector<2x5x8xf32>, vector<2x5x8xf32>, vector<2x5x5xf32> -> vector<2x5x5xf32>
    %cst_45 = arith.constant dense<0xFF800000> : vector<2x5xf32>
    %112 = vector.multi_reduction <maximumf>, %111, %cst_45 [2] : vector<2x5x5xf32> to vector<2x5xf32>
    %113 = vector.shape_cast %112 : vector<2x5xf32> to vector<2x5x1xf32>
    %114 = vector.broadcast %113 : vector<2x5x1xf32> to vector<2x5x5xf32>
    %115 = arith.subf %111, %114 : vector<2x5x5xf32>
    %116 = math.exp %115 : vector<2x5x5xf32>
    %cst_46 = arith.constant dense<0.000000e+00> : vector<2x5xf32>
    %117 = vector.multi_reduction <add>, %116, %cst_46 [2] : vector<2x5x5xf32> to vector<2x5xf32>
    %118 = vector.shape_cast %117 : vector<2x5xf32> to vector<2x5x1xf32>
    %119 = vector.broadcast %118 : vector<2x5x1xf32> to vector<2x5x5xf32>
    %120 = arith.divf %116, %119 : vector<2x5x5xf32>
    %121 = vector.extract_strided_slice %48 {offsets = [0, 0, 24], sizes = [2, 5, 8], strides = [1, 1, 1]} : vector<2x5x32xf32> to vector<2x5x8xf32>
    %cst_47 = arith.constant dense<0.000000e+00> : vector<2x5x8xf32>
    %122 = tpu.matmul %120, %121, %cst_47 {dimension_numbers = #tpu.dot_dimension_numbers<[2], [1], [1], [2], [0, 0, 0, 1, 1, 2], [0], [0]>} : vector<2x5x5xf32>, vector<2x5x8xf32>, vector<2x5x8xf32> -> vector<2x5x8xf32>
    %123 = vector.extract_strided_slice %50 {offsets = [24, 0], sizes = [8, 32], strides = [1, 1]} : vector<32x32xf32> to vector<8x32xf32>
    %124 = vector.shape_cast %123 : vector<8x32xf32> to vector<1x8x32xf32>
    %125 = vector.broadcast %124 : vector<1x8x32xf32> to vector<2x8x32xf32>
    %cst_48 = arith.constant dense<0.000000e+00> : vector<2x5x32xf32>
    %126 = tpu.matmul %122, %125, %cst_48 {dimension_numbers = #tpu.dot_dimension_numbers<[2], [1], [1], [2], [0, 0, 0, 1, 1, 2], [0], [0]>} : vector<2x5x8xf32>, vector<2x8x32xf32>, vector<2x5x32xf32> -> vector<2x5x32xf32>
    %127 = arith.addf %108, %126 : vector<2x5x32xf32>
    %128 = arith.addf %7, %127 : vector<2x5x32xf32>
    %c0_49 = arith.constant 0 : index
    %c0_50 = arith.constant 0 : index
    %c0_51 = arith.constant 0 : index
    %129 = vector.load %arg9[%c0_49, %c0_50, %c0_51] : memref<2x1x32xf32, #tpu.memory_space<vmem>>, vector<1x1x32xf32>
    %130 = vector.shape_cast %129 : vector<1x1x32xf32> to vector<1x32xf32>
    %131 = vector.shape_cast %130 : vector<1x32xf32> to vector<1x1x32xf32>
    %132 = vector.broadcast %131 : vector<1x1x32xf32> to vector<2x5x32xf32>
    %133 = arith.addf %128, %132 : vector<2x5x32xf32>
    %c0_52 = arith.constant 0 : index
    %c0_53 = arith.constant 0 : index
    %c0_54 = arith.constant 0 : index
    %134 = vector.load %arg10[%c0_52, %c0_53, %c0_54] : memref<2x1x32xf32, #tpu.memory_space<vmem>>, vector<1x1x32xf32>
    %135 = vector.shape_cast %134 : vector<1x1x32xf32> to vector<1x32xf32>
    %c0_55 = arith.constant 0 : index
    %c0_56 = arith.constant 0 : index
    %c0_57 = arith.constant 0 : index
    %136 = vector.load %arg11[%c0_55, %c0_56, %c0_57] : memref<2x1x32xf32, #tpu.memory_space<vmem>>, vector<1x1x32xf32>
    %137 = vector.shape_cast %136 : vector<1x1x32xf32> to vector<1x32xf32>
    %cst_58 = arith.constant dense<0.000000e+00> : vector<2x5xf32>
    %138 = vector.multi_reduction <add>, %133, %cst_58 [2] : vector<2x5x32xf32> to vector<2x5xf32>
    %139 = vector.shape_cast %138 : vector<2x5xf32> to vector<2x5x1xf32>
    %cst_59 = arith.constant 3.200000e+01 : f32
    %140 = vector.broadcast %cst_59 : f32 to vector<2x5x1xf32>
    %141 = arith.divf %139, %140 : vector<2x5x1xf32>
    %142 = vector.broadcast %141 : vector<2x5x1xf32> to vector<2x5x32xf32>
    %143 = arith.subf %133, %142 : vector<2x5x32xf32>
    %144 = arith.mulf %143, %143 : vector<2x5x32xf32>
    %cst_60 = arith.constant dense<0.000000e+00> : vector<2x5xf32>
    %145 = vector.multi_reduction <add>, %144, %cst_60 [2] : vector<2x5x32xf32> to vector<2x5xf32>
    %146 = vector.shape_cast %145 : vector<2x5xf32> to vector<2x5x1xf32>
    %cst_61 = arith.constant 3.200000e+01 : f32
    %147 = vector.broadcast %cst_61 : f32 to vector<2x5x1xf32>
    %148 = arith.divf %146, %147 : vector<2x5x1xf32>
    %149 = vector.broadcast %141 : vector<2x5x1xf32> to vector<2x5x32xf32>
    %150 = arith.subf %133, %149 : vector<2x5x32xf32>
    %cst_62 = arith.constant 9.99999997E-7 : f32
    %151 = vector.broadcast %cst_62 : f32 to vector<2x5x1xf32>
    %152 = arith.addf %148, %151 : vector<2x5x1xf32>
    %153 = math.rsqrt %152 : vector<2x5x1xf32>
    %154 = vector.broadcast %153 : vector<2x5x1xf32> to vector<2x5x32xf32>
    %155 = arith.mulf %150, %154 : vector<2x5x32xf32>
    %156 = vector.shape_cast %135 : vector<1x32xf32> to vector<1x1x32xf32>
    %157 = vector.broadcast %156 : vector<1x1x32xf32> to vector<2x5x32xf32>
    %158 = arith.mulf %155, %157 : vector<2x5x32xf32>
    %159 = vector.shape_cast %137 : vector<1x32xf32> to vector<1x1x32xf32>
    %160 = vector.broadcast %159 : vector<1x1x32xf32> to vector<2x5x32xf32>
    %161 = arith.addf %158, %160 : vector<2x5x32xf32>
    %c0_63 = arith.constant 0 : index
    %c0_64 = arith.constant 0 : index
    %c0_65 = arith.constant 0 : index
    %162 = vector.load %arg12[%c0_63, %c0_64, %c0_65] : memref<2x32x64xf32, #tpu.memory_space<vmem>>, vector<1x32x64xf32>
    %163 = vector.shape_cast %162 : vector<1x32x64xf32> to vector<32x64xf32>
    %164 = vector.shape_cast %163 : vector<32x64xf32> to vector<1x32x64xf32>
    %165 = vector.broadcast %164 : vector<1x32x64xf32> to vector<2x32x64xf32>
    %cst_66 = arith.constant dense<0.000000e+00> : vector<2x5x64xf32>
    %166 = tpu.matmul %161, %165, %cst_66 {dimension_numbers = #tpu.dot_dimension_numbers<[2], [1], [1], [2], [0, 0, 0, 1, 1, 2], [0], [0]>} : vector<2x5x32xf32>, vector<2x32x64xf32>, vector<2x5x64xf32> -> vector<2x5x64xf32>
    %c0_67 = arith.constant 0 : index
    %c0_68 = arith.constant 0 : index
    %c0_69 = arith.constant 0 : index
    %167 = vector.load %arg13[%c0_67, %c0_68, %c0_69] : memref<2x1x64xf32, #tpu.memory_space<vmem>>, vector<1x1x64xf32>
    %168 = vector.shape_cast %167 : vector<1x1x64xf32> to vector<1x64xf32>
    %169 = vector.shape_cast %168 : vector<1x64xf32> to vector<1x1x64xf32>
    %170 = vector.broadcast %169 : vector<1x1x64xf32> to vector<2x5x64xf32>
    %171 = arith.addf %166, %170 : vector<2x5x64xf32>
    %cst_70 = arith.constant 5.000000e-01 : f32
    %172 = vector.broadcast %cst_70 : f32 to vector<2x5x64xf32>
    %173 = arith.mulf %172, %171 : vector<2x5x64xf32>
    %cst_71 = arith.constant 0.707106769 : f32
    %174 = vector.broadcast %cst_71 : f32 to vector<2x5x64xf32>
    %175 = arith.mulf %171, %174 : vector<2x5x64xf32>
    %cst_72 = arith.constant 0.000000e+00 : f32
    %176 = vector.broadcast %cst_72 : f32 to vector<2x5x64xf32>
    %177 = arith.cmpf oge, %175, %176 : vector<2x5x64xf32>
    %cst_73 = arith.constant 1.000000e+00 : f32
    %cst_74 = arith.constant -1.000000e+00 : f32
    %178 = vector.broadcast %cst_73 : f32 to vector<2x5x64xf32>
    %179 = vector.broadcast %cst_74 : f32 to vector<2x5x64xf32>
    %180 = arith.select %177, %178, %179 : vector<2x5x64xi1>, vector<2x5x64xf32>
    %181 = arith.mulf %175, %180 : vector<2x5x64xf32>
    %cst_75 = arith.constant 0.327591091 : f32
    %182 = vector.broadcast %cst_75 : f32 to vector<2x5x64xf32>
    %183 = arith.mulf %182, %181 : vector<2x5x64xf32>
    %cst_76 = arith.constant 1.000000e+00 : f32
    %184 = vector.broadcast %cst_76 : f32 to vector<2x5x64xf32>
    %185 = arith.addf %184, %183 : vector<2x5x64xf32>
    %cst_77 = arith.constant 1.000000e+00 : f32
    %186 = vector.broadcast %cst_77 : f32 to vector<2x5x64xf32>
    %187 = arith.divf %186, %185 : vector<2x5x64xf32>
    %cst_78 = arith.constant 1.06140542 : f32
    %188 = vector.broadcast %cst_78 : f32 to vector<2x5x64xf32>
    %189 = arith.mulf %188, %187 : vector<2x5x64xf32>
    %cst_79 = arith.constant -1.45315206 : f32
    %190 = vector.broadcast %cst_79 : f32 to vector<2x5x64xf32>
    %191 = arith.addf %189, %190 : vector<2x5x64xf32>
    %192 = arith.mulf %191, %187 : vector<2x5x64xf32>
    %cst_80 = arith.constant 1.42141378 : f32
    %193 = vector.broadcast %cst_80 : f32 to vector<2x5x64xf32>
    %194 = arith.addf %192, %193 : vector<2x5x64xf32>
    %195 = arith.mulf %194, %187 : vector<2x5x64xf32>
    %cst_81 = arith.constant -0.284496725 : f32
    %196 = vector.broadcast %cst_81 : f32 to vector<2x5x64xf32>
    %197 = arith.addf %195, %196 : vector<2x5x64xf32>
    %198 = arith.mulf %197, %187 : vector<2x5x64xf32>
    %cst_82 = arith.constant 0.254829586 : f32
    %199 = vector.broadcast %cst_82 : f32 to vector<2x5x64xf32>
    %200 = arith.addf %198, %199 : vector<2x5x64xf32>
    %201 = arith.mulf %200, %187 : vector<2x5x64xf32>
    %202 = arith.mulf %181, %181 : vector<2x5x64xf32>
    %cst_83 = arith.constant 0.000000e+00 : f32
    %203 = vector.broadcast %cst_83 : f32 to vector<2x5x64xf32>
    %204 = arith.subf %203, %202 : vector<2x5x64xf32>
    %205 = math.exp %204 : vector<2x5x64xf32>
    %206 = arith.mulf %201, %205 : vector<2x5x64xf32>
    %cst_84 = arith.constant 1.000000e+00 : f32
    %207 = vector.broadcast %cst_84 : f32 to vector<2x5x64xf32>
    %208 = arith.subf %207, %206 : vector<2x5x64xf32>
    %209 = arith.mulf %180, %208 : vector<2x5x64xf32>
    %cst_85 = arith.constant 1.000000e+00 : f32
    %210 = vector.broadcast %cst_85 : f32 to vector<2x5x64xf32>
    %211 = arith.addf %210, %209 : vector<2x5x64xf32>
    %212 = arith.mulf %173, %211 : vector<2x5x64xf32>
    %c0_86 = arith.constant 0 : index
    %c0_87 = arith.constant 0 : index
    %c0_88 = arith.constant 0 : index
    %213 = vector.load %arg14[%c0_86, %c0_87, %c0_88] : memref<2x64x32xf32, #tpu.memory_space<vmem>>, vector<1x64x32xf32>
    %214 = vector.shape_cast %213 : vector<1x64x32xf32> to vector<64x32xf32>
    %215 = vector.shape_cast %214 : vector<64x32xf32> to vector<1x64x32xf32>
    %216 = vector.broadcast %215 : vector<1x64x32xf32> to vector<2x64x32xf32>
    %cst_89 = arith.constant dense<0.000000e+00> : vector<2x5x32xf32>
    %217 = tpu.matmul %212, %216, %cst_89 {dimension_numbers = #tpu.dot_dimension_numbers<[2], [1], [1], [2], [0, 0, 0, 1, 1, 2], [0], [0]>} : vector<2x5x64xf32>, vector<2x64x32xf32>, vector<2x5x32xf32> -> vector<2x5x32xf32>
    %218 = arith.addf %133, %217 : vector<2x5x32xf32>
    %c0_90 = arith.constant 0 : index
    %c0_91 = arith.constant 0 : index
    %c0_92 = arith.constant 0 : index
    %219 = vector.load %arg15[%c0_90, %c0_91, %c0_92] : memref<2x1x32xf32, #tpu.memory_space<vmem>>, vector<1x1x32xf32>
    %220 = vector.shape_cast %219 : vector<1x1x32xf32> to vector<1x32xf32>
    %221 = vector.shape_cast %220 : vector<1x32xf32> to vector<1x1x32xf32>
    %222 = vector.broadcast %221 : vector<1x1x32xf32> to vector<2x5x32xf32>
    %223 = arith.addf %218, %222 : vector<2x5x32xf32>
    %c1 = arith.constant 1 : index
    %c0_93 = arith.constant 0 : index
    %c0_94 = arith.constant 0 : index
    %224 = vector.load %arg4[%c1, %c0_93, %c0_94] : memref<2x1x32xf32, #tpu.memory_space<vmem>>, vector<1x1x32xf32>
    %225 = vector.shape_cast %224 : vector<1x1x32xf32> to vector<1x32xf32>
    %c1_95 = arith.constant 1 : index
    %c0_96 = arith.constant 0 : index
    %c0_97 = arith.constant 0 : index
    %226 = vector.load %arg5[%c1_95, %c0_96, %c0_97] : memref<2x1x32xf32, #tpu.memory_space<vmem>>, vector<1x1x32xf32>
    %227 = vector.shape_cast %226 : vector<1x1x32xf32> to vector<1x32xf32>
    %cst_98 = arith.constant dense<0.000000e+00> : vector<2x5xf32>
    %228 = vector.multi_reduction <add>, %223, %cst_98 [2] : vector<2x5x32xf32> to vector<2x5xf32>
    %229 = vector.shape_cast %228 : vector<2x5xf32> to vector<2x5x1xf32>
    %cst_99 = arith.constant 3.200000e+01 : f32
    %230 = vector.broadcast %cst_99 : f32 to vector<2x5x1xf32>
    %231 = arith.divf %229, %230 : vector<2x5x1xf32>
    %232 = vector.broadcast %231 : vector<2x5x1xf32> to vector<2x5x32xf32>
    %233 = arith.subf %223, %232 : vector<2x5x32xf32>
    %234 = arith.mulf %233, %233 : vector<2x5x32xf32>
    %cst_100 = arith.constant dense<0.000000e+00> : vector<2x5xf32>
    %235 = vector.multi_reduction <add>, %234, %cst_100 [2] : vector<2x5x32xf32> to vector<2x5xf32>
    %236 = vector.shape_cast %235 : vector<2x5xf32> to vector<2x5x1xf32>
    %cst_101 = arith.constant 3.200000e+01 : f32
    %237 = vector.broadcast %cst_101 : f32 to vector<2x5x1xf32>
    %238 = arith.divf %236, %237 : vector<2x5x1xf32>
    %239 = vector.broadcast %231 : vector<2x5x1xf32> to vector<2x5x32xf32>
    %240 = arith.subf %223, %239 : vector<2x5x32xf32>
    %cst_102 = arith.constant 9.99999997E-7 : f32
    %241 = vector.broadcast %cst_102 : f32 to vector<2x5x1xf32>
    %242 = arith.addf %238, %241 : vector<2x5x1xf32>
    %243 = math.rsqrt %242 : vector<2x5x1xf32>
    %244 = vector.broadcast %243 : vector<2x5x1xf32> to vector<2x5x32xf32>
    %245 = arith.mulf %240, %244 : vector<2x5x32xf32>
    %246 = vector.shape_cast %225 : vector<1x32xf32> to vector<1x1x32xf32>
    %247 = vector.broadcast %246 : vector<1x1x32xf32> to vector<2x5x32xf32>
    %248 = arith.mulf %245, %247 : vector<2x5x32xf32>
    %249 = vector.shape_cast %227 : vector<1x32xf32> to vector<1x1x32xf32>
    %250 = vector.broadcast %249 : vector<1x1x32xf32> to vector<2x5x32xf32>
    %251 = arith.addf %248, %250 : vector<2x5x32xf32>
    %c1_103 = arith.constant 1 : index
    %c0_104 = arith.constant 0 : index
    %c0_105 = arith.constant 0 : index
    %252 = vector.load %arg6[%c1_103, %c0_104, %c0_105] : memref<2x32x96xf32, #tpu.memory_space<vmem>>, vector<1x32x96xf32>
    %253 = vector.shape_cast %252 : vector<1x32x96xf32> to vector<32x96xf32>
    %254 = vector.shape_cast %253 : vector<32x96xf32> to vector<1x32x96xf32>
    %255 = vector.broadcast %254 : vector<1x32x96xf32> to vector<2x32x96xf32>
    %cst_106 = arith.constant dense<0.000000e+00> : vector<2x5x96xf32>
    %256 = tpu.matmul %251, %255, %cst_106 {dimension_numbers = #tpu.dot_dimension_numbers<[2], [1], [1], [2], [0, 0, 0, 1, 1, 2], [0], [0]>} : vector<2x5x32xf32>, vector<2x32x96xf32>, vector<2x5x96xf32> -> vector<2x5x96xf32>
    %c1_107 = arith.constant 1 : index
    %c0_108 = arith.constant 0 : index
    %c0_109 = arith.constant 0 : index
    %257 = vector.load %arg7[%c1_107, %c0_108, %c0_109] : memref<2x1x96xf32, #tpu.memory_space<vmem>>, vector<1x1x96xf32>
    %258 = vector.shape_cast %257 : vector<1x1x96xf32> to vector<1x96xf32>
    %259 = vector.shape_cast %258 : vector<1x96xf32> to vector<1x1x96xf32>
    %260 = vector.broadcast %259 : vector<1x1x96xf32> to vector<2x5x96xf32>
    %261 = arith.addf %256, %260 : vector<2x5x96xf32>
    %262 = vector.extract_strided_slice %261 {offsets = [0, 0, 0], sizes = [2, 5, 32], strides = [1, 1, 1]} : vector<2x5x96xf32> to vector<2x5x32xf32>
    %263 = vector.extract_strided_slice %261 {offsets = [0, 0, 32], sizes = [2, 5, 32], strides = [1, 1, 1]} : vector<2x5x96xf32> to vector<2x5x32xf32>
    %264 = vector.extract_strided_slice %261 {offsets = [0, 0, 64], sizes = [2, 5, 32], strides = [1, 1, 1]} : vector<2x5x96xf32> to vector<2x5x32xf32>
    %c1_110 = arith.constant 1 : index
    %c0_111 = arith.constant 0 : index
    %c0_112 = arith.constant 0 : index
    %265 = vector.load %arg8[%c1_110, %c0_111, %c0_112] : memref<2x32x32xf32, #tpu.memory_space<vmem>>, vector<1x32x32xf32>
    %266 = vector.shape_cast %265 : vector<1x32x32xf32> to vector<32x32xf32>
    %cst_113 = arith.constant 0.000000e+00 : f32
    %267 = vector.broadcast %cst_113 : f32 to vector<2x5x32xf32>
    %268 = vector.extract_strided_slice %262 {offsets = [0, 0, 0], sizes = [2, 5, 8], strides = [1, 1, 1]} : vector<2x5x32xf32> to vector<2x5x8xf32>
    %269 = vector.extract_strided_slice %263 {offsets = [0, 0, 0], sizes = [2, 5, 8], strides = [1, 1, 1]} : vector<2x5x32xf32> to vector<2x5x8xf32>
    %cst_114 = arith.constant dense<0.000000e+00> : vector<2x5x5xf32>
    %270 = tpu.matmul %268, %269, %cst_114 {dimension_numbers = #tpu.dot_dimension_numbers<[2], [2], [1], [1], [0, 0, 0, 1, 1, 1], [0], [0]>} : vector<2x5x8xf32>, vector<2x5x8xf32>, vector<2x5x5xf32> -> vector<2x5x5xf32>
    %cst_115 = arith.constant dense<0xFF800000> : vector<2x5xf32>
    %271 = vector.multi_reduction <maximumf>, %270, %cst_115 [2] : vector<2x5x5xf32> to vector<2x5xf32>
    %272 = vector.shape_cast %271 : vector<2x5xf32> to vector<2x5x1xf32>
    %273 = vector.broadcast %272 : vector<2x5x1xf32> to vector<2x5x5xf32>
    %274 = arith.subf %270, %273 : vector<2x5x5xf32>
    %275 = math.exp %274 : vector<2x5x5xf32>
    %cst_116 = arith.constant dense<0.000000e+00> : vector<2x5xf32>
    %276 = vector.multi_reduction <add>, %275, %cst_116 [2] : vector<2x5x5xf32> to vector<2x5xf32>
    %277 = vector.shape_cast %276 : vector<2x5xf32> to vector<2x5x1xf32>
    %278 = vector.broadcast %277 : vector<2x5x1xf32> to vector<2x5x5xf32>
    %279 = arith.divf %275, %278 : vector<2x5x5xf32>
    %280 = vector.extract_strided_slice %264 {offsets = [0, 0, 0], sizes = [2, 5, 8], strides = [1, 1, 1]} : vector<2x5x32xf32> to vector<2x5x8xf32>
    %cst_117 = arith.constant dense<0.000000e+00> : vector<2x5x8xf32>
    %281 = tpu.matmul %279, %280, %cst_117 {dimension_numbers = #tpu.dot_dimension_numbers<[2], [1], [1], [2], [0, 0, 0, 1, 1, 2], [0], [0]>} : vector<2x5x5xf32>, vector<2x5x8xf32>, vector<2x5x8xf32> -> vector<2x5x8xf32>
    %282 = vector.extract_strided_slice %266 {offsets = [0, 0], sizes = [8, 32], strides = [1, 1]} : vector<32x32xf32> to vector<8x32xf32>
    %283 = vector.shape_cast %282 : vector<8x32xf32> to vector<1x8x32xf32>
    %284 = vector.broadcast %283 : vector<1x8x32xf32> to vector<2x8x32xf32>
    %cst_118 = arith.constant dense<0.000000e+00> : vector<2x5x32xf32>
    %285 = tpu.matmul %281, %284, %cst_118 {dimension_numbers = #tpu.dot_dimension_numbers<[2], [1], [1], [2], [0, 0, 0, 1, 1, 2], [0], [0]>} : vector<2x5x8xf32>, vector<2x8x32xf32>, vector<2x5x32xf32> -> vector<2x5x32xf32>
    %286 = arith.addf %267, %285 : vector<2x5x32xf32>
    %287 = vector.extract_strided_slice %262 {offsets = [0, 0, 8], sizes = [2, 5, 8], strides = [1, 1, 1]} : vector<2x5x32xf32> to vector<2x5x8xf32>
    %288 = vector.extract_strided_slice %263 {offsets = [0, 0, 8], sizes = [2, 5, 8], strides = [1, 1, 1]} : vector<2x5x32xf32> to vector<2x5x8xf32>
    %cst_119 = arith.constant dense<0.000000e+00> : vector<2x5x5xf32>
    %289 = tpu.matmul %287, %288, %cst_119 {dimension_numbers = #tpu.dot_dimension_numbers<[2], [2], [1], [1], [0, 0, 0, 1, 1, 1], [0], [0]>} : vector<2x5x8xf32>, vector<2x5x8xf32>, vector<2x5x5xf32> -> vector<2x5x5xf32>
    %cst_120 = arith.constant dense<0xFF800000> : vector<2x5xf32>
    %290 = vector.multi_reduction <maximumf>, %289, %cst_120 [2] : vector<2x5x5xf32> to vector<2x5xf32>
    %291 = vector.shape_cast %290 : vector<2x5xf32> to vector<2x5x1xf32>
    %292 = vector.broadcast %291 : vector<2x5x1xf32> to vector<2x5x5xf32>
    %293 = arith.subf %289, %292 : vector<2x5x5xf32>
    %294 = math.exp %293 : vector<2x5x5xf32>
    %cst_121 = arith.constant dense<0.000000e+00> : vector<2x5xf32>
    %295 = vector.multi_reduction <add>, %294, %cst_121 [2] : vector<2x5x5xf32> to vector<2x5xf32>
    %296 = vector.shape_cast %295 : vector<2x5xf32> to vector<2x5x1xf32>
    %297 = vector.broadcast %296 : vector<2x5x1xf32> to vector<2x5x5xf32>
    %298 = arith.divf %294, %297 : vector<2x5x5xf32>
    %299 = vector.extract_strided_slice %264 {offsets = [0, 0, 8], sizes = [2, 5, 8], strides = [1, 1, 1]} : vector<2x5x32xf32> to vector<2x5x8xf32>
    %cst_122 = arith.constant dense<0.000000e+00> : vector<2x5x8xf32>
    %300 = tpu.matmul %298, %299, %cst_122 {dimension_numbers = #tpu.dot_dimension_numbers<[2], [1], [1], [2], [0, 0, 0, 1, 1, 2], [0], [0]>} : vector<2x5x5xf32>, vector<2x5x8xf32>, vector<2x5x8xf32> -> vector<2x5x8xf32>
    %301 = vector.extract_strided_slice %266 {offsets = [8, 0], sizes = [8, 32], strides = [1, 1]} : vector<32x32xf32> to vector<8x32xf32>
    %302 = vector.shape_cast %301 : vector<8x32xf32> to vector<1x8x32xf32>
    %303 = vector.broadcast %302 : vector<1x8x32xf32> to vector<2x8x32xf32>
    %cst_123 = arith.constant dense<0.000000e+00> : vector<2x5x32xf32>
    %304 = tpu.matmul %300, %303, %cst_123 {dimension_numbers = #tpu.dot_dimension_numbers<[2], [1], [1], [2], [0, 0, 0, 1, 1, 2], [0], [0]>} : vector<2x5x8xf32>, vector<2x8x32xf32>, vector<2x5x32xf32> -> vector<2x5x32xf32>
    %305 = arith.addf %286, %304 : vector<2x5x32xf32>
    %306 = vector.extract_strided_slice %262 {offsets = [0, 0, 16], sizes = [2, 5, 8], strides = [1, 1, 1]} : vector<2x5x32xf32> to vector<2x5x8xf32>
    %307 = vector.extract_strided_slice %263 {offsets = [0, 0, 16], sizes = [2, 5, 8], strides = [1, 1, 1]} : vector<2x5x32xf32> to vector<2x5x8xf32>
    %cst_124 = arith.constant dense<0.000000e+00> : vector<2x5x5xf32>
    %308 = tpu.matmul %306, %307, %cst_124 {dimension_numbers = #tpu.dot_dimension_numbers<[2], [2], [1], [1], [0, 0, 0, 1, 1, 1], [0], [0]>} : vector<2x5x8xf32>, vector<2x5x8xf32>, vector<2x5x5xf32> -> vector<2x5x5xf32>
    %cst_125 = arith.constant dense<0xFF800000> : vector<2x5xf32>
    %309 = vector.multi_reduction <maximumf>, %308, %cst_125 [2] : vector<2x5x5xf32> to vector<2x5xf32>
    %310 = vector.shape_cast %309 : vector<2x5xf32> to vector<2x5x1xf32>
    %311 = vector.broadcast %310 : vector<2x5x1xf32> to vector<2x5x5xf32>
    %312 = arith.subf %308, %311 : vector<2x5x5xf32>
    %313 = math.exp %312 : vector<2x5x5xf32>
    %cst_126 = arith.constant dense<0.000000e+00> : vector<2x5xf32>
    %314 = vector.multi_reduction <add>, %313, %cst_126 [2] : vector<2x5x5xf32> to vector<2x5xf32>
    %315 = vector.shape_cast %314 : vector<2x5xf32> to vector<2x5x1xf32>
    %316 = vector.broadcast %315 : vector<2x5x1xf32> to vector<2x5x5xf32>
    %317 = arith.divf %313, %316 : vector<2x5x5xf32>
    %318 = vector.extract_strided_slice %264 {offsets = [0, 0, 16], sizes = [2, 5, 8], strides = [1, 1, 1]} : vector<2x5x32xf32> to vector<2x5x8xf32>
    %cst_127 = arith.constant dense<0.000000e+00> : vector<2x5x8xf32>
    %319 = tpu.matmul %317, %318, %cst_127 {dimension_numbers = #tpu.dot_dimension_numbers<[2], [1], [1], [2], [0, 0, 0, 1, 1, 2], [0], [0]>} : vector<2x5x5xf32>, vector<2x5x8xf32>, vector<2x5x8xf32> -> vector<2x5x8xf32>
    %320 = vector.extract_strided_slice %266 {offsets = [16, 0], sizes = [8, 32], strides = [1, 1]} : vector<32x32xf32> to vector<8x32xf32>
    %321 = vector.shape_cast %320 : vector<8x32xf32> to vector<1x8x32xf32>
    %322 = vector.broadcast %321 : vector<1x8x32xf32> to vector<2x8x32xf32>
    %cst_128 = arith.constant dense<0.000000e+00> : vector<2x5x32xf32>
    %323 = tpu.matmul %319, %322, %cst_128 {dimension_numbers = #tpu.dot_dimension_numbers<[2], [1], [1], [2], [0, 0, 0, 1, 1, 2], [0], [0]>} : vector<2x5x8xf32>, vector<2x8x32xf32>, vector<2x5x32xf32> -> vector<2x5x32xf32>
    %324 = arith.addf %305, %323 : vector<2x5x32xf32>
    %325 = vector.extract_strided_slice %262 {offsets = [0, 0, 24], sizes = [2, 5, 8], strides = [1, 1, 1]} : vector<2x5x32xf32> to vector<2x5x8xf32>
    %326 = vector.extract_strided_slice %263 {offsets = [0, 0, 24], sizes = [2, 5, 8], strides = [1, 1, 1]} : vector<2x5x32xf32> to vector<2x5x8xf32>
    %cst_129 = arith.constant dense<0.000000e+00> : vector<2x5x5xf32>
    %327 = tpu.matmul %325, %326, %cst_129 {dimension_numbers = #tpu.dot_dimension_numbers<[2], [2], [1], [1], [0, 0, 0, 1, 1, 1], [0], [0]>} : vector<2x5x8xf32>, vector<2x5x8xf32>, vector<2x5x5xf32> -> vector<2x5x5xf32>
    %cst_130 = arith.constant dense<0xFF800000> : vector<2x5xf32>
    %328 = vector.multi_reduction <maximumf>, %327, %cst_130 [2] : vector<2x5x5xf32> to vector<2x5xf32>
    %329 = vector.shape_cast %328 : vector<2x5xf32> to vector<2x5x1xf32>
    %330 = vector.broadcast %329 : vector<2x5x1xf32> to vector<2x5x5xf32>
    %331 = arith.subf %327, %330 : vector<2x5x5xf32>
    %332 = math.exp %331 : vector<2x5x5xf32>
    %cst_131 = arith.constant dense<0.000000e+00> : vector<2x5xf32>
    %333 = vector.multi_reduction <add>, %332, %cst_131 [2] : vector<2x5x5xf32> to vector<2x5xf32>
    %334 = vector.shape_cast %333 : vector<2x5xf32> to vector<2x5x1xf32>
    %335 = vector.broadcast %334 : vector<2x5x1xf32> to vector<2x5x5xf32>
    %336 = arith.divf %332, %335 : vector<2x5x5xf32>
    %337 = vector.extract_strided_slice %264 {offsets = [0, 0, 24], sizes = [2, 5, 8], strides = [1, 1, 1]} : vector<2x5x32xf32> to vector<2x5x8xf32>
    %cst_132 = arith.constant dense<0.000000e+00> : vector<2x5x8xf32>
    %338 = tpu.matmul %336, %337, %cst_132 {dimension_numbers = #tpu.dot_dimension_numbers<[2], [1], [1], [2], [0, 0, 0, 1, 1, 2], [0], [0]>} : vector<2x5x5xf32>, vector<2x5x8xf32>, vector<2x5x8xf32> -> vector<2x5x8xf32>
    %339 = vector.extract_strided_slice %266 {offsets = [24, 0], sizes = [8, 32], strides = [1, 1]} : vector<32x32xf32> to vector<8x32xf32>
    %340 = vector.shape_cast %339 : vector<8x32xf32> to vector<1x8x32xf32>
    %341 = vector.broadcast %340 : vector<1x8x32xf32> to vector<2x8x32xf32>
    %cst_133 = arith.constant dense<0.000000e+00> : vector<2x5x32xf32>
    %342 = tpu.matmul %338, %341, %cst_133 {dimension_numbers = #tpu.dot_dimension_numbers<[2], [1], [1], [2], [0, 0, 0, 1, 1, 2], [0], [0]>} : vector<2x5x8xf32>, vector<2x8x32xf32>, vector<2x5x32xf32> -> vector<2x5x32xf32>
    %343 = arith.addf %324, %342 : vector<2x5x32xf32>
    %344 = arith.addf %223, %343 : vector<2x5x32xf32>
    %c1_134 = arith.constant 1 : index
    %c0_135 = arith.constant 0 : index
    %c0_136 = arith.constant 0 : index
    %345 = vector.load %arg9[%c1_134, %c0_135, %c0_136] : memref<2x1x32xf32, #tpu.memory_space<vmem>>, vector<1x1x32xf32>
    %346 = vector.shape_cast %345 : vector<1x1x32xf32> to vector<1x32xf32>
    %347 = vector.shape_cast %346 : vector<1x32xf32> to vector<1x1x32xf32>
    %348 = vector.broadcast %347 : vector<1x1x32xf32> to vector<2x5x32xf32>
    %349 = arith.addf %344, %348 : vector<2x5x32xf32>
    %c1_137 = arith.constant 1 : index
    %c0_138 = arith.constant 0 : index
    %c0_139 = arith.constant 0 : index
    %350 = vector.load %arg10[%c1_137, %c0_138, %c0_139] : memref<2x1x32xf32, #tpu.memory_space<vmem>>, vector<1x1x32xf32>
    %351 = vector.shape_cast %350 : vector<1x1x32xf32> to vector<1x32xf32>
    %c1_140 = arith.constant 1 : index
    %c0_141 = arith.constant 0 : index
    %c0_142 = arith.constant 0 : index
    %352 = vector.load %arg11[%c1_140, %c0_141, %c0_142] : memref<2x1x32xf32, #tpu.memory_space<vmem>>, vector<1x1x32xf32>
    %353 = vector.shape_cast %352 : vector<1x1x32xf32> to vector<1x32xf32>
    %cst_143 = arith.constant dense<0.000000e+00> : vector<2x5xf32>
    %354 = vector.multi_reduction <add>, %349, %cst_143 [2] : vector<2x5x32xf32> to vector<2x5xf32>
    %355 = vector.shape_cast %354 : vector<2x5xf32> to vector<2x5x1xf32>
    %cst_144 = arith.constant 3.200000e+01 : f32
    %356 = vector.broadcast %cst_144 : f32 to vector<2x5x1xf32>
    %357 = arith.divf %355, %356 : vector<2x5x1xf32>
    %358 = vector.broadcast %357 : vector<2x5x1xf32> to vector<2x5x32xf32>
    %359 = arith.subf %349, %358 : vector<2x5x32xf32>
    %360 = arith.mulf %359, %359 : vector<2x5x32xf32>
    %cst_145 = arith.constant dense<0.000000e+00> : vector<2x5xf32>
    %361 = vector.multi_reduction <add>, %360, %cst_145 [2] : vector<2x5x32xf32> to vector<2x5xf32>
    %362 = vector.shape_cast %361 : vector<2x5xf32> to vector<2x5x1xf32>
    %cst_146 = arith.constant 3.200000e+01 : f32
    %363 = vector.broadcast %cst_146 : f32 to vector<2x5x1xf32>
    %364 = arith.divf %362, %363 : vector<2x5x1xf32>
    %365 = vector.broadcast %357 : vector<2x5x1xf32> to vector<2x5x32xf32>
    %366 = arith.subf %349, %365 : vector<2x5x32xf32>
    %cst_147 = arith.constant 9.99999997E-7 : f32
    %367 = vector.broadcast %cst_147 : f32 to vector<2x5x1xf32>
    %368 = arith.addf %364, %367 : vector<2x5x1xf32>
    %369 = math.rsqrt %368 : vector<2x5x1xf32>
    %370 = vector.broadcast %369 : vector<2x5x1xf32> to vector<2x5x32xf32>
    %371 = arith.mulf %366, %370 : vector<2x5x32xf32>
    %372 = vector.shape_cast %351 : vector<1x32xf32> to vector<1x1x32xf32>
    %373 = vector.broadcast %372 : vector<1x1x32xf32> to vector<2x5x32xf32>
    %374 = arith.mulf %371, %373 : vector<2x5x32xf32>
    %375 = vector.shape_cast %353 : vector<1x32xf32> to vector<1x1x32xf32>
    %376 = vector.broadcast %375 : vector<1x1x32xf32> to vector<2x5x32xf32>
    %377 = arith.addf %374, %376 : vector<2x5x32xf32>
    %c1_148 = arith.constant 1 : index
    %c0_149 = arith.constant 0 : index
    %c0_150 = arith.constant 0 : index
    %378 = vector.load %arg12[%c1_148, %c0_149, %c0_150] : memref<2x32x64xf32, #tpu.memory_space<vmem>>, vector<1x32x64xf32>
    %379 = vector.shape_cast %378 : vector<1x32x64xf32> to vector<32x64xf32>
    %380 = vector.shape_cast %379 : vector<32x64xf32> to vector<1x32x64xf32>
    %381 = vector.broadcast %380 : vector<1x32x64xf32> to vector<2x32x64xf32>
    %cst_151 = arith.constant dense<0.000000e+00> : vector<2x5x64xf32>
    %382 = tpu.matmul %377, %381, %cst_151 {dimension_numbers = #tpu.dot_dimension_numbers<[2], [1], [1], [2], [0, 0, 0, 1, 1, 2], [0], [0]>} : vector<2x5x32xf32>, vector<2x32x64xf32>, vector<2x5x64xf32> -> vector<2x5x64xf32>
    %c1_152 = arith.constant 1 : index
    %c0_153 = arith.constant 0 : index
    %c0_154 = arith.constant 0 : index
    %383 = vector.load %arg13[%c1_152, %c0_153, %c0_154] : memref<2x1x64xf32, #tpu.memory_space<vmem>>, vector<1x1x64xf32>
    %384 = vector.shape_cast %383 : vector<1x1x64xf32> to vector<1x64xf32>
    %385 = vector.shape_cast %384 : vector<1x64xf32> to vector<1x1x64xf32>
    %386 = vector.broadcast %385 : vector<1x1x64xf32> to vector<2x5x64xf32>
    %387 = arith.addf %382, %386 : vector<2x5x64xf32>
    %cst_155 = arith.constant 5.000000e-01 : f32
    %388 = vector.broadcast %cst_155 : f32 to vector<2x5x64xf32>
    %389 = arith.mulf %388, %387 : vector<2x5x64xf32>
    %cst_156 = arith.constant 0.707106769 : f32
    %390 = vector.broadcast %cst_156 : f32 to vector<2x5x64xf32>
    %391 = arith.mulf %387, %390 : vector<2x5x64xf32>
    %cst_157 = arith.constant 0.000000e+00 : f32
    %392 = vector.broadcast %cst_157 : f32 to vector<2x5x64xf32>
    %393 = arith.cmpf oge, %391, %392 : vector<2x5x64xf32>
    %cst_158 = arith.constant 1.000000e+00 : f32
    %cst_159 = arith.constant -1.000000e+00 : f32
    %394 = vector.broadcast %cst_158 : f32 to vector<2x5x64xf32>
    %395 = vector.broadcast %cst_159 : f32 to vector<2x5x64xf32>
    %396 = arith.select %393, %394, %395 : vector<2x5x64xi1>, vector<2x5x64xf32>
    %397 = arith.mulf %391, %396 : vector<2x5x64xf32>
    %cst_160 = arith.constant 0.327591091 : f32
    %398 = vector.broadcast %cst_160 : f32 to vector<2x5x64xf32>
    %399 = arith.mulf %398, %397 : vector<2x5x64xf32>
    %cst_161 = arith.constant 1.000000e+00 : f32
    %400 = vector.broadcast %cst_161 : f32 to vector<2x5x64xf32>
    %401 = arith.addf %400, %399 : vector<2x5x64xf32>
    %cst_162 = arith.constant 1.000000e+00 : f32
    %402 = vector.broadcast %cst_162 : f32 to vector<2x5x64xf32>
    %403 = arith.divf %402, %401 : vector<2x5x64xf32>
    %cst_163 = arith.constant 1.06140542 : f32
    %404 = vector.broadcast %cst_163 : f32 to vector<2x5x64xf32>
    %405 = arith.mulf %404, %403 : vector<2x5x64xf32>
    %cst_164 = arith.constant -1.45315206 : f32
    %406 = vector.broadcast %cst_164 : f32 to vector<2x5x64xf32>
    %407 = arith.addf %405, %406 : vector<2x5x64xf32>
    %408 = arith.mulf %407, %403 : vector<2x5x64xf32>
    %cst_165 = arith.constant 1.42141378 : f32
    %409 = vector.broadcast %cst_165 : f32 to vector<2x5x64xf32>
    %410 = arith.addf %408, %409 : vector<2x5x64xf32>
    %411 = arith.mulf %410, %403 : vector<2x5x64xf32>
    %cst_166 = arith.constant -0.284496725 : f32
    %412 = vector.broadcast %cst_166 : f32 to vector<2x5x64xf32>
    %413 = arith.addf %411, %412 : vector<2x5x64xf32>
    %414 = arith.mulf %413, %403 : vector<2x5x64xf32>
    %cst_167 = arith.constant 0.254829586 : f32
    %415 = vector.broadcast %cst_167 : f32 to vector<2x5x64xf32>
    %416 = arith.addf %414, %415 : vector<2x5x64xf32>
    %417 = arith.mulf %416, %403 : vector<2x5x64xf32>
    %418 = arith.mulf %397, %397 : vector<2x5x64xf32>
    %cst_168 = arith.constant 0.000000e+00 : f32
    %419 = vector.broadcast %cst_168 : f32 to vector<2x5x64xf32>
    %420 = arith.subf %419, %418 : vector<2x5x64xf32>
    %421 = math.exp %420 : vector<2x5x64xf32>
    %422 = arith.mulf %417, %421 : vector<2x5x64xf32>
    %cst_169 = arith.constant 1.000000e+00 : f32
    %423 = vector.broadcast %cst_169 : f32 to vector<2x5x64xf32>
    %424 = arith.subf %423, %422 : vector<2x5x64xf32>
    %425 = arith.mulf %396, %424 : vector<2x5x64xf32>
    %cst_170 = arith.constant 1.000000e+00 : f32
    %426 = vector.broadcast %cst_170 : f32 to vector<2x5x64xf32>
    %427 = arith.addf %426, %425 : vector<2x5x64xf32>
    %428 = arith.mulf %389, %427 : vector<2x5x64xf32>
    %c1_171 = arith.constant 1 : index
    %c0_172 = arith.constant 0 : index
    %c0_173 = arith.constant 0 : index
    %429 = vector.load %arg14[%c1_171, %c0_172, %c0_173] : memref<2x64x32xf32, #tpu.memory_space<vmem>>, vector<1x64x32xf32>
    %430 = vector.shape_cast %429 : vector<1x64x32xf32> to vector<64x32xf32>
    %431 = vector.shape_cast %430 : vector<64x32xf32> to vector<1x64x32xf32>
    %432 = vector.broadcast %431 : vector<1x64x32xf32> to vector<2x64x32xf32>
    %cst_174 = arith.constant dense<0.000000e+00> : vector<2x5x32xf32>
    %433 = tpu.matmul %428, %432, %cst_174 {dimension_numbers = #tpu.dot_dimension_numbers<[2], [1], [1], [2], [0, 0, 0, 1, 1, 2], [0], [0]>} : vector<2x5x64xf32>, vector<2x64x32xf32>, vector<2x5x32xf32> -> vector<2x5x32xf32>
    %434 = arith.addf %349, %433 : vector<2x5x32xf32>
    %c1_175 = arith.constant 1 : index
    %c0_176 = arith.constant 0 : index
    %c0_177 = arith.constant 0 : index
    %435 = vector.load %arg15[%c1_175, %c0_176, %c0_177] : memref<2x1x32xf32, #tpu.memory_space<vmem>>, vector<1x1x32xf32>
    %436 = vector.shape_cast %435 : vector<1x1x32xf32> to vector<1x32xf32>
    %437 = vector.shape_cast %436 : vector<1x32xf32> to vector<1x1x32xf32>
    %438 = vector.broadcast %437 : vector<1x1x32xf32> to vector<2x5x32xf32>
    %439 = arith.addf %434, %438 : vector<2x5x32xf32>
    %440 = vector.extract_strided_slice %439 {offsets = [0, 0, 0], sizes = [2, 1, 32], strides = [1, 1, 1]} : vector<2x5x32xf32> to vector<2x1x32xf32>
    %c0_178 = arith.constant 0 : index
    %c0_179 = arith.constant 0 : index
    %441 = vector.load %arg16[%c0_178, %c0_179] : memref<1x32xf32, #tpu.memory_space<vmem>>, vector<1x32xf32>
    %c0_180 = arith.constant 0 : index
    %c0_181 = arith.constant 0 : index
    %442 = vector.load %arg17[%c0_180, %c0_181] : memref<1x32xf32, #tpu.memory_space<vmem>>, vector<1x32xf32>
    %cst_182 = arith.constant dense<0.000000e+00> : vector<2x1xf32>
    %443 = vector.multi_reduction <add>, %440, %cst_182 [2] : vector<2x1x32xf32> to vector<2x1xf32>
    %444 = vector.shape_cast %443 : vector<2x1xf32> to vector<2x1x1xf32>
    %cst_183 = arith.constant 3.200000e+01 : f32
    %445 = vector.broadcast %cst_183 : f32 to vector<2x1x1xf32>
    %446 = arith.divf %444, %445 : vector<2x1x1xf32>
    %447 = vector.broadcast %446 : vector<2x1x1xf32> to vector<2x1x32xf32>
    %448 = arith.subf %440, %447 : vector<2x1x32xf32>
    %449 = arith.mulf %448, %448 : vector<2x1x32xf32>
    %cst_184 = arith.constant dense<0.000000e+00> : vector<2x1xf32>
    %450 = vector.multi_reduction <add>, %449, %cst_184 [2] : vector<2x1x32xf32> to vector<2x1xf32>
    %451 = vector.shape_cast %450 : vector<2x1xf32> to vector<2x1x1xf32>
    %cst_185 = arith.constant 3.200000e+01 : f32
    %452 = vector.broadcast %cst_185 : f32 to vector<2x1x1xf32>
    %453 = arith.divf %451, %452 : vector<2x1x1xf32>
    %454 = vector.broadcast %446 : vector<2x1x1xf32> to vector<2x1x32xf32>
    %455 = arith.subf %440, %454 : vector<2x1x32xf32>
    %cst_186 = arith.constant 9.99999997E-7 : f32
    %456 = vector.broadcast %cst_186 : f32 to vector<2x1x1xf32>
    %457 = arith.addf %453, %456 : vector<2x1x1xf32>
    %458 = math.rsqrt %457 : vector<2x1x1xf32>
    %459 = vector.broadcast %458 : vector<2x1x1xf32> to vector<2x1x32xf32>
    %460 = arith.mulf %455, %459 : vector<2x1x32xf32>
    %461 = vector.shape_cast %441 : vector<1x32xf32> to vector<1x1x32xf32>
    %462 = vector.broadcast %461 : vector<1x1x32xf32> to vector<2x1x32xf32>
    %463 = arith.mulf %460, %462 : vector<2x1x32xf32>
    %464 = vector.shape_cast %442 : vector<1x32xf32> to vector<1x1x32xf32>
    %465 = vector.broadcast %464 : vector<1x1x32xf32> to vector<2x1x32xf32>
    %466 = arith.addf %463, %465 : vector<2x1x32xf32>
    %c0_187 = arith.constant 0 : index
    %c0_188 = arith.constant 0 : index
    %467 = vector.load %arg18[%c0_187, %c0_188] : memref<32x3xf32, #tpu.memory_space<vmem>>, vector<32x3xf32>
    %468 = vector.shape_cast %467 : vector<32x3xf32> to vector<1x32x3xf32>
    %469 = vector.broadcast %468 : vector<1x32x3xf32> to vector<2x32x3xf32>
    %cst_189 = arith.constant dense<0.000000e+00> : vector<2x1x3xf32>
    %470 = tpu.matmul %466, %469, %cst_189 {dimension_numbers = #tpu.dot_dimension_numbers<[2], [1], [1], [2], [0, 0, 0, 1, 1, 2], [0], [0]>} : vector<2x1x32xf32>, vector<2x32x3xf32>, vector<2x1x3xf32> -> vector<2x1x3xf32>
    %c0_190 = arith.constant 0 : index
    %c0_191 = arith.constant 0 : index
    %471 = vector.load %arg19[%c0_190, %c0_191] : memref<1x3xf32, #tpu.memory_space<vmem>>, vector<1x3xf32>
    %472 = vector.shape_cast %471 : vector<1x3xf32> to vector<1x1x3xf32>
    %473 = vector.broadcast %472 : vector<1x1x3xf32> to vector<2x1x3xf32>
    %474 = arith.addf %470, %473 : vector<2x1x3xf32>
    %c0_192 = arith.constant 0 : index
    %c0_193 = arith.constant 0 : index
    %c0_194 = arith.constant 0 : index
    %475 = vector.load %arg20[%c0_192, %c0_193, %c0_194] : memref<2x1x3xf32, #tpu.memory_space<vmem>>, vector<2x1x3xf32>
    tpu.vector_store %arg20[%c0_192, %c0_193, %c0_194], %474 {strides = array<i32>} : memref<2x1x3xf32, #tpu.memory_space<vmem>>, vector<2x1x3xf32>,
    return
  }
  func.func @transform_0(%arg0: i32) -> (i32, i32, i32) {
    %c0_i32 = arith.constant 0 : i32
    %c0_i32_0 = arith.constant 0 : i32
    %c0_i32_1 = arith.constant 0 : i32
    %c0_i32_2 = arith.constant 0 : i32
    return %c0_i32, %c0_i32_0, %c0_i32_1 : i32, i32, i32
  }
  func.func @transform_1(%arg0: i32) -> (i32, i32) {
    %c0_i32 = arith.constant 0 : i32
    %c0_i32_0 = arith.constant 0 : i32
    %c0_i32_1 = arith.constant 0 : i32
    return %c0_i32, %c0_i32_0 : i32, i32
  }
  func.func @transform_2(%arg0: i32) -> (i32, i32, i32) {
    %c0_i32 = arith.constant 0 : i32
    %c0_i32_0 = arith.constant 0 : i32
    %c0_i32_1 = arith.constant 0 : i32
    %c0_i32_2 = arith.constant 0 : i32
    return %c0_i32, %c0_i32_0, %c0_i32_1 : i32, i32, i32
  }
  func.func @transform_3(%arg0: i32) -> (i32, i32, i32) {
    %c0_i32 = arith.constant 0 : i32
    %c0_i32_0 = arith.constant 0 : i32
    %c0_i32_1 = arith.constant 0 : i32
    %c0_i32_2 = arith.constant 0 : i32
    return %c0_i32, %c0_i32_0, %c0_i32_1 : i32, i32, i32
  }
  func.func @transform_4(%arg0: i32) -> (i32, i32, i32) {
    %c0_i32 = arith.constant 0 : i32
    %c0_i32_0 = arith.constant 0 : i32
    %c0_i32_1 = arith.constant 0 : i32
    %c0_i32_2 = arith.constant 0 : i32
    return %c0_i32, %c0_i32_0, %c0_i32_1 : i32, i32, i32
  }
  func.func @transform_5(%arg0: i32) -> (i32, i32, i32) {
    %c0_i32 = arith.constant 0 : i32
    %c0_i32_0 = arith.constant 0 : i32
    %c0_i32_1 = arith.constant 0 : i32
    %c0_i32_2 = arith.constant 0 : i32
    return %c0_i32, %c0_i32_0, %c0_i32_1 : i32, i32, i32
  }
  func.func @transform_6(%arg0: i32) -> (i32, i32, i32) {
    %c0_i32 = arith.constant 0 : i32
    %c0_i32_0 = arith.constant 0 : i32
    %c0_i32_1 = arith.constant 0 : i32
    %c0_i32_2 = arith.constant 0 : i32
    return %c0_i32, %c0_i32_0, %c0_i32_1 : i32, i32, i32
  }
  func.func @transform_7(%arg0: i32) -> (i32, i32, i32) {
    %c0_i32 = arith.constant 0 : i32
    %c0_i32_0 = arith.constant 0 : i32
    %c0_i32_1 = arith.constant 0 : i32
    %c0_i32_2 = arith.constant 0 : i32
    return %c0_i32, %c0_i32_0, %c0_i32_1 : i32, i32, i32
  }
  func.func @transform_8(%arg0: i32) -> (i32, i32, i32) {
    %c0_i32 = arith.constant 0 : i32
    %c0_i32_0 = arith.constant 0 : i32
    %c0_i32_1 = arith.constant 0 : i32
    %c0_i32_2 = arith.constant 0 : i32
    return %c0_i32, %c0_i32_0, %c0_i32_1 : i32, i32, i32
  }
  func.func @transform_9(%arg0: i32) -> (i32, i32, i32) {
    %c0_i32 = arith.constant 0 : i32
    %c0_i32_0 = arith.constant 0 : i32
    %c0_i32_1 = arith.constant 0 : i32
    %c0_i32_2 = arith.constant 0 : i32
    return %c0_i32, %c0_i32_0, %c0_i32_1 : i32, i32, i32
  }
  func.func @transform_10(%arg0: i32) -> (i32, i32, i32) {
    %c0_i32 = arith.constant 0 : i32
    %c0_i32_0 = arith.constant 0 : i32
    %c0_i32_1 = arith.constant 0 : i32
    %c0_i32_2 = arith.constant 0 : i32
    return %c0_i32, %c0_i32_0, %c0_i32_1 : i32, i32, i32
  }
  func.func @transform_11(%arg0: i32) -> (i32, i32, i32) {
    %c0_i32 = arith.constant 0 : i32
    %c0_i32_0 = arith.constant 0 : i32
    %c0_i32_1 = arith.constant 0 : i32
    %c0_i32_2 = arith.constant 0 : i32
    return %c0_i32, %c0_i32_0, %c0_i32_1 : i32, i32, i32
  }
  func.func @transform_12(%arg0: i32) -> (i32, i32, i32) {
    %c0_i32 = arith.constant 0 : i32
    %c0_i32_0 = arith.constant 0 : i32
    %c0_i32_1 = arith.constant 0 : i32
    %c0_i32_2 = arith.constant 0 : i32
    return %c0_i32, %c0_i32_0, %c0_i32_1 : i32, i32, i32
  }
  func.func @transform_13(%arg0: i32) -> (i32, i32, i32) {
    %c0_i32 = arith.constant 0 : i32
    %c0_i32_0 = arith.constant 0 : i32
    %c0_i32_1 = arith.constant 0 : i32
    %c0_i32_2 = arith.constant 0 : i32
    return %c0_i32, %c0_i32_0, %c0_i32_1 : i32, i32, i32
  }
  func.func @transform_14(%arg0: i32) -> (i32, i32, i32) {
    %c0_i32 = arith.constant 0 : i32
    %c0_i32_0 = arith.constant 0 : i32
    %c0_i32_1 = arith.constant 0 : i32
    %c0_i32_2 = arith.constant 0 : i32
    return %c0_i32, %c0_i32_0, %c0_i32_1 : i32, i32, i32
  }
  func.func @transform_15(%arg0: i32) -> (i32, i32) {
    %c0_i32 = arith.constant 0 : i32
    %c0_i32_0 = arith.constant 0 : i32
    %c0_i32_1 = arith.constant 0 : i32
    return %c0_i32, %c0_i32_0 : i32, i32
  }
  func.func @transform_16(%arg0: i32) -> (i32, i32) {
    %c0_i32 = arith.constant 0 : i32
    %c0_i32_0 = arith.constant 0 : i32
    %c0_i32_1 = arith.constant 0 : i32
    return %c0_i32, %c0_i32_0 : i32, i32
  }
  func.func @transform_17(%arg0: i32) -> (i32, i32) {
    %c0_i32 = arith.constant 0 : i32
    %c0_i32_0 = arith.constant 0 : i32
    %c0_i32_1 = arith.constant 0 : i32
    return %c0_i32, %c0_i32_0 : i32, i32
  }
  func.func @transform_18(%arg0: i32) -> (i32, i32) {
    %c0_i32 = arith.constant 0 : i32
    %c0_i32_0 = arith.constant 0 : i32
    %c0_i32_1 = arith.constant 0 : i32
    return %c0_i32, %c0_i32_0 : i32, i32
  }
  func.func @transform_19(%arg0: i32) -> (i32, i32, i32) {
    %c0_i32 = arith.constant 0 : i32
    %c0_i32_0 = arith.constant 0 : i32
    %c0_i32_1 = arith.constant 0 : i32
    %c0_i32_2 = arith.constant 0 : i32
    return %c0_i32, %c0_i32_0, %c0_i32_1 : i32, i32, i32
  }
}

</mosaic_0001>

<bundles_post_ra>
// kernel: vit1d_forward.1
= control target key start
LH: loop header
LB: loop body
LE: loop exit
PB: predicated region body
PF: predicated region fallthrough
CT: control target
= control target key end

     0   :  { %s7430_s0 = inlined_call_operand.vmem [shape: f32[2,5,16], index: 0, kind: input, shape index: {}]   ;;  %s7431_s1 = inlined_call_operand.vmem [shape: f32[16,32], index: 1, kind: input, shape index: {}]   ;;  %s7432_s2 = inlined_call_operand.vmem [shape: f32[1,5,32], index: 2, kind: input, shape index: {}]   ;;  %s7433_s3 = inlined_call_operand.vmem [shape: f32[2,1,32], index: 3, kind: input, shape index: {}]   ;;  %s7434_s4 = inlined_call_operand.vmem [shape: f32[2,1,32], index: 4, kind: input, shape index: {}]   ;;  %s7435_s5 = inlined_call_operand.vmem [shape: f32[2,32,96], index: 5, kind: input, shape index: {}]   ;;  %s7436_s6 = inlined_call_operand.vmem [shape: f32[2,1,96], index: 6, kind: input, shape index: {}]   ;;  %s7437_s7 = inlined_call_operand.vmem [shape: f32[2,32,32], index: 7, kind: input, shape index: {}]   ;;  %s7438_s8 = inlined_call_operand.vmem [shape: f32[2,1,32], index: 8, kind: input, shape index: {}]   ;;  %s7439_s9 = inlined_call_operand.vmem [shape: f32[2,1,32], index: 9, kind: input, shape index: {}]   ;;  %s7440_s10 = inlined_call_operand.vmem [shape: f32[2,1,32], index: 10, kind: input, shape index: {}]   ;;  %s7441_s11 = inlined_call_operand.vmem [shape: f32[2,32,64], index: 11, kind: input, shape index: {}]   ;;  %s7442_s12 = inlined_call_operand.vmem [shape: f32[2,1,64], index: 12, kind: input, shape index: {}]   ;;  %s7443_s13 = inlined_call_operand.vmem [shape: f32[2,64,32], index: 13, kind: input, shape index: {}]   ;;  %s7444_s14 = inlined_call_operand.vmem [shape: f32[2,1,32], index: 14, kind: input, shape index: {}]   ;;  %s7445_s15 = inlined_call_operand.vmem [shape: f32[1,32], index: 15, kind: input, shape index: {}]   ;;  %s7446_s16 = inlined_call_operand.vmem [shape: f32[1,32], index: 16, kind: input, shape index: {}]   ;;  %s7447_s17 = inlined_call_operand.vmem [shape: f32[32,3], index: 17, kind: input, shape index: {}]   ;;  %s7448_s18 = inlined_call_operand.vmem [shape: f32[1,3], index: 18, kind: input, shape index: {}]   ;;  %s7449_s19 = inlined_call_operand.hbm [shape: f32[2,1,3], index: 19, kind: output, shape index: {}]  }
   0x1   :  { %7463 = sst [smem:[#allocation5_spill]] %s7430_s0 }
   0x2   :  { %7464 = sst [smem:[#allocation6_spill]] %s7431_s1 }
   0x3   :  { %7465 = sst [smem:[#allocation7_spill]] %s7432_s2 }
   0x4   :  { %7466 = sst [smem:[#allocation8_spill]] %s7433_s3 }
   0x5   :  { %s7467_s20 = sld [smem:[#allocation6_spill]]  ;;  %v6562_v2 = vmov 0.0|0.0   ;;  %vm6563_vm0 = vmmov 0   ;;  %v6564_v4 = vmov 0.0  }
   0x6   :  { %6306 = vmatprep.subr.bf16.mxu0 %v6562_v2  ;;  %5870 = vmatprep.mubr.msk.f32.mxu0 %vm6563_vm0, %v6564_v4 }
   0x7   :  { %6309 = vmatprep.subr.bf16.mxu1 %v6562_v2  ;;  %5877 = vmatprep.mubr.msk.f32.mxu1 %vm6563_vm0, %v6564_v4 }
   0xb   :  { %v65_v0 = vld [vmem:[%s7467_s20] sm:$0xff]  ;;  %v66_v1 = vld [vmem:[%s7467_s20 + $0x8] sm:$0xff] }
   0xc   :  { %v6307_v3 = vpack.c.bf16 %v66_v1, %v65_v0 }
   0xd   :  { %24 = vsyncpa [#allocation3], 0  ;;  %s7468_s23 = sld [smem:[#allocation5_spill]]  ;;  %vm68_vm1 = vcmask 130048   ;;  %s7469_s27 = sld [smem:[#allocation7_spill]]  ;;  %vm217_vm2 = vcmask 258048  }
   0xe   :  { %6308 = vmatpush3.bf16.msra.mxu0 %v6307_v3  ;;  %6311 = vmatpush3.bf16.msra.mxu1 %v6307_v3  ;;  %v261_v26 = vld [vmem:[%s7435_s5] sm:$0xff]  ;;  %v262_v27 = vld [vmem:[%s7435_s5 + $0x8] sm:$0xff]  ;;  %v263_v29 = vld [vmem:[%s7435_s5 + $0x10] sm:$0xff]  ;;  %s7470_s24 = sld [smem:[#allocation8_spill]]  ;;  %vm272_vm3 = vcmask 261120   ;;  %s6565_s28 = smov 96  }
   0xf   :  { %6312 = vmatprep.subr.bf16.mxu0 %v6562_v2  ;;  %6318 = vmatprep.subr.bf16.mxu1 %v6562_v2  ;;  %v6313_v28 = vpack.c.bf16 %v262_v27, %v261_v26  ;;  %v264_v30 = vld [vmem:[%s7435_s5 + $0x18] sm:$0xff]  ;;  %v5541_v41 = vld [vmem:[%s7434_s4] ss:$0 sm:$0xff]  ;;  %vm426_vm4 = vcmask 64512   ;;  %vm578_vm5 = vcmask 36864   ;;  %s6566_s29 = smov 64  }
  0x10   :  { %v6316_v31 = vpack.c.bf16 %v264_v30, %v263_v29  ;;  %v5542_v48 = vld [vmem:[%s7436_s6] ss:$0 sm:$0xff]  ;;  %s6567_s0 = smov 88   ;;  %vm607_vm6 = vcmask 1044480   ;;  %s6568_s30 = smov 120   ;;  %vm603_vm7 = vcmask 39936  }
  0x11   :  { %s6569_s20 = smov 56   ;;  %s6570_s21 = smov 80   ;;  %vm2615_vm10 = vcmask 523264   ;;  %vm5337_vm13 = vcmask 253952   ;;  %vm5519_vm14 = vcmask 16384  }
  0x12   :  { %s7461_s1 = smov 112   ;;  %s7459_s3 = smov 48  }
  0x13   :  { %v63_v5 = vld [vmem:[%s7468_s23] sm:$0x1f]  ;;  %v64_v6 = vld [vmem:[%s7468_s23 + $0x8] sm:$0x1f]  ;;  %s7457_s26 = smov 72   ;;  %s7453_s23 = smov 40  }
  0x14   :  { %5871 = vmatmul.mubr.msk.f32.vlgmr.msra.gmra.mrb[0].mxu0 %vm68_vm1, %v63_v5  ;;  %5878 = vmatmul.mubr.msk.f32.vlgmr.msra.gmra.mrb[0].mxu1 %vm68_vm1, %v64_v6  ;;  %v67_v7 = vld [vmem:[%s7469_s27] sm:$0x1f]  ;;  %s7455_s27 = smov 104   ;;  %s7475_s2 = smov 40  }
  0x15   :  { %5888 = vmatprep.mubr.msk.f32.mxu0 %vm6563_vm0, %v6564_v4  ;;  %5899 = vmatprep.mubr.msk.f32.mxu1 %vm6563_vm0, %v6564_v4  ;;  %v5540_v39 = vld [vmem:[%s7470_s24] ss:$0 sm:$0xff] }
  0x16   :  { %6314 = vmatpush3.bf16.msra.mxu0 %v6313_v28  ;;  %6320 = vmatpush3.bf16.msra.mxu1 %v6313_v28 }
  0x17   :  { %6315 = vmatprep.subr.bf16.mxu0 %v6562_v2  ;;  %6321 = vmatprep.subr.bf16.mxu1 %v6562_v2 }
  0x1a   :  { %6317 = vmatpush3.bf16.msra.mxu0 %v6316_v31  ;;  %6323 = vmatpush3.bf16.msra.mxu1 %v6316_v31 }
  0x1b   :  { %5902 = vmatprep.subr.mxu0 %v6564_v4  ;;  %5907 = vmatprep.subr.mxu1 %v6564_v4 }
  0xe7   :  { %v138_v8 = vpop.f32.mrb[0].mxu0  ;;  %v211_v9 = vpop.f32.mrb[0].mxu1 }
  0xe8   :  { %v6707_v10 = vadd.f32 %v138_v8, %v67_v7  ;;  %v5872_v11 = vpop.f32.mrb[1].mxu0  ;;  %v6709_v12 = vadd.f32 %v211_v9, %v67_v7  ;;  %v5879_v13 = vpop.f32.mrb[1].mxu1 }
  0xea   :  { %v218_v14 = vsel %vm217_vm2, %v6707_v10, 0.0  ;;  %v221_v15 = vsel %vm217_vm2, %v6709_v12, 0.0 }
  0xeb   :  { %219 = vadd.xlane.f32.xlu0 %v218_v14 }
  0xef   :  { %222 = vadd.xlane.f32.xlu0 %v221_v15 }
 0x178   :  { %v220_v16 = vpop.xlane.xlu0 %219 }
 0x179   :  { %v225_v17 = vmul.f32 0.03125, %v220_v16 }
 0x17b   :  { %v227_v18 = vsub.f32 %v6707_v10, %v225_v17 }
 0x17c   :  { %v223_v19 = vpop.xlane.xlu0 %222 }
 0x17d   :  { %v226_v20 = vmul.f32 0.03125, %v223_v19  ;;  %v229_v21 = vmul.f32 %v227_v18, %v227_v18 }
 0x17f   :  { %v228_v22 = vsub.f32 %v6709_v12, %v226_v20  ;;  %v231_v23 = vsel %vm217_vm2, %v229_v21, 0.0 }
 0x180   :  { %232 = vadd.xlane.f32.xlu1 %v231_v23 }
 0x181   :  { %v230_v24 = vmul.f32 %v228_v22, %v228_v22 }
 0x183   :  { %v234_v25 = vsel %vm217_vm2, %v230_v24, 0.0 }
 0x184   :  { %235 = vadd.xlane.f32.xlu1 %v234_v25 }
 0x20d   :  { %v233_v32 = vpop.xlane.xlu1 %232 }
 0x20e   :  { %v237_v33 = vmul.f32 0.03125, %v233_v32 }
 0x210   :  { %v239_v34 = vadd.f32 1e-06, %v237_v33 }
 0x211   :  { %v236_v35 = vpop.xlane.xlu1 %235 }
 0x212   :  { %6438 = vrsqrt.f32 %v239_v34  ;;  %v238_v36 = vmul.f32 0.03125, %v236_v35 }
 0x214   :  { %v240_v37 = vadd.f32 1e-06, %v238_v36 }
 0x216   :  { %6440 = vrsqrt.f32 %v240_v37 }
 0x21c   :  { %v6439_v38 = vpop.eup %6438 }
 0x21d   :  { %v243_v40 = vmul.f32 %v6439_v38, %v227_v18 }
 0x21f   :  { %v251_v42 = vmul.f32 %v5540_v39, %v243_v40 }
 0x220   :  { %v6441_v43 = vpop.eup %6440 }
 0x221   :  { %v244_v44 = vmul.f32 %v6441_v43, %v228_v22  ;;  %v259_v45 = vadd.f32 %v5541_v41, %v251_v42 }
 0x223   :  { %5889 = vmatmul.mubr.msk.f32.vlgmr.msra.gmra.mrb[2].mxu0 %vm272_vm3, %v259_v45  ;;  %v252_v46 = vmul.f32 %v5540_v39, %v244_v44 }
 0x224   :  { %5904 = vmatprep.mubr.msk.f32.mxu0 %vm6563_vm0, %v6564_v4 }
 0x225   :  { %v260_v47 = vadd.f32 %v5541_v41, %v252_v46 }
 0x227   :  { %5900 = vmatmul.mubr.msk.f32.vlgmr.msra.gmra.mrb[2].mxu1 %vm272_vm3, %v260_v47 }
 0x228   :  { %5909 = vmatprep.mubr.msk.f32.mxu1 %vm6563_vm0, %v6564_v4 }
 0x2f6   :  { %v342_v49 = vpop.f32.mrb[2].mxu0 }
 0x2f7   :  { %v6750_v50 = vadd.f32 %v5542_v48, %v342_v49  ;;  %v5890_v51 = vpop.f32.mrb[3].mxu0 }
 0x2f9   :  { %424 = vrot.lane.b32.xlu0 %v6750_v50, %s6565_s28 }
 0x2fa   :  { %v415_v52 = vpop.f32.mrb[2].mxu1 }
 0x2fb   :  { %v6754_v53 = vadd.f32 %v5542_v48, %v415_v52  ;;  %v5901_v54 = vpop.f32.mrb[3].mxu1  ;;  %v420_v52 = vld [vmem:[%s7437_s7 + $0x8] sm:$0xff] }
 0x2fd   :  { %502 = vrot.lane.b32.xlu1 %v6754_v53, %s6565_s28 }
 0x36b   :  { %v425_v55 = vpop.permute.xlu0 %424 }
 0x36c   :  { %5903 = vmatpush3.xpose.msk.msra.mxu0 %vm426_vm4, %v425_v55 }
 0x36d   :  { %5912 = vmatprep.subr.mxu0 %v6564_v4 }
 0x36f   :  { %v503_v56 = vpop.permute.xlu1 %502  ;;  %5905 = vmatmul.mubr.msk.f32.vlgmr.msra.gmra.mrb[4].mxu0 %vm426_vm4, %v6750_v50 }
 0x370   :  { %5908 = vmatpush3.xpose.msk.msra.mxu1 %vm426_vm4, %v503_v56  ;;  %5914 = vmatprep.mubr.msk.f32.mxu0 %vm6563_vm0, %v6564_v4  ;;  %v419_v56 = vld [vmem:[%s7437_s7] sm:$0xff] }
 0x371   :  { %5917 = vmatprep.subr.mxu1 %v6564_v4 }
 0x373   :  { %5910 = vmatmul.mubr.msk.f32.vlgmr.msra.gmra.mrb[4].mxu1 %vm426_vm4, %v6754_v53 }
 0x374   :  { %5919 = vmatprep.mubr.msk.f32.mxu1 %vm6563_vm0, %v6564_v4 }
 0x442   :  { %v497_v57 = vpop.f32.mrb[4].mxu0 }
 0x443   :  { %v5906_v58 = vpop.f32.mrb[5].mxu0  ;;  %v579_v59 = vsel %vm578_vm5, %v497_v57, -inf }
 0x444   :  { %580 = vmax.xlane.f32.xlu1 %v579_v59 }
 0x446   :  { %v574_v60 = vpop.f32.mrb[4].mxu1 }
 0x447   :  { %v5911_v61 = vpop.f32.mrb[5].mxu1  ;;  %v582_v62 = vsel %vm578_vm5, %v574_v60, -inf }
 0x448   :  { %583 = vmax.xlane.f32.xlu0 %v582_v62 }
 0x455   :  { %680 = vrot.lane.b32.xlu1 %v6754_v53, %s6566_s29 }
 0x459   :  { %759 = vrot.lane.b32.xlu1 %v6750_v50, %s6567_s0 }
 0x45d   :  { %837 = vrot.lane.b32.xlu1 %v6754_v53, %s6567_s0 }
 0x45e   :  { %601 = vrot.lane.b32.xlu0 %v6750_v50, %s6566_s29 }
 0x4d1   :  { %v581_v63 = vpop.xlane.xlu1 %580 }
 0x4d2   :  { %v585_v0 = vsub.f32 %v497_v57, %v581_v63 }
 0x4d4   :  { %v587_v1 = vmul.f32 1.442695, %v585_v0 }
 0x4d5   :  { %v584_v3 = vpop.xlane.xlu0 %583  ;;  %v681_v5 = vpop.permute.xlu1 %680 }
 0x4d6   :  { %6442 = vpow2.f32 %v587_v1  ;;  %v586_v6 = vsub.f32 %v574_v60, %v584_v3  ;;  %5918 = vmatpush3.msk.msra.mxu1 %vm607_vm6, %v681_v5 }
 0x4d7   :  { %5927 = vmatprep.subr.mxu1 %v6564_v4 }
 0x4d8   :  { %v589_v7 = vmul.f32 1.442695, %v586_v6 }
 0x4d9   :  { %v602_v8 = vpop.permute.xlu0 %601  ;;  %v760_v15 = vpop.permute.xlu1 %759 }
 0x4da   :  { %6444 = vpow2.f32 %v589_v7  ;;  %5913 = vmatpush3.msk.msra.mxu0 %vm607_vm6, %v602_v8 }
 0x4db   :  { %5922 = vmatprep.subr.mxu0 %v6564_v4 }
 0x4dd   :  { %v838_v16 = vpop.permute.xlu1 %837 }
 0x4e0   :  { %v6443_v9 = vpop.eup %6442 }
 0x4e1   :  { %v591_v11 = vsel %vm578_vm5, %v6443_v9, 0.0 }
 0x4e2   :  { %592 = vadd.xlane.f32.xlu0 %v591_v11 }
 0x4e4   :  { %v6445_v13 = vpop.eup %6444 }
 0x4e5   :  { %v594_v14 = vsel %vm578_vm5, %v6445_v13, 0.0 }
 0x4e6   :  { %595 = vadd.xlane.f32.xlu1 %v594_v14 }
 0x4f7   :  { %835 = vrot.lane.b32.xlu1 %v6754_v53, %s6568_s30 }
 0x4f8   :  { %757 = vrot.lane.b32.xlu0 %v6750_v50, %s6568_s30 }
 0x56f   :  { %v593_v17 = vpop.xlane.xlu0 %592 }
 0x570   :  { %6446 = vrcp.f32 %v593_v17 }
 0x573   :  { %v596_v18 = vpop.xlane.xlu1 %595  ;;  %v758_v23 = vpop.permute.xlu0 %757 }
 0x574   :  { %6448 = vrcp.f32 %v596_v18 }
 0x577   :  { %v836_v24 = vpop.permute.xlu1 %835 }
 0x57a   :  { %v6447_v19 = vpop.eup %6446 }
 0x57b   :  { %v598_v20 = vmul.f32 %v6447_v19, %v6443_v9 }
 0x57d   :  { %5915 = vmatmul.mubr.msk.f32.vlgmr.msra.gmra.mrb[6].mxu0 %vm603_vm7, %v598_v20 }
 0x57e   :  { %v6449_v21 = vpop.eup %6448  ;;  %5923 = vmatpush3.xpose.msk.msra.mxu0 %vm426_vm4, %v760_v15  ;;  %5924 = vmatprep.mubr.msk.f32.mxu0 %vm6563_vm0, %v6564_v4 }
 0x57f   :  { %v600_v22 = vmul.f32 %v6449_v21, %v6445_v13  ;;  %5932 = vmatprep.subr.mxu0 %v6564_v4 }
 0x581   :  { %5920 = vmatmul.mubr.msk.f32.vlgmr.msra.gmra.mrb[6].mxu1 %vm603_vm7, %v600_v22  ;;  %5925 = vmatmul.mubr.msk.f32.vlgmr.msra.gmra.mrb[8].mxu0 %vm426_vm4, %v758_v23 }
 0x582   :  { %5928 = vmatpush3.xpose.msk.msra.mxu1 %vm426_vm4, %v838_v16  ;;  %5929 = vmatprep.mubr.msk.f32.mxu1 %vm6563_vm0, %v6564_v4 }
 0x583   :  { %5937 = vmatprep.subr.mxu1 %v6564_v4  ;;  %5934 = vmatprep.mubr.msk.f32.mxu0 %vm6563_vm0, %v6564_v4 }
 0x585   :  { %5930 = vmatmul.mubr.msk.f32.vlgmr.msra.gmra.mrb[8].mxu1 %vm426_vm4, %v836_v24 }
 0x586   :  { %5939 = vmatprep.mubr.msk.f32.mxu1 %vm6563_vm0, %v6564_v4 }
 0x650   :  { %v6806_v25 = vpop.f32.mrb[6].mxu0 }
 0x651   :  { %v5916_v26 = vpop.f32.mrb[7].mxu0 }
 0x654   :  { %v6808_v27 = vpop.f32.mrb[6].mxu1  ;;  %v831_v28 = vpop.f32.mrb[8].mxu0 }
 0x655   :  { %v5921_v29 = vpop.f32.mrb[7].mxu1  ;;  %v5926_v30 = vpop.f32.mrb[9].mxu0  ;;  %v913_v31 = vsel %vm578_vm5, %v831_v28, -inf }
 0x656   :  { %914 = vmax.xlane.f32.xlu0 %v913_v31 }
 0x658   :  { %v909_v32 = vpop.f32.mrb[8].mxu1 }
 0x659   :  { %v5931_v33 = vpop.f32.mrb[9].mxu1  ;;  %v916_v34 = vsel %vm578_vm5, %v909_v32, -inf }
 0x65a   :  { %917 = vmax.xlane.f32.xlu1 %v916_v34 }
 0x66b   :  { %1012 = vrot.lane.b32.xlu1 %v6754_v53, %s6569_s20 }
 0x66f   :  { %1383 = vrot.lane.b32.xlu1 %v6750_v50, %s6570_s21 }
 0x673   :  { %1461 = vrot.lane.b32.xlu1 %v6754_v53, %s6570_s21 }
 0x677   :  { %1459 = vrot.lane.b32.xlu1 %v6754_v53, %s7461_s1 }
 0x6e3   :  { %v915_v35 = vpop.xlane.xlu0 %914 }
 0x6e4   :  { %v919_v36 = vsub.f32 %v831_v28, %v915_v35 }
 0x6e6   :  { %v921_v37 = vmul.f32 1.442695, %v919_v36 }
 0x6e7   :  { %v918_v38 = vpop.xlane.xlu1 %917 }
 0x6e8   :  { %6450 = vpow2.f32 %v921_v37  ;;  %v920_v39 = vsub.f32 %v909_v32, %v918_v38  ;;  %v421_v37 = vld [vmem:[%s7437_s7 + $0x10] sm:$0xff] }
 0x6ea   :  { %v923_v40 = vmul.f32 1.442695, %v920_v39 }
 0x6eb   :  { %v1013_v41 = vpop.permute.xlu1 %1012 }
 0x6ec   :  { %6452 = vpow2.f32 %v923_v40  ;;  %5938 = vmatpush3.msk.msra.mxu1 %vm607_vm6, %v1013_v41 }
 0x6ed   :  { %5947 = vmatprep.subr.mxu1 %v6564_v4 }
 0x6ef   :  { %v1384_v59 = vpop.permute.xlu1 %1383 }
 0x6f2   :  { %v6451_v42 = vpop.eup %6450 }
 0x6f3   :  { %v925_v43 = vsel %vm578_vm5, %v6451_v42, 0.0  ;;  %v1462_v62 = vpop.permute.xlu1 %1461 }
 0x6f4   :  { %926 = vadd.xlane.f32.xlu0 %v925_v43 }
 0x6f6   :  { %v6453_v44 = vpop.eup %6452 }
 0x6f7   :  { %v928_v45 = vsel %vm578_vm5, %v6453_v44, 0.0  ;;  %v1460_v0 = vpop.permute.xlu1 %1459 }
 0x6f8   :  { %929 = vadd.xlane.f32.xlu0 %v928_v45 }
 0x70e   :  { %935 = vrot.lane.b32.xlu0 %v6750_v50, %s6569_s20 }
 0x712   :  { %1381 = vrot.lane.b32.xlu0 %v6750_v50, %s7461_s1 }
 0x781   :  { %v927_v46 = vpop.xlane.xlu0 %926 }
 0x782   :  { %6454 = vrcp.f32 %v927_v46 }
 0x785   :  { %v930_v47 = vpop.xlane.xlu0 %929 }
 0x786   :  { %6456 = vrcp.f32 %v930_v47 }
 0x789   :  { %v936_v48 = vpop.permute.xlu0 %935 }
 0x78a   :  { %5933 = vmatpush3.msk.msra.mxu0 %vm607_vm6, %v936_v48 }
 0x78b   :  { %5942 = vmatprep.subr.mxu0 %v6564_v4 }
 0x78c   :  { %v6455_v49 = vpop.eup %6454 }
 0x78d   :  { %v932_v51 = vmul.f32 %v6455_v49, %v6451_v42  ;;  %v1382_v63 = vpop.permute.xlu0 %1381 }
 0x78f   :  { %5935 = vmatmul.mubr.msk.f32.vlgmr.msra.gmra.mrb[10].mxu0 %vm603_vm7, %v932_v51 }
 0x790   :  { %v6457_v54 = vpop.eup %6456  ;;  %5943 = vmatpush3.msra.mxu0 %v420_v52  ;;  %5944 = vmatprep.mubr.msk.f32.mxu0 %vm6563_vm0, %v6564_v4 }
 0x791   :  { %v934_v55 = vmul.f32 %v6457_v54, %v6453_v44  ;;  %5952 = vmatprep.subr.mxu0 %v6564_v4 }
 0x793   :  { %5940 = vmatmul.mubr.msk.f32.vlgmr.msra.gmra.mrb[10].mxu1 %vm603_vm7, %v934_v55 }
 0x794   :  { %5948 = vmatpush3.msra.mxu1 %v420_v52  ;;  %5949 = vmatprep.mubr.msk.f32.mxu1 %vm6563_vm0, %v6564_v4 }
 0x795   :  { %5957 = vmatprep.subr.mxu1 %v6564_v4 }
 0x862   :  { %v1008_v57 = vpop.f32.mrb[10].mxu0 }
 0x863   :  { %v5936_v58 = vpop.f32.mrb[11].mxu0  ;;  %5945 = vmatmul.mubr.msk.f32.vlgmr.msra.gmra.mrb[12].mxu0 %vm426_vm4, %v1008_v57 }
 0x864   :  { %5953 = vmatpush3.msra.mxu0 %v419_v56  ;;  %5954 = vmatprep.mubr.msk.f32.mxu0 %vm6563_vm0, %v6564_v4 }
 0x865   :  { %5962 = vmatprep.subr.mxu0 %v6564_v4 }
 0x866   :  { %v1085_v60 = vpop.f32.mrb[10].mxu1 }
 0x867   :  { %v5941_v61 = vpop.f32.mrb[11].mxu1  ;;  %5950 = vmatmul.mubr.msk.f32.vlgmr.msra.gmra.mrb[12].mxu1 %vm426_vm4, %v1085_v60  ;;  %5955 = vmatmul.mubr.msk.f32.vlgmr.msra.gmra.mrb[14].mxu0 %vm426_vm4, %v6806_v25 }
 0x868   :  { %5958 = vmatpush3.msra.mxu1 %v419_v56  ;;  %5959 = vmatprep.mubr.msk.f32.mxu1 %vm6563_vm0, %v6564_v4 }
 0x869   :  { %5964 = vmatprep.mubr.msk.f32.mxu0 %vm6563_vm0, %v6564_v4  ;;  %5967 = vmatprep.subr.mxu1 %v6564_v4 }
 0x86b   :  { %5963 = vmatpush3.xpose.msk.msra.mxu0 %vm426_vm4, %v1384_v59  ;;  %5960 = vmatmul.mubr.msk.f32.vlgmr.msra.gmra.mrb[14].mxu1 %vm426_vm4, %v6808_v27 }
 0x86c   :  { %5969 = vmatprep.mubr.msk.f32.mxu1 %vm6563_vm0, %v6564_v4  ;;  %5972 = vmatprep.subr.mxu0 %v6564_v4 }
 0x86e   :  { %5965 = vmatmul.mubr.msk.f32.vlgmr.msra.gmra.mrb[16].mxu0 %vm426_vm4, %v1382_v63 }
 0x86f   :  { %5968 = vmatpush3.xpose.msk.msra.mxu1 %vm426_vm4, %v1462_v62  ;;  %5974 = vmatprep.mubr.msk.f32.mxu0 %vm6563_vm0, %v6564_v4 }
 0x870   :  { %5977 = vmatprep.subr.mxu1 %v6564_v4 }
 0x872   :  { %5970 = vmatmul.mubr.msk.f32.vlgmr.msra.gmra.mrb[16].mxu1 %vm426_vm4, %v1460_v0 }
 0x873   :  { %5979 = vmatprep.mubr.msk.f32.mxu1 %vm6563_vm0, %v6564_v4 }
 0x936   :  { %v1158_v1 = vpop.f32.mrb[12].mxu0 }
 0x937   :  { %v5946_v3 = vpop.f32.mrb[13].mxu0 }
 0x93a   :  { %v1231_v5 = vpop.f32.mrb[12].mxu1  ;;  %v1304_v6 = vpop.f32.mrb[14].mxu0 }
 0x93b   :  { %v6870_v7 = vadd.f32 %v1304_v6, %v1158_v1  ;;  %v5951_v8 = vpop.f32.mrb[13].mxu1  ;;  %v5956_v9 = vpop.f32.mrb[15].mxu0 }
 0x93e   :  { %v1377_v11 = vpop.f32.mrb[14].mxu1 }
 0x93f   :  { %v6872_v13 = vadd.f32 %v1377_v11, %v1231_v5  ;;  %v5961_v14 = vpop.f32.mrb[15].mxu1 }
 0x941   :  { %v1455_v15 = vpop.f32.mrb[16].mxu0 }
 0x942   :  { %v5966_v16 = vpop.f32.mrb[17].mxu0  ;;  %v1537_v17 = vsel %vm578_vm5, %v1455_v15, -inf }
 0x943   :  { %1538 = vmax.xlane.f32.xlu0 %v1537_v17  ;;  %v422_v17 = vld [vmem:[%s7437_s7 + $0x18] sm:$0xff] }
 0x945   :  { %v1533_v18 = vpop.f32.mrb[16].mxu1 }
 0x946   :  { %v5971_v19 = vpop.f32.mrb[17].mxu1  ;;  %v1540_v20 = vsel %vm578_vm5, %v1533_v18, -inf }
 0x947   :  { %1541 = vmax.xlane.f32.xlu1 %v1540_v20 }
 0x958   :  { %1636 = vrot.lane.b32.xlu1 %v6754_v53, %s7459_s3 }
 0x95c   :  { %1863 = vrot.lane.b32.xlu1 %v6750_v50, %s7457_s26 }
 0x960   :  { %1941 = vrot.lane.b32.xlu1 %v6754_v53, %s7457_s26 }
 0x964   :  { %1939 = vrot.lane.b32.xlu1 %v6754_v53, %s7455_s27 }
 0x9d0   :  { %v1539_v21 = vpop.xlane.xlu0 %1538 }
 0x9d1   :  { %v1543_v22 = vsub.f32 %v1455_v15, %v1539_v21 }
 0x9d3   :  { %v1545_v23 = vmul.f32 1.442695, %v1543_v22 }
 0x9d4   :  { %v1542_v24 = vpop.xlane.xlu1 %1541 }
 0x9d5   :  { %6458 = vpow2.f32 %v1545_v23  ;;  %v1544_v25 = vsub.f32 %v1533_v18, %v1542_v24 }
 0x9d7   :  { %v1547_v26 = vmul.f32 1.442695, %v1544_v25 }
 0x9d8   :  { %v1637_v27 = vpop.permute.xlu1 %1636 }
 0x9d9   :  { %6460 = vpow2.f32 %v1547_v26  ;;  %5978 = vmatpush3.msk.msra.mxu1 %vm607_vm6, %v1637_v27  ;;  %v5585_v26 = vld [vmem:[%s7438_s8] ss:$0 sm:$0xff] }
 0x9da   :  { %5987 = vmatprep.subr.mxu1 %v6564_v4 }
 0x9dc   :  { %v1864_v40 = vpop.permute.xlu1 %1863 }
 0x9df   :  { %v6459_v28 = vpop.eup %6458 }
 0x9e0   :  { %v1549_v29 = vsel %vm578_vm5, %v6459_v28, 0.0  ;;  %v1942_v43 = vpop.permute.xlu1 %1941 }
 0x9e1   :  { %1550 = vadd.xlane.f32.xlu0 %v1549_v29 }
 0x9e3   :  { %v6461_v30 = vpop.eup %6460 }
 0x9e4   :  { %v1552_v31 = vsel %vm578_vm5, %v6461_v30, 0.0  ;;  %v1940_v47 = vpop.permute.xlu1 %1939 }
 0x9e5   :  { %1553 = vadd.xlane.f32.xlu0 %v1552_v31 }
 0x9fb   :  { %1559 = vrot.lane.b32.xlu0 %v6750_v50, %s7459_s3 }
 0x9ff   :  { %1861 = vrot.lane.b32.xlu0 %v6750_v50, %s7455_s27 }
 0xa6e   :  { %v1551_v32 = vpop.xlane.xlu0 %1550 }
 0xa6f   :  { %6462 = vrcp.f32 %v1551_v32 }
 0xa72   :  { %v1554_v33 = vpop.xlane.xlu0 %1553 }
 0xa73   :  { %6464 = vrcp.f32 %v1554_v33 }
 0xa76   :  { %v1560_v34 = vpop.permute.xlu0 %1559 }
 0xa77   :  { %5973 = vmatpush3.msk.msra.mxu0 %vm607_vm6, %v1560_v34 }
 0xa78   :  { %5982 = vmatprep.subr.mxu0 %v6564_v4 }
 0xa79   :  { %v6463_v35 = vpop.eup %6462 }
 0xa7a   :  { %v1556_v36 = vmul.f32 %v6463_v35, %v6459_v28  ;;  %v1862_v44 = vpop.permute.xlu0 %1861 }
 0xa7c   :  { %5975 = vmatmul.mubr.msk.f32.vlgmr.msra.gmra.mrb[18].mxu0 %vm603_vm7, %v1556_v36 }
 0xa7d   :  { %v6465_v38 = vpop.eup %6464  ;;  %5983 = vmatpush3.msra.mxu0 %v421_v37  ;;  %5984 = vmatprep.mubr.msk.f32.mxu0 %vm6563_vm0, %v6564_v4 }
 0xa7e   :  { %v1558_v39 = vmul.f32 %v6465_v38, %v6461_v30  ;;  %5992 = vmatprep.subr.mxu0 %v6564_v4 }
 0xa80   :  { %5980 = vmatmul.mubr.msk.f32.vlgmr.msra.gmra.mrb[18].mxu1 %vm603_vm7, %v1558_v39 }
 0xa81   :  { %5988 = vmatpush3.msra.mxu1 %v421_v37  ;;  %5989 = vmatprep.mubr.msk.f32.mxu1 %vm6563_vm0, %v6564_v4 }
 0xa82   :  { %5997 = vmatprep.subr.mxu1 %v6564_v4 }
 0xb4f   :  { %v1632_v41 = vpop.f32.mrb[18].mxu0 }
 0xb50   :  { %v5976_v42 = vpop.f32.mrb[19].mxu0  ;;  %5985 = vmatmul.mubr.msk.f32.vlgmr.msra.gmra.mrb[20].mxu0 %vm426_vm4, %v1632_v41 }
 0xb51   :  { %5993 = vmatpush3.xpose.msk.msra.mxu0 %vm426_vm4, %v1864_v40  ;;  %5994 = vmatprep.mubr.msk.f32.mxu0 %vm6563_vm0, %v6564_v4 }
 0xb52   :  { %6002 = vmatprep.subr.mxu0 %v6564_v4 }
 0xb53   :  { %v1709_v45 = vpop.f32.mrb[18].mxu1 }
 0xb54   :  { %v5981_v46 = vpop.f32.mrb[19].mxu1  ;;  %5990 = vmatmul.mubr.msk.f32.vlgmr.msra.gmra.mrb[20].mxu1 %vm426_vm4, %v1709_v45  ;;  %5995 = vmatmul.mubr.msk.f32.vlgmr.msra.gmra.mrb[22].mxu0 %vm426_vm4, %v1862_v44  ;;  %v2396_v44 = vld [vmem:[%s7441_s11] sm:$0xff]  ;;  %v2397_v45 = vld [vmem:[%s7441_s11 + $0x8] sm:$0xff] }
 0xb55   :  { %5998 = vmatpush3.xpose.msk.msra.mxu1 %vm426_vm4, %v1942_v43  ;;  %5999 = vmatprep.mubr.msk.f32.mxu1 %vm6563_vm0, %v6564_v4  ;;  %v6325_v46 = vpack.c.bf16 %v2397_v45, %v2396_v44 }
 0xb56   :  { %6007 = vmatprep.subr.mxu1 %v6564_v4  ;;  %6004 = vmatprep.mubr.msk.f32.mxu0 %vm6563_vm0, %v6564_v4 }
 0xb58   :  { %6000 = vmatmul.mubr.msk.f32.vlgmr.msra.gmra.mrb[22].mxu1 %vm426_vm4, %v1940_v47  ;;  %v2398_v47 = vld [vmem:[%s7441_s11 + $0x10] sm:$0xff] }
 0xb59   :  { %6009 = vmatprep.mubr.msk.f32.mxu1 %vm6563_vm0, %v6564_v4 }
 0xc23   :  { %v1782_v48 = vpop.f32.mrb[20].mxu0 }
 0xc24   :  { %v1859_v49 = vadd.f32 %v1782_v48, %v6870_v7  ;;  %v5986_v51 = vpop.f32.mrb[21].mxu0  ;;  %v2399_v48 = vld [vmem:[%s7441_s11 + $0x18] sm:$0xff] }
 0xc27   :  { %v1855_v52 = vpop.f32.mrb[20].mxu1  ;;  %v1935_v54 = vpop.f32.mrb[22].mxu0 }
 0xc28   :  { %v6923_v55 = vadd.f32 %v1855_v52, %v6872_v13  ;;  %v5991_v56 = vpop.f32.mrb[21].mxu1  ;;  %v5996_v57 = vpop.f32.mrb[23].mxu0  ;;  %v2017_v58 = vsel %vm578_vm5, %v1935_v54, -inf }
 0xc29   :  { %2018 = vmax.xlane.f32.xlu0 %v2017_v58 }
 0xc2b   :  { %v2013_v59 = vpop.f32.mrb[22].mxu1 }
 0xc2c   :  { %v6001_v60 = vpop.f32.mrb[23].mxu1  ;;  %v2020_v61 = vsel %vm578_vm5, %v2013_v59, -inf }
 0xc2d   :  { %2021 = vmax.xlane.f32.xlu1 %v2020_v61  ;;  %v5587_v61 = vld [vmem:[%s7440_s10] ss:$0 sm:$0xff] }
 0xc3e   :  { %2116 = vrot.lane.b32.xlu1 %v6754_v53, %s7453_s23 }
 0xcb6   :  { %v2019_v62 = vpop.xlane.xlu0 %2018 }
 0xcb7   :  { %v2023_v63 = vsub.f32 %v1935_v54, %v2019_v62 }
 0xcb9   :  { %v2025_v0 = vmul.f32 1.442695, %v2023_v63 }
 0xcba   :  { %v2022_v1 = vpop.xlane.xlu1 %2021 }
 0xcbb   :  { %6466 = vpow2.f32 %v2025_v0  ;;  %v2024_v3 = vsub.f32 %v2013_v59, %v2022_v1  ;;  %v5586_v59 = vld [vmem:[%s7439_s9] ss:$0 sm:$0xff] }
 0xcbd   :  { %v2027_v5 = vmul.f32 1.442695, %v2024_v3 }
 0xcbe   :  { %v2117_v6 = vpop.permute.xlu1 %2116 }
 0xcbf   :  { %6468 = vpow2.f32 %v2027_v5  ;;  %6008 = vmatpush3.msk.msra.mxu1 %vm607_vm6, %v2117_v6  ;;  %v2607_v6 = vld [vmem:[%s7443_s13] sm:$0xff] }
 0xcc0   :  { %6017 = vmatprep.subr.mxu1 %v6564_v4 }
 0xcc5   :  { %v6467_v7 = vpop.eup %6466 }
 0xcc6   :  { %v2029_v8 = vsel %vm578_vm5, %v6467_v7, 0.0 }
 0xcc7   :  { %2030 = vadd.xlane.f32.xlu0 %v2029_v8 }
 0xcc9   :  { %v6469_v9 = vpop.eup %6468 }
 0xcca   :  { %v2032_v53 = vsel %vm578_vm5, %v6469_v9, 0.0 }
 0xccb   :  { %2033 = vadd.xlane.f32.xlu0 %v2032_v53  ;;  %v2610_v53 = vld [vmem:[%s7443_s13 + $0x18] sm:$0xff] }
 0xce1   :  { %2039 = vrot.lane.b32.xlu0 %v6750_v50, %s7453_s23 }
 0xd54   :  { %v2031_v11 = vpop.xlane.xlu0 %2030 }
 0xd55   :  { %6470 = vrcp.f32 %v2031_v11 }
 0xd58   :  { %v2034_v13 = vpop.xlane.xlu0 %2033 }
 0xd59   :  { %6472 = vrcp.f32 %v2034_v13  ;;  %v2611_v13 = vld [vmem:[%s7443_s13 + $0x20] sm:$0xff] }
 0xd5c   :  { %v2040_v14 = vpop.permute.xlu0 %2039 }
 0xd5d   :  { %6003 = vmatpush3.msk.msra.mxu0 %vm607_vm6, %v2040_v14  ;;  %v2612_v14 = vld [vmem:[%s7443_s13 + $0x28] sm:$0xff] }
 0xd5e   :  { %6012 = vmatprep.subr.mxu0 %v6564_v4 }
 0xd5f   :  { %v6471_v15 = vpop.eup %6470 }
 0xd60   :  { %v2036_v16 = vmul.f32 %v6471_v15, %v6467_v7  ;;  %v2608_v7 = vld [vmem:[%s7443_s13 + $0x8] sm:$0xff]  ;;  %v6343_v15 = vpack.c.bf16 %v2612_v14, %v2611_v13 }
 0xd61   :  { %v6337_v8 = vpack.c.bf16 %v2608_v7, %v2607_v6 }
 0xd62   :  { %6005 = vmatmul.mubr.msk.f32.vlgmr.msra.gmra.mrb[24].mxu0 %vm603_vm7, %v2036_v16  ;;  %v2613_v16 = vld [vmem:[%s7443_s13 + $0x30] sm:$0xff] }
 0xd63   :  { %v6473_v18 = vpop.eup %6472  ;;  %6013 = vmatpush3.msra.mxu0 %v422_v17  ;;  %6014 = vmatprep.mubr.msk.f32.mxu0 %vm6563_vm0, %v6564_v4 }
 0xd64   :  { %v2038_v50 = vmul.f32 %v6473_v18, %v6469_v9  ;;  %6324 = vmatprep.subr.bf16.mxu0 %v6562_v2  ;;  %v2609_v9 = vld [vmem:[%s7443_s13 + $0x10] sm:$0xff] }
 0xd65   :  { %v6340_v11 = vpack.c.bf16 %v2610_v53, %v2609_v9 }
 0xd66   :  { %6010 = vmatmul.mubr.msk.f32.vlgmr.msra.gmra.mrb[24].mxu1 %vm603_vm7, %v2038_v50  ;;  %v5588_v50 = vld [vmem:[%s7442_s12] ss:$0 sm:$0xff] }
 0xd67   :  { %6018 = vmatpush3.msra.mxu1 %v422_v17  ;;  %6019 = vmatprep.mubr.msk.f32.mxu1 %vm6563_vm0, %v6564_v4  ;;  %v2614_v17 = vld [vmem:[%s7443_s13 + $0x38] sm:$0xff] }
 0xd68   :  { %6330 = vmatprep.subr.bf16.mxu1 %v6562_v2  ;;  %v6346_v18 = vpack.c.bf16 %v2614_v17, %v2613_v16 }
 0xe35   :  { %v2112_v19 = vpop.f32.mrb[24].mxu0 }
 0xe36   :  { %v6006_v20 = vpop.f32.mrb[25].mxu0  ;;  %6015 = vmatmul.mubr.msk.f32.vlgmr.msra.gmra.mrb[26].mxu0 %vm426_vm4, %v2112_v19 }
 0xe37   :  { %6030 = vmatprep.mubr.msk.f32.mxu0 %vm6563_vm0, %v6564_v4  ;;  %6326 = vmatpush3.bf16.msra.mxu0 %v6325_v46 }
 0xe38   :  { %6327 = vmatprep.subr.bf16.mxu0 %v6562_v2 }
 0xe39   :  { %v2189_v21 = vpop.f32.mrb[24].mxu1 }
 0xe3a   :  { %v6011_v22 = vpop.f32.mrb[25].mxu1  ;;  %6020 = vmatmul.mubr.msk.f32.vlgmr.msra.gmra.mrb[26].mxu1 %vm426_vm4, %v2189_v21 }
 0xe3b   :  { %6041 = vmatprep.mubr.msk.f32.mxu1 %vm6563_vm0, %v6564_v4  ;;  %6332 = vmatpush3.bf16.msra.mxu1 %v6325_v46 }
 0xe3c   :  { %6333 = vmatprep.subr.bf16.mxu1 %v6562_v2 }
 0xf09   :  { %v2262_v23 = vpop.f32.mrb[26].mxu0 }
 0xf0a   :  { %v2339_v24 = vadd.f32 %v2262_v23, %v1859_v49  ;;  %v6016_v25 = vpop.f32.mrb[27].mxu0  ;;  %v6328_v49 = vpack.c.bf16 %v2399_v48, %v2398_v47 }
 0xf0c   :  { %v2341_v27 = vadd.f32 %v2339_v24, %v6707_v10  ;;  %6329 = vmatpush3.bf16.msra.mxu0 %v6328_v49  ;;  %6335 = vmatpush3.bf16.msra.mxu1 %v6328_v49 }
 0xf0d   :  { %v2335_v28 = vpop.f32.mrb[26].mxu1  ;;  %6336 = vmatprep.subr.bf16.mxu0 %v6562_v2  ;;  %6348 = vmatprep.subr.bf16.mxu1 %v6562_v2 }
 0xf0e   :  { %v6958_v29 = vadd.f32 %v5585_v26, %v2341_v27  ;;  %v2340_v30 = vadd.f32 %v2335_v28, %v6923_v55  ;;  %v6021_v31 = vpop.f32.mrb[27].mxu1 }
 0xf10   :  { %v2342_v32 = vadd.f32 %v2340_v30, %v6709_v12  ;;  %v2354_v33 = vsel %vm217_vm2, %v6958_v29, 0.0 }
 0xf11   :  { %2355 = vadd.xlane.f32.xlu1 %v2354_v33 }
 0xf12   :  { %v6964_v34 = vadd.f32 %v5585_v26, %v2342_v32  ;;  %v6576_v26 = vmov -1.0  }
 0xf14   :  { %v2357_v35 = vsel %vm217_vm2, %v6964_v34, 0.0 }
 0xf15   :  { %2358 = vadd.xlane.f32.xlu0 %v2357_v35 }
 0xf9e   :  { %v2356_v36 = vpop.xlane.xlu1 %2355 }
 0xf9f   :  { %v2360_v10 = vmul.f32 0.03125, %v2356_v36 }
 0xfa1   :  { %v2362_v37 = vsub.f32 %v6958_v29, %v2360_v10 }
 0xfa2   :  { %v2359_v38 = vpop.xlane.xlu0 %2358 }
 0xfa3   :  { %v2361_v39 = vmul.f32 0.03125, %v2359_v38  ;;  %v2364_v40 = vmul.f32 %v2362_v37, %v2362_v37 }
 0xfa5   :  { %v2363_v41 = vsub.f32 %v6964_v34, %v2361_v39  ;;  %v2366_v12 = vsel %vm217_vm2, %v2364_v40, 0.0 }
 0xfa6   :  { %2367 = vadd.xlane.f32.xlu0 %v2366_v12 }
 0xfa7   :  { %v2365_v42 = vmul.f32 %v2363_v41, %v2363_v41 }
 0xfa9   :  { %v2369_v43 = vsel %vm217_vm2, %v2365_v42, 0.0 }
 0xfaa   :  { %2370 = vadd.xlane.f32.xlu1 %v2369_v43 }
0x1033   :  { %v2368_v51 = vpop.xlane.xlu0 %2367 }
0x1034   :  { %v2372_v52 = vmul.f32 0.03125, %v2368_v51 }
0x1036   :  { %v2374_v54 = vadd.f32 1e-06, %v2372_v52 }
0x1037   :  { %v2371_v55 = vpop.xlane.xlu1 %2370 }
0x1038   :  { %6474 = vrsqrt.f32 %v2374_v54  ;;  %v2373_v56 = vmul.f32 0.03125, %v2371_v55 }
0x103a   :  { %v2375_v57 = vadd.f32 1e-06, %v2373_v56 }
0x103c   :  { %6476 = vrsqrt.f32 %v2375_v57 }
0x1042   :  { %v6475_v58 = vpop.eup %6474 }
0x1043   :  { %v2378_v60 = vmul.f32 %v6475_v58, %v2362_v37 }
0x1045   :  { %v2386_v62 = vmul.f32 %v5586_v59, %v2378_v60 }
0x1046   :  { %v6477_v63 = vpop.eup %6476 }
0x1047   :  { %v2379_v0 = vmul.f32 %v6477_v63, %v2363_v41  ;;  %v2394_v1 = vadd.f32 %v5587_v61, %v2386_v62 }
0x1049   :  { %6031 = vmatmul.mubr.msk.f32.vlgmr.msra.gmra.mrb[28].mxu0 %vm272_vm3, %v2394_v1  ;;  %v2387_v3 = vmul.f32 %v5586_v59, %v2379_v0 }
0x104a   :  { %6060 = vmatprep.mubr.msk.f32.mxu0 %vm6563_vm0, %v6564_v4  ;;  %6338 = vmatpush3.bf16.msra.mxu0 %v6337_v8 }
0x104b   :  { %v2395_v5 = vadd.f32 %v5587_v61, %v2387_v3  ;;  %6339 = vmatprep.subr.bf16.mxu0 %v6562_v2 }
0x104d   :  { %6042 = vmatmul.mubr.msk.f32.vlgmr.msra.gmra.mrb[28].mxu1 %vm272_vm3, %v2395_v5 }
0x104e   :  { %6079 = vmatprep.mubr.msk.f32.mxu1 %vm6563_vm0, %v6564_v4  ;;  %6350 = vmatpush3.bf16.msra.mxu1 %v6337_v8 }
0x104f   :  { %6351 = vmatprep.subr.bf16.mxu1 %v6562_v2  ;;  %6341 = vmatpush3.bf16.msra.mxu0 %v6340_v11 }
0x1050   :  { %6342 = vmatprep.subr.bf16.mxu0 %v6562_v2 }
0x1052   :  { %6353 = vmatpush3.bf16.msra.mxu1 %v6340_v11 }
0x1053   :  { %6354 = vmatprep.subr.bf16.mxu1 %v6562_v2  ;;  %6344 = vmatpush3.bf16.msra.mxu0 %v6343_v15 }
0x1054   :  { %6345 = vmatprep.subr.bf16.mxu0 %v6562_v2 }
0x1056   :  { %6356 = vmatpush3.bf16.msra.mxu1 %v6343_v15 }
0x1057   :  { %6357 = vmatprep.subr.bf16.mxu1 %v6562_v2  ;;  %6347 = vmatpush3.bf16.msra.mxu0 %v6346_v18 }
0x1058   :  { %6360 = vmatprep.subr.bf16.mxu0 %v6562_v2 }
0x105a   :  { %6359 = vmatpush3.bf16.msra.mxu1 %v6346_v18  ;;  %v5593_v18 = vld [vmem:[%s7444_s14] ss:$0 sm:$0xff] }
0x105b   :  { %6366 = vmatprep.subr.bf16.mxu1 %v6562_v2 }
0x111c   :  { %v2476_v19 = vpop.f32.mrb[28].mxu0 }
0x111d   :  { %v2477_v20 = vadd.f32 %v5588_v50, %v2476_v19  ;;  %v6032_v21 = vpop.f32.mrb[29].mxu0 }
0x111f   :  { %v2555_v22 = vmul.f32 0.70710677, %v2477_v20  ;;  %v2553_v8 = vmul.f32 0.5, %v2477_v20 }
0x1120   :  { %v2549_v23 = vpop.f32.mrb[28].mxu1 }
0x1121   :  { %vm2557_vm8 = vcmp.ge.f32.partialorder %v2555_v22, 0.0  ;;  %v2550_v24 = vadd.f32 %v5588_v50, %v2549_v23  ;;  %v6043_v25 = vpop.f32.mrb[29].mxu1 }
0x1122   :  { %v2559_v27 = vsel %vm2557_vm8, 1.0, %v6576_v26 }
0x1123   :  { %v2561_v28 = vmul.f32 %v2559_v27, %v2555_v22  ;;  %v2556_v30 = vmul.f32 0.70710677, %v2550_v24  ;;  %v2554_v14 = vmul.f32 0.5, %v2550_v24 }
0x1125   :  { %v2563_v31 = vmul.f32 0.3275911, %v2561_v28  ;;  %vm2558_vm9 = vcmp.ge.f32.partialorder %v2556_v30, 0.0  ;;  %v2589_v37 = vmul.f32 %v2561_v28, %v2561_v28 }
0x1126   :  { %v2560_v32 = vsel %vm2558_vm9, 1.0, %v6576_v26 }
0x1127   :  { %v2565_v33 = vadd.f32 1.0, %v2563_v31  ;;  %v2562_v35 = vmul.f32 %v2560_v32, %v2556_v30  ;;  %v2591_v39 = vsub.f32 0.0, %v2589_v37  ;;  %v5598_v37 = vld [vmem:[%s7435_s5 + $0x20] sm:$0xff] }
0x1129   :  { %6478 = vrcp.f32 %v2565_v33  ;;  %v2564_v36 = vmul.f32 0.3275911, %v2562_v35  ;;  %v2590_v40 = vmul.f32 %v2562_v35, %v2562_v35  ;;  %v2593_v43 = vmul.f32 1.442695, %v2591_v39 }
0x112b   :  { %v2566_v10 = vadd.f32 1.0, %v2564_v36  ;;  %v2592_v44 = vsub.f32 0.0, %v2590_v40  ;;  %v5600_v40 = vld [vmem:[%s7435_s5 + $0x30] sm:$0xff] }
0x112d   :  { %6480 = vrcp.f32 %v2566_v10  ;;  %v2595_v49 = vmul.f32 1.442695, %v2592_v44 }
0x112e   :  { %6482 = vpow2.f32 %v2593_v43 }
0x112f   :  { %6484 = vpow2.f32 %v2595_v49  ;;  %v5596_v49 = vld [vmem:[%s7470_s24 + $0x1] ss:$0 sm:$0xff] }
0x1133   :  { %v6479_v38 = vpop.eup %6478 }
0x1134   :  { %v2571_v41 = vmul.f32 1.0614054, %v6479_v38 }
0x1136   :  { %v2573_v12 = vadd.f32 -1.4531521, %v2571_v41  ;;  %v5601_v41 = vld [vmem:[%s7435_s5 + $0x38] sm:$0xff] }
0x1137   :  { %v6481_v42 = vpop.eup %6480 }
0x1138   :  { %v2575_v45 = vmul.f32 %v6479_v38, %v2573_v12  ;;  %v2572_v46 = vmul.f32 1.0614054, %v6481_v42  ;;  %v6483_v62 = vpop.eup %6482  ;;  %v6364_v12 = vpack.c.bf16 %v5601_v41, %v5600_v40 }
0x1139   :  { %v6485_v5 = vpop.eup %6484 }
0x113a   :  { %v2577_v47 = vadd.f32 1.4214138, %v2575_v45  ;;  %v2574_v48 = vadd.f32 -1.4531521, %v2572_v46 }
0x113c   :  { %v2579_v51 = vmul.f32 %v6479_v38, %v2577_v47  ;;  %v2576_v52 = vmul.f32 %v6481_v42, %v2574_v48 }
0x113e   :  { %v2581_v54 = vadd.f32 -0.28449672, %v2579_v51  ;;  %v2578_v55 = vadd.f32 1.4214138, %v2576_v52  ;;  %v5597_v52 = vld [vmem:[%s7434_s4 + $0x1] ss:$0 sm:$0xff] }
0x113f   :  { %s7471_s4 = smov 112  }
0x1140   :  { %v2583_v56 = vmul.f32 %v6479_v38, %v2581_v54  ;;  %v2580_v57 = vmul.f32 %v6481_v42, %v2578_v55 }
0x1142   :  { %v2585_v58 = vadd.f32 0.2548296, %v2583_v56  ;;  %v2582_v59 = vadd.f32 -0.28449672, %v2580_v57 }
0x1144   :  { %v2587_v60 = vmul.f32 %v6479_v38, %v2585_v58  ;;  %v2584_v61 = vmul.f32 %v6481_v42, %v2582_v59  ;;  %v5599_v38 = vld [vmem:[%s7435_s5 + $0x28] sm:$0xff] }
0x1145   :  { %v6361_v39 = vpack.c.bf16 %v5599_v38, %v5598_v37 }
0x1146   :  { %v2597_v63 = vmul.f32 %v6483_v62, %v2587_v60  ;;  %v2586_v0 = vadd.f32 0.2548296, %v2584_v61  ;;  %v5603_v60 = vld [vmem:[%s7436_s6 + $0x1] ss:$0 sm:$0xff] }
0x1148   :  { %v2599_v1 = vsub.f32 1.0, %v2597_v63  ;;  %v2588_v3 = vmul.f32 %v6481_v42, %v2586_v0 }
0x114a   :  { %v2601_v6 = vmul.f32 %v2599_v1, %v2559_v27  ;;  %v2598_v7 = vmul.f32 %v6485_v5, %v2588_v3 }
0x114c   :  { %v2603_v9 = vadd.f32 1.0, %v2601_v6  ;;  %v2600_v53 = vsub.f32 1.0, %v2598_v7 }
0x114e   :  { %v2605_v11 = vmul.f32 %v2603_v9, %v2553_v8  ;;  %v2602_v13 = vmul.f32 %v2600_v53, %v2560_v32 }
0x1150   :  { %v2604_v15 = vadd.f32 1.0, %v2602_v13  ;;  %6061 = vmatmul.mubr.msk.f32.vlgmr.msra.gmra.mrb[30].mxu0 %vm2615_vm10, %v2605_v11 }
0x1151   :  { %6090 = vmatprep.mubr.msk.f32.mxu0 %vm6563_vm0, %v6564_v4  ;;  %6362 = vmatpush3.bf16.msra.mxu0 %v6361_v39 }
0x1152   :  { %v2606_v16 = vmul.f32 %v2604_v15, %v2554_v14  ;;  %6363 = vmatprep.subr.bf16.mxu0 %v6562_v2 }
0x1154   :  { %6080 = vmatmul.mubr.msk.f32.vlgmr.msra.gmra.mrb[30].mxu1 %vm2615_vm10, %v2606_v16 }
0x1155   :  { %6101 = vmatprep.mubr.msk.f32.mxu1 %vm6563_vm0, %v6564_v4  ;;  %6368 = vmatpush3.bf16.msra.mxu1 %v6361_v39 }
0x1156   :  { %6369 = vmatprep.subr.bf16.mxu1 %v6562_v2  ;;  %6365 = vmatpush3.bf16.msra.mxu0 %v6364_v12 }
0x1157   :  { %6104 = vmatprep.subr.mxu0 %v6564_v4 }
0x1159   :  { %6371 = vmatpush3.bf16.msra.mxu1 %v6364_v12 }
0x115a   :  { %6109 = vmatprep.subr.mxu1 %v6564_v4 }
0x1223   :  { %v2685_v17 = vpop.f32.mrb[30].mxu0 }
0x1224   :  { %v2762_v50 = vadd.f32 %v2685_v17, %v6958_v29  ;;  %v6062_v19 = vpop.f32.mrb[31].mxu0 }
0x1226   :  { %v7047_v20 = vadd.f32 %v5593_v18, %v2762_v50 }
0x1227   :  { %v2758_v21 = vpop.f32.mrb[30].mxu1 }
0x1228   :  { %v2763_v22 = vadd.f32 %v2758_v21, %v6964_v34  ;;  %v6081_v23 = vpop.f32.mrb[31].mxu1  ;;  %v2777_v24 = vsel %vm217_vm2, %v7047_v20, 0.0 }
0x1229   :  { %2778 = vadd.xlane.f32.xlu0 %v2777_v24 }
0x122a   :  { %v7052_v25 = vadd.f32 %v5593_v18, %v2763_v22 }
0x122c   :  { %v2780_v27 = vsel %vm217_vm2, %v7052_v25, 0.0 }
0x122d   :  { %2781 = vadd.xlane.f32.xlu1 %v2780_v27 }
0x12b6   :  { %v2779_v28 = vpop.xlane.xlu0 %2778 }
0x12b7   :  { %v2783_v30 = vmul.f32 0.03125, %v2779_v28 }
0x12b9   :  { %v2785_v29 = vsub.f32 %v7047_v20, %v2783_v30 }
0x12ba   :  { %v2782_v31 = vpop.xlane.xlu1 %2781 }
0x12bb   :  { %v2784_v32 = vmul.f32 0.03125, %v2782_v31  ;;  %v2787_v33 = vmul.f32 %v2785_v29, %v2785_v29 }
0x12bd   :  { %v2786_v34 = vsub.f32 %v7052_v25, %v2784_v32  ;;  %v2789_v35 = vsel %vm217_vm2, %v2787_v33, 0.0 }
0x12be   :  { %2790 = vadd.xlane.f32.xlu0 %v2789_v35 }
0x12bf   :  { %v2788_v36 = vmul.f32 %v2786_v34, %v2786_v34 }
0x12c1   :  { %v2792_v10 = vsel %vm217_vm2, %v2788_v36, 0.0 }
0x12c2   :  { %2793 = vadd.xlane.f32.xlu1 %v2792_v10 }
0x134b   :  { %v2791_v42 = vpop.xlane.xlu0 %2790 }
0x134c   :  { %v2795_v43 = vmul.f32 0.03125, %v2791_v42 }
0x134e   :  { %v2797_v44 = vadd.f32 1e-06, %v2795_v43 }
0x134f   :  { %v2794_v45 = vpop.xlane.xlu1 %2793 }
0x1350   :  { %6486 = vrsqrt.f32 %v2797_v44  ;;  %v2796_v46 = vmul.f32 0.03125, %v2794_v45 }
0x1352   :  { %v2798_v47 = vadd.f32 1e-06, %v2796_v46 }
0x1354   :  { %6488 = vrsqrt.f32 %v2798_v47 }
0x135a   :  { %v6487_v48 = vpop.eup %6486 }
0x135b   :  { %v2801_v51 = vmul.f32 %v6487_v48, %v2785_v29 }
0x135d   :  { %v2809_v54 = vmul.f32 %v5596_v49, %v2801_v51 }
0x135e   :  { %v6489_v55 = vpop.eup %6488 }
0x135f   :  { %v2802_v56 = vmul.f32 %v6489_v55, %v2786_v34  ;;  %v2817_v57 = vadd.f32 %v5597_v52, %v2809_v54 }
0x1361   :  { %6091 = vmatmul.mubr.msk.f32.vlgmr.msra.gmra.mrb[32].mxu0 %vm272_vm3, %v2817_v57  ;;  %v2810_v58 = vmul.f32 %v5596_v49, %v2802_v56 }
0x1362   :  { %6106 = vmatprep.mubr.msk.f32.mxu0 %vm6563_vm0, %v6564_v4 }
0x1363   :  { %v2818_v59 = vadd.f32 %v5597_v52, %v2810_v58 }
0x1365   :  { %6102 = vmatmul.mubr.msk.f32.vlgmr.msra.gmra.mrb[32].mxu1 %vm272_vm3, %v2818_v59 }
0x1366   :  { %6111 = vmatprep.mubr.msk.f32.mxu1 %vm6563_vm0, %v6564_v4 }
0x1434   :  { %v2901_v61 = vpop.f32.mrb[32].mxu0 }
0x1435   :  { %v7091_v62 = vadd.f32 %v5603_v60, %v2901_v61  ;;  %v6092_v63 = vpop.f32.mrb[33].mxu0 }
0x1437   :  { %2984 = vrot.lane.b32.xlu0 %v7091_v62, %s6565_s28 }
0x1438   :  { %v2974_v0 = vpop.f32.mrb[32].mxu1 }
0x1439   :  { %v7095_v1 = vadd.f32 %v5603_v60, %v2974_v0  ;;  %v6103_v3 = vpop.f32.mrb[33].mxu1 }
0x143a   :  { %v5607_v3 = vld [vmem:[%s7437_s7 + $0x28] sm:$0xff] }
0x143b   :  { %3061 = vrot.lane.b32.xlu1 %v7095_v1, %s6565_s28 }
0x14a9   :  { %v2985_v5 = vpop.permute.xlu0 %2984 }
0x14aa   :  { %6105 = vmatpush3.xpose.msk.msra.mxu0 %vm426_vm4, %v2985_v5 }
0x14ab   :  { %6114 = vmatprep.subr.mxu0 %v6564_v4 }
0x14ad   :  { %v3062_v6 = vpop.permute.xlu1 %3061  ;;  %6107 = vmatmul.mubr.msk.f32.vlgmr.msra.gmra.mrb[34].mxu0 %vm426_vm4, %v7091_v62 }
0x14ae   :  { %6110 = vmatpush3.xpose.msk.msra.mxu1 %vm426_vm4, %v3062_v6  ;;  %6116 = vmatprep.mubr.msk.f32.mxu0 %vm6563_vm0, %v6564_v4 }
0x14af   :  { %6119 = vmatprep.subr.mxu1 %v6564_v4 }
0x14b1   :  { %6112 = vmatmul.mubr.msk.f32.vlgmr.msra.gmra.mrb[34].mxu1 %vm426_vm4, %v7095_v1 }
0x14b2   :  { %6121 = vmatprep.mubr.msk.f32.mxu1 %vm6563_vm0, %v6564_v4 }
0x1580   :  { %v3056_v7 = vpop.f32.mrb[34].mxu0 }
0x1581   :  { %v6108_v8 = vpop.f32.mrb[35].mxu0  ;;  %v3137_v9 = vsel %vm578_vm5, %v3056_v7, -inf }
0x1582   :  { %3138 = vmax.xlane.f32.xlu1 %v3137_v9 }
0x1584   :  { %v3133_v53 = vpop.f32.mrb[34].mxu1 }
0x1585   :  { %v6113_v11 = vpop.f32.mrb[35].mxu1  ;;  %v3140_v13 = vsel %vm578_vm5, %v3133_v53, -inf }
0x1586   :  { %3141 = vmax.xlane.f32.xlu0 %v3140_v13 }
0x1593   :  { %3236 = vrot.lane.b32.xlu1 %v7095_v1, %s6566_s29 }
0x1597   :  { %3315 = vrot.lane.b32.xlu1 %v7091_v62, %s6567_s0 }
0x159b   :  { %3393 = vrot.lane.b32.xlu1 %v7095_v1, %s6567_s0 }
0x159c   :  { %3159 = vrot.lane.b32.xlu0 %v7091_v62, %s6566_s29 }
0x160f   :  { %v3139_v14 = vpop.xlane.xlu1 %3138 }
0x1610   :  { %v3143_v15 = vsub.f32 %v3056_v7, %v3139_v14  ;;  %v5606_v7 = vld [vmem:[%s7437_s7 + $0x20] sm:$0xff] }
0x1612   :  { %v3145_v16 = vmul.f32 1.442695, %v3143_v15 }
0x1613   :  { %v3142_v17 = vpop.xlane.xlu0 %3141  ;;  %v3237_v18 = vpop.permute.xlu1 %3236 }
0x1614   :  { %6490 = vpow2.f32 %v3145_v16  ;;  %v3144_v50 = vsub.f32 %v3133_v53, %v3142_v17  ;;  %6120 = vmatpush3.msk.msra.mxu1 %vm607_vm6, %v3237_v18 }
0x1615   :  { %6129 = vmatprep.subr.mxu1 %v6564_v4 }
0x1616   :  { %v3147_v19 = vmul.f32 1.442695, %v3144_v50 }
0x1617   :  { %v3160_v21 = vpop.permute.xlu0 %3159  ;;  %v3316_v28 = vpop.permute.xlu1 %3315 }
0x1618   :  { %6492 = vpow2.f32 %v3147_v19  ;;  %6115 = vmatpush3.msk.msra.mxu0 %vm607_vm6, %v3160_v21 }
0x1619   :  { %6124 = vmatprep.subr.mxu0 %v6564_v4 }
0x161b   :  { %v3394_v30 = vpop.permute.xlu1 %3393 }
0x161e   :  { %v6491_v22 = vpop.eup %6490 }
0x161f   :  { %v3149_v23 = vsel %vm578_vm5, %v6491_v22, 0.0 }
0x1620   :  { %3150 = vadd.xlane.f32.xlu0 %v3149_v23 }
0x1622   :  { %v6493_v24 = vpop.eup %6492 }
0x1623   :  { %v3152_v27 = vsel %vm578_vm5, %v6493_v24, 0.0 }
0x1624   :  { %3153 = vadd.xlane.f32.xlu1 %v3152_v27 }
0x1635   :  { %3391 = vrot.lane.b32.xlu1 %v7095_v1, %s6568_s30 }
0x1636   :  { %3313 = vrot.lane.b32.xlu0 %v7091_v62, %s6568_s30  ;;  %s7472_s30 = smov 48  }
0x16ad   :  { %v3151_v29 = vpop.xlane.xlu0 %3150 }
0x16ae   :  { %6494 = vrcp.f32 %v3151_v29 }
0x16b1   :  { %v3154_v31 = vpop.xlane.xlu1 %3153  ;;  %v3314_v36 = vpop.permute.xlu0 %3313 }
0x16b2   :  { %6496 = vrcp.f32 %v3154_v31 }
0x16b5   :  { %v3392_v10 = vpop.permute.xlu1 %3391 }
0x16b8   :  { %v6495_v32 = vpop.eup %6494 }
0x16b9   :  { %v3156_v33 = vmul.f32 %v6495_v32, %v6491_v22 }
0x16bb   :  { %6117 = vmatmul.mubr.msk.f32.vlgmr.msra.gmra.mrb[36].mxu0 %vm603_vm7, %v3156_v33 }
0x16bc   :  { %v6497_v34 = vpop.eup %6496  ;;  %6125 = vmatpush3.xpose.msk.msra.mxu0 %vm426_vm4, %v3316_v28  ;;  %6126 = vmatprep.mubr.msk.f32.mxu0 %vm6563_vm0, %v6564_v4 }
0x16bd   :  { %v3158_v35 = vmul.f32 %v6497_v34, %v6493_v24  ;;  %6134 = vmatprep.subr.mxu0 %v6564_v4 }
0x16bf   :  { %6122 = vmatmul.mubr.msk.f32.vlgmr.msra.gmra.mrb[36].mxu1 %vm603_vm7, %v3158_v35  ;;  %6127 = vmatmul.mubr.msk.f32.vlgmr.msra.gmra.mrb[38].mxu0 %vm426_vm4, %v3314_v36 }
0x16c0   :  { %6130 = vmatpush3.xpose.msk.msra.mxu1 %vm426_vm4, %v3394_v30  ;;  %6131 = vmatprep.mubr.msk.f32.mxu1 %vm6563_vm0, %v6564_v4 }
0x16c1   :  { %6139 = vmatprep.subr.mxu1 %v6564_v4  ;;  %6136 = vmatprep.mubr.msk.f32.mxu0 %vm6563_vm0, %v6564_v4 }
0x16c3   :  { %6132 = vmatmul.mubr.msk.f32.vlgmr.msra.gmra.mrb[38].mxu1 %vm426_vm4, %v3392_v10 }
0x16c4   :  { %6141 = vmatprep.mubr.msk.f32.mxu1 %vm6563_vm0, %v6564_v4 }
0x178e   :  { %v7147_v37 = vpop.f32.mrb[36].mxu0 }
0x178f   :  { %v6118_v38 = vpop.f32.mrb[37].mxu0 }
0x1792   :  { %v7149_v39 = vpop.f32.mrb[36].mxu1  ;;  %v3387_v40 = vpop.f32.mrb[38].mxu0 }
0x1793   :  { %v6123_v41 = vpop.f32.mrb[37].mxu1  ;;  %v6128_v12 = vpop.f32.mrb[39].mxu0  ;;  %v3469_v42 = vsel %vm578_vm5, %v3387_v40, -inf }
0x1794   :  { %3470 = vmax.xlane.f32.xlu0 %v3469_v42 }
0x1796   :  { %v3465_v43 = vpop.f32.mrb[38].mxu1 }
0x1797   :  { %v6133_v44 = vpop.f32.mrb[39].mxu1  ;;  %v3472_v45 = vsel %vm578_vm5, %v3465_v43, -inf }
0x1798   :  { %3473 = vmax.xlane.f32.xlu1 %v3472_v45 }
0x17a9   :  { %3568 = vrot.lane.b32.xlu1 %v7095_v1, %s6569_s20 }
0x17ad   :  { %3939 = vrot.lane.b32.xlu1 %v7091_v62, %s6570_s21 }
0x17b1   :  { %4017 = vrot.lane.b32.xlu1 %v7095_v1, %s6570_s21  ;;  %s7474_s21 = smov 104  }
0x17b5   :  { %4015 = vrot.lane.b32.xlu1 %v7095_v1, %s7471_s4 }
0x1821   :  { %v3471_v46 = vpop.xlane.xlu0 %3470 }
0x1822   :  { %v3475_v47 = vsub.f32 %v3387_v40, %v3471_v46 }
0x1824   :  { %v3477_v48 = vmul.f32 1.442695, %v3475_v47 }
0x1825   :  { %v3474_v49 = vpop.xlane.xlu1 %3473 }
0x1826   :  { %6498 = vpow2.f32 %v3477_v48  ;;  %v3476_v51 = vsub.f32 %v3465_v43, %v3474_v49  ;;  %v5608_v49 = vld [vmem:[%s7437_s7 + $0x30] sm:$0xff] }
0x1828   :  { %v3479_v52 = vmul.f32 1.442695, %v3476_v51 }
0x1829   :  { %v3569_v54 = vpop.permute.xlu1 %3568 }
0x182a   :  { %6500 = vpow2.f32 %v3479_v52  ;;  %6140 = vmatpush3.msk.msra.mxu1 %vm607_vm6, %v3569_v54 }
0x182b   :  { %6149 = vmatprep.subr.mxu1 %v6564_v4 }
0x182d   :  { %v3940_v53 = vpop.permute.xlu1 %3939 }
0x1830   :  { %v6499_v55 = vpop.eup %6498 }
0x1831   :  { %v3481_v56 = vsel %vm578_vm5, %v6499_v55, 0.0  ;;  %v4018_v14 = vpop.permute.xlu1 %4017 }
0x1832   :  { %3482 = vadd.xlane.f32.xlu0 %v3481_v56 }
0x1834   :  { %v6501_v57 = vpop.eup %6500 }
0x1835   :  { %v3484_v58 = vsel %vm578_vm5, %v6501_v57, 0.0  ;;  %v4016_v16 = vpop.permute.xlu1 %4015 }
0x1836   :  { %3485 = vadd.xlane.f32.xlu0 %v3484_v58 }
0x184c   :  { %3491 = vrot.lane.b32.xlu0 %v7091_v62, %s6569_s20  ;;  %s7473_s20 = smov 72  }
0x1850   :  { %3937 = vrot.lane.b32.xlu0 %v7091_v62, %s7471_s4 }
0x18bf   :  { %v3483_v59 = vpop.xlane.xlu0 %3482 }
0x18c0   :  { %6502 = vrcp.f32 %v3483_v59 }
0x18c3   :  { %v3486_v60 = vpop.xlane.xlu0 %3485 }
0x18c4   :  { %6504 = vrcp.f32 %v3486_v60 }
0x18c7   :  { %v3492_v61 = vpop.permute.xlu0 %3491 }
0x18c8   :  { %6135 = vmatpush3.msk.msra.mxu0 %vm607_vm6, %v3492_v61 }
0x18c9   :  { %6144 = vmatprep.subr.mxu0 %v6564_v4 }
0x18ca   :  { %v6503_v63 = vpop.eup %6502 }
0x18cb   :  { %v3488_v0 = vmul.f32 %v6503_v63, %v6499_v55  ;;  %v3938_v15 = vpop.permute.xlu0 %3937 }
0x18cd   :  { %6137 = vmatmul.mubr.msk.f32.vlgmr.msra.gmra.mrb[40].mxu0 %vm603_vm7, %v3488_v0 }
0x18ce   :  { %v6505_v5 = vpop.eup %6504  ;;  %6145 = vmatpush3.msra.mxu0 %v5607_v3  ;;  %6146 = vmatprep.mubr.msk.f32.mxu0 %vm6563_vm0, %v6564_v4 }
0x18cf   :  { %v3490_v6 = vmul.f32 %v6505_v5, %v6501_v57  ;;  %6154 = vmatprep.subr.mxu0 %v6564_v4 }
0x18d1   :  { %6142 = vmatmul.mubr.msk.f32.vlgmr.msra.gmra.mrb[40].mxu1 %vm603_vm7, %v3490_v6 }
0x18d2   :  { %6150 = vmatpush3.msra.mxu1 %v5607_v3  ;;  %6151 = vmatprep.mubr.msk.f32.mxu1 %vm6563_vm0, %v6564_v4 }
0x18d3   :  { %6159 = vmatprep.subr.mxu1 %v6564_v4 }
0x19a0   :  { %v3564_v8 = vpop.f32.mrb[40].mxu0 }
0x19a1   :  { %v6138_v9 = vpop.f32.mrb[41].mxu0  ;;  %6147 = vmatmul.mubr.msk.f32.vlgmr.msra.gmra.mrb[42].mxu0 %vm426_vm4, %v3564_v8 }
0x19a2   :  { %6155 = vmatpush3.msra.mxu0 %v5606_v7  ;;  %6156 = vmatprep.mubr.msk.f32.mxu0 %vm6563_vm0, %v6564_v4 }
0x19a3   :  { %6164 = vmatprep.subr.mxu0 %v6564_v4 }
0x19a4   :  { %v3641_v11 = vpop.f32.mrb[40].mxu1 }
0x19a5   :  { %v6143_v13 = vpop.f32.mrb[41].mxu1  ;;  %6152 = vmatmul.mubr.msk.f32.vlgmr.msra.gmra.mrb[42].mxu1 %vm426_vm4, %v3641_v11  ;;  %6157 = vmatmul.mubr.msk.f32.vlgmr.msra.gmra.mrb[44].mxu0 %vm426_vm4, %v7147_v37 }
0x19a6   :  { %6160 = vmatpush3.msra.mxu1 %v5606_v7  ;;  %6161 = vmatprep.mubr.msk.f32.mxu1 %vm6563_vm0, %v6564_v4 }
0x19a7   :  { %6166 = vmatprep.mubr.msk.f32.mxu0 %vm6563_vm0, %v6564_v4  ;;  %6169 = vmatprep.subr.mxu1 %v6564_v4 }
0x19a9   :  { %6165 = vmatpush3.xpose.msk.msra.mxu0 %vm426_vm4, %v3940_v53  ;;  %6162 = vmatmul.mubr.msk.f32.vlgmr.msra.gmra.mrb[44].mxu1 %vm426_vm4, %v7149_v39 }
0x19aa   :  { %6171 = vmatprep.mubr.msk.f32.mxu1 %vm6563_vm0, %v6564_v4  ;;  %6174 = vmatprep.subr.mxu0 %v6564_v4 }
0x19ac   :  { %6167 = vmatmul.mubr.msk.f32.vlgmr.msra.gmra.mrb[46].mxu0 %vm426_vm4, %v3938_v15 }
0x19ad   :  { %6170 = vmatpush3.xpose.msk.msra.mxu1 %vm426_vm4, %v4018_v14  ;;  %6176 = vmatprep.mubr.msk.f32.mxu0 %vm6563_vm0, %v6564_v4 }
0x19ae   :  { %6179 = vmatprep.subr.mxu1 %v6564_v4 }
0x19b0   :  { %6172 = vmatmul.mubr.msk.f32.vlgmr.msra.gmra.mrb[46].mxu1 %vm426_vm4, %v4016_v16 }
0x19b1   :  { %6181 = vmatprep.mubr.msk.f32.mxu1 %vm6563_vm0, %v6564_v4 }
0x1a74   :  { %v3714_v17 = vpop.f32.mrb[42].mxu0 }
0x1a75   :  { %v6148_v18 = vpop.f32.mrb[43].mxu0 }
0x1a78   :  { %v3787_v50 = vpop.f32.mrb[42].mxu1  ;;  %v3860_v19 = vpop.f32.mrb[44].mxu0 }
0x1a79   :  { %v7211_v21 = vadd.f32 %v3860_v19, %v3714_v17  ;;  %v6153_v22 = vpop.f32.mrb[43].mxu1  ;;  %v6158_v23 = vpop.f32.mrb[45].mxu0 }
0x1a7c   :  { %v3933_v24 = vpop.f32.mrb[44].mxu1 }
0x1a7d   :  { %v7213_v27 = vadd.f32 %v3933_v24, %v3787_v50  ;;  %v6163_v28 = vpop.f32.mrb[45].mxu1 }
0x1a7f   :  { %v4011_v30 = vpop.f32.mrb[46].mxu0 }
0x1a80   :  { %v6168_v29 = vpop.f32.mrb[47].mxu0  ;;  %v4093_v31 = vsel %vm578_vm5, %v4011_v30, -inf }
0x1a81   :  { %4094 = vmax.xlane.f32.xlu0 %v4093_v31 }
0x1a83   :  { %v4089_v32 = vpop.f32.mrb[46].mxu1 }
0x1a84   :  { %v6173_v33 = vpop.f32.mrb[47].mxu1  ;;  %v4096_v34 = vsel %vm578_vm5, %v4089_v32, -inf }
0x1a85   :  { %4097 = vmax.xlane.f32.xlu1 %v4096_v34 }
0x1a96   :  { %4192 = vrot.lane.b32.xlu1 %v7095_v1, %s7472_s30 }
0x1a9a   :  { %4419 = vrot.lane.b32.xlu1 %v7091_v62, %s7473_s20 }
0x1a9e   :  { %4497 = vrot.lane.b32.xlu1 %v7095_v1, %s7473_s20 }
0x1aa2   :  { %4495 = vrot.lane.b32.xlu1 %v7095_v1, %s7474_s21 }
0x1b0e   :  { %v4095_v35 = vpop.xlane.xlu0 %4094 }
0x1b0f   :  { %v4099_v36 = vsub.f32 %v4011_v30, %v4095_v35 }
0x1b11   :  { %v4101_v10 = vmul.f32 1.442695, %v4099_v36 }
0x1b12   :  { %v4098_v37 = vpop.xlane.xlu1 %4097 }
0x1b13   :  { %6506 = vpow2.f32 %v4101_v10  ;;  %v4100_v38 = vsub.f32 %v4089_v32, %v4098_v37 }
0x1b15   :  { %v4103_v39 = vmul.f32 1.442695, %v4100_v38 }
0x1b16   :  { %v4193_v40 = vpop.permute.xlu1 %4192 }
0x1b17   :  { %6508 = vpow2.f32 %v4103_v39  ;;  %6180 = vmatpush3.msk.msra.mxu1 %vm607_vm6, %v4193_v40  ;;  %v5651_v40 = vld [vmem:[%s7438_s8 + $0x1] ss:$0 sm:$0xff] }
0x1b18   :  { %6189 = vmatprep.subr.mxu1 %v6564_v4 }
0x1b1a   :  { %v4420_v54 = vpop.permute.xlu1 %4419 }
0x1b1d   :  { %v6507_v41 = vpop.eup %6506 }
0x1b1e   :  { %v4105_v12 = vsel %vm578_vm5, %v6507_v41, 0.0  ;;  %v4498_v57 = vpop.permute.xlu1 %4497 }
0x1b1f   :  { %4106 = vadd.xlane.f32.xlu0 %v4105_v12 }
0x1b21   :  { %v6509_v42 = vpop.eup %6508 }
0x1b22   :  { %v4108_v43 = vsel %vm578_vm5, %v6509_v42, 0.0  ;;  %v4496_v61 = vpop.permute.xlu1 %4495 }
0x1b23   :  { %4109 = vadd.xlane.f32.xlu0 %v4108_v43 }
0x1b39   :  { %4115 = vrot.lane.b32.xlu0 %v7091_v62, %s7472_s30 }
0x1b3d   :  { %4417 = vrot.lane.b32.xlu0 %v7091_v62, %s7474_s21 }
0x1bac   :  { %v4107_v44 = vpop.xlane.xlu0 %4106 }
0x1bad   :  { %6510 = vrcp.f32 %v4107_v44 }
0x1bb0   :  { %v4110_v45 = vpop.xlane.xlu0 %4109 }
0x1bb1   :  { %6512 = vrcp.f32 %v4110_v45 }
0x1bb4   :  { %v4116_v46 = vpop.permute.xlu0 %4115 }
0x1bb5   :  { %6175 = vmatpush3.msk.msra.mxu0 %vm607_vm6, %v4116_v46 }
0x1bb6   :  { %6184 = vmatprep.subr.mxu0 %v6564_v4 }
0x1bb7   :  { %v6511_v47 = vpop.eup %6510 }
0x1bb8   :  { %v4112_v48 = vmul.f32 %v6511_v47, %v6507_v41  ;;  %v4418_v58 = vpop.permute.xlu0 %4417 }
0x1bba   :  { %6177 = vmatmul.mubr.msk.f32.vlgmr.msra.gmra.mrb[48].mxu0 %vm603_vm7, %v4112_v48 }
0x1bbb   :  { %v6513_v51 = vpop.eup %6512  ;;  %6185 = vmatpush3.msra.mxu0 %v5608_v49  ;;  %6186 = vmatprep.mubr.msk.f32.mxu0 %vm6563_vm0, %v6564_v4 }
0x1bbc   :  { %v4114_v52 = vmul.f32 %v6513_v51, %v6509_v42  ;;  %6194 = vmatprep.subr.mxu0 %v6564_v4 }
0x1bbe   :  { %6182 = vmatmul.mubr.msk.f32.vlgmr.msra.gmra.mrb[48].mxu1 %vm603_vm7, %v4114_v52 }
0x1bbf   :  { %6190 = vmatpush3.msra.mxu1 %v5608_v49  ;;  %6191 = vmatprep.mubr.msk.f32.mxu1 %vm6563_vm0, %v6564_v4 }
0x1bc0   :  { %6199 = vmatprep.subr.mxu1 %v6564_v4 }
0x1c8d   :  { %v4188_v55 = vpop.f32.mrb[48].mxu0 }
0x1c8e   :  { %v6178_v56 = vpop.f32.mrb[49].mxu0  ;;  %6187 = vmatmul.mubr.msk.f32.vlgmr.msra.gmra.mrb[50].mxu0 %vm426_vm4, %v4188_v55 }
0x1c8f   :  { %6195 = vmatpush3.xpose.msk.msra.mxu0 %vm426_vm4, %v4420_v54  ;;  %6196 = vmatprep.mubr.msk.f32.mxu0 %vm6563_vm0, %v6564_v4 }
0x1c90   :  { %6204 = vmatprep.subr.mxu0 %v6564_v4 }
0x1c91   :  { %v4265_v59 = vpop.f32.mrb[48].mxu1 }
0x1c92   :  { %v6183_v60 = vpop.f32.mrb[49].mxu1  ;;  %6192 = vmatmul.mubr.msk.f32.vlgmr.msra.gmra.mrb[50].mxu1 %vm426_vm4, %v4265_v59  ;;  %6197 = vmatmul.mubr.msk.f32.vlgmr.msra.gmra.mrb[52].mxu0 %vm426_vm4, %v4418_v58  ;;  %v5656_v59 = vld [vmem:[%s7441_s11 + $0x20] sm:$0xff] }
0x1c93   :  { %6200 = vmatpush3.xpose.msk.msra.mxu1 %vm426_vm4, %v4498_v57  ;;  %6201 = vmatprep.mubr.msk.f32.mxu1 %vm6563_vm0, %v6564_v4  ;;  %v5657_v60 = vld [vmem:[%s7441_s11 + $0x28] sm:$0xff] }
0x1c94   :  { %6209 = vmatprep.subr.mxu1 %v6564_v4  ;;  %6206 = vmatprep.mubr.msk.f32.mxu0 %vm6563_vm0, %v6564_v4 }
0x1c96   :  { %6202 = vmatmul.mubr.msk.f32.vlgmr.msra.gmra.mrb[52].mxu1 %vm426_vm4, %v4496_v61  ;;  %v6373_v61 = vpack.c.bf16 %v5657_v60, %v5656_v59 }
0x1c97   :  { %6211 = vmatprep.mubr.msk.f32.mxu1 %vm6563_vm0, %v6564_v4 }
0x1d61   :  { %v4338_v63 = vpop.f32.mrb[50].mxu0 }
0x1d62   :  { %v4415_v0 = vadd.f32 %v4338_v63, %v7211_v21  ;;  %v6188_v3 = vpop.f32.mrb[51].mxu0  ;;  %v5658_v63 = vld [vmem:[%s7441_s11 + $0x30] sm:$0xff] }
0x1d65   :  { %v4411_v5 = vpop.f32.mrb[50].mxu1  ;;  %v4491_v6 = vpop.f32.mrb[52].mxu0 }
0x1d66   :  { %v7264_v7 = vadd.f32 %v4411_v5, %v7213_v27  ;;  %v6193_v8 = vpop.f32.mrb[51].mxu1  ;;  %v6198_v9 = vpop.f32.mrb[53].mxu0  ;;  %v4573_v53 = vsel %vm578_vm5, %v4491_v6, -inf }
0x1d67   :  { %4574 = vmax.xlane.f32.xlu0 %v4573_v53 }
0x1d69   :  { %v4569_v11 = vpop.f32.mrb[52].mxu1 }
0x1d6a   :  { %v6203_v13 = vpop.f32.mrb[53].mxu1  ;;  %v4576_v14 = vsel %vm578_vm5, %v4569_v11, -inf }
0x1d6b   :  { %4577 = vmax.xlane.f32.xlu1 %v4576_v14  ;;  %v5654_v13 = vld [vmem:[%s7439_s9 + $0x1] ss:$0 sm:$0xff] }
0x1d7c   :  { %4672 = vrot.lane.b32.xlu1 %v7095_v1, %s7475_s2 }
0x1df4   :  { %v4575_v15 = vpop.xlane.xlu0 %4574 }
0x1df5   :  { %v4579_v16 = vsub.f32 %v4491_v6, %v4575_v15  ;;  %v5655_v15 = vld [vmem:[%s7440_s10 + $0x1] ss:$0 sm:$0xff] }
0x1df7   :  { %v4581_v17 = vmul.f32 1.442695, %v4579_v16 }
0x1df8   :  { %v4578_v18 = vpop.xlane.xlu1 %4577 }
0x1df9   :  { %6514 = vpow2.f32 %v4581_v17  ;;  %v4580_v50 = vsub.f32 %v4569_v11, %v4578_v18 }
0x1dfb   :  { %v4583_v19 = vmul.f32 1.442695, %v4580_v50 }
0x1dfc   :  { %v4673_v21 = vpop.permute.xlu1 %4672 }
0x1dfd   :  { %6516 = vpow2.f32 %v4583_v19  ;;  %6210 = vmatpush3.msk.msra.mxu1 %vm607_vm6, %v4673_v21 }
0x1dfe   :  { %6219 = vmatprep.subr.mxu1 %v6564_v4 }
0x1e03   :  { %v6515_v22 = vpop.eup %6514 }
0x1e04   :  { %v4585_v23 = vsel %vm578_vm5, %v6515_v22, 0.0 }
0x1e05   :  { %4586 = vadd.xlane.f32.xlu0 %v4585_v23  ;;  %v5665_v23 = vld [vmem:[%s7443_s13 + $0x48] sm:$0xff] }
0x1e07   :  { %v6517_v24 = vpop.eup %6516 }
0x1e08   :  { %v4588_v1 = vsel %vm578_vm5, %v6517_v24, 0.0 }
0x1e09   :  { %4589 = vadd.xlane.f32.xlu0 %v4588_v1  ;;  %v5666_v1 = vld [vmem:[%s7443_s13 + $0x50] sm:$0xff] }
0x1e1f   :  { %4595 = vrot.lane.b32.xlu0 %v7091_v62, %s7475_s2  ;;  %v5609_v62 = vld [vmem:[%s7437_s7 + $0x38] sm:$0xff] }
0x1e92   :  { %v4587_v27 = vpop.xlane.xlu0 %4586 }
0x1e93   :  { %6518 = vrcp.f32 %v4587_v27  ;;  %v5667_v27 = vld [vmem:[%s7443_s13 + $0x58] sm:$0xff] }
0x1e96   :  { %v4590_v28 = vpop.xlane.xlu0 %4589 }
0x1e97   :  { %6520 = vrcp.f32 %v4590_v28  ;;  %v6388_v28 = vpack.c.bf16 %v5667_v27, %v5666_v1 }
0x1e9a   :  { %v4596_v30 = vpop.permute.xlu0 %4595 }
0x1e9b   :  { %6205 = vmatpush3.msk.msra.mxu0 %vm607_vm6, %v4596_v30  ;;  %v5668_v30 = vld [vmem:[%s7443_s13 + $0x60] sm:$0xff] }
0x1e9c   :  { %6214 = vmatprep.subr.mxu0 %v6564_v4 }
0x1e9d   :  { %v6519_v29 = vpop.eup %6518 }
0x1e9e   :  { %v4592_v31 = vmul.f32 %v6519_v29, %v6515_v22  ;;  %v5664_v22 = vld [vmem:[%s7443_s13 + $0x40] sm:$0xff]  ;;  %v5669_v29 = vld [vmem:[%s7443_s13 + $0x68] sm:$0xff] }
0x1ea0   :  { %6207 = vmatmul.mubr.msk.f32.vlgmr.msra.gmra.mrb[54].mxu0 %vm603_vm7, %v4592_v31  ;;  %v6391_v31 = vpack.c.bf16 %v5669_v29, %v5668_v30 }
0x1ea1   :  { %v6521_v32 = vpop.eup %6520  ;;  %6216 = vmatprep.mubr.msk.f32.mxu0 %vm6563_vm0, %v6564_v4  ;;  %6215 = vmatpush3.msra.mxu0 %v5609_v62 }
0x1ea2   :  { %v4594_v33 = vmul.f32 %v6521_v32, %v6517_v24  ;;  %6372 = vmatprep.subr.bf16.mxu0 %v6562_v2  ;;  %v6385_v24 = vpack.c.bf16 %v5665_v23, %v5664_v22  ;;  %v5670_v32 = vld [vmem:[%s7443_s13 + $0x70] sm:$0xff] }
0x1ea4   :  { %6212 = vmatmul.mubr.msk.f32.vlgmr.msra.gmra.mrb[54].mxu1 %vm603_vm7, %v4594_v33  ;;  %v5671_v33 = vld [vmem:[%s7443_s13 + $0x78] sm:$0xff] }
0x1ea5   :  { %6221 = vmatprep.mubr.msk.f32.mxu1 %vm6563_vm0, %v6564_v4  ;;  %6220 = vmatpush3.msra.mxu1 %v5609_v62  ;;  %v6394_v62 = vpack.c.bf16 %v5671_v33, %v5670_v32  ;;  %v5675_v33 = vld [vmem:[%s7444_s14 + $0x1] ss:$0 sm:$0xff] }
0x1ea6   :  { %6378 = vmatprep.subr.bf16.mxu1 %v6562_v2 }
0x1f73   :  { %v4668_v34 = vpop.f32.mrb[54].mxu0 }
0x1f74   :  { %v6208_v35 = vpop.f32.mrb[55].mxu0  ;;  %6217 = vmatmul.mubr.msk.f32.vlgmr.msra.gmra.mrb[56].mxu0 %vm426_vm4, %v4668_v34  ;;  %v5661_v34 = vld [vmem:[%s7442_s12 + $0x1] ss:$0 sm:$0xff] }
0x1f75   :  { %6232 = vmatprep.mubr.msk.f32.mxu0 %vm6563_vm0, %v6564_v4  ;;  %6374 = vmatpush3.bf16.msra.mxu0 %v6373_v61 }
0x1f76   :  { %6375 = vmatprep.subr.bf16.mxu0 %v6562_v2 }
0x1f77   :  { %v4745_v36 = vpop.f32.mrb[54].mxu1 }
0x1f78   :  { %v6213_v10 = vpop.f32.mrb[55].mxu1  ;;  %6222 = vmatmul.mubr.msk.f32.vlgmr.msra.gmra.mrb[56].mxu1 %vm426_vm4, %v4745_v36 }
0x1f79   :  { %6243 = vmatprep.mubr.msk.f32.mxu1 %vm6563_vm0, %v6564_v4  ;;  %6380 = vmatpush3.bf16.msra.mxu1 %v6373_v61 }
0x1f7a   :  { %6381 = vmatprep.subr.bf16.mxu1 %v6562_v2 }
0x2047   :  { %v4818_v37 = vpop.f32.mrb[56].mxu0 }
0x2048   :  { %v4895_v38 = vadd.f32 %v4818_v37, %v4415_v0  ;;  %v6218_v39 = vpop.f32.mrb[57].mxu0  ;;  %v5659_v0 = vld [vmem:[%s7441_s11 + $0x38] sm:$0xff] }
0x2049   :  { %v6376_v3 = vpack.c.bf16 %v5659_v0, %v5658_v63 }
0x204a   :  { %v4897_v41 = vadd.f32 %v4895_v38, %v7047_v20 }
0x204b   :  { %v4891_v12 = vpop.f32.mrb[56].mxu1  ;;  %6377 = vmatpush3.bf16.msra.mxu0 %v6376_v3  ;;  %6383 = vmatpush3.bf16.msra.mxu1 %v6376_v3 }
0x204c   :  { %v7299_v42 = vadd.f32 %v5651_v40, %v4897_v41  ;;  %v4896_v43 = vadd.f32 %v4891_v12, %v7264_v7  ;;  %v6223_v44 = vpop.f32.mrb[57].mxu1  ;;  %6384 = vmatprep.subr.bf16.mxu0 %v6562_v2  ;;  %6396 = vmatprep.subr.bf16.mxu1 %v6562_v2 }
0x204e   :  { %v4898_v45 = vadd.f32 %v4896_v43, %v7052_v25  ;;  %v4913_v46 = vsel %vm217_vm2, %v7299_v42, 0.0 }
0x204f   :  { %4914 = vadd.xlane.f32.xlu1 %v4913_v46 }
0x2050   :  { %v7305_v47 = vadd.f32 %v5651_v40, %v4898_v45 }
0x2052   :  { %v4916_v48 = vsel %vm217_vm2, %v7305_v47, 0.0 }
0x2053   :  { %4917 = vadd.xlane.f32.xlu0 %v4916_v48 }
0x20dc   :  { %v4915_v49 = vpop.xlane.xlu1 %4914 }
0x20dd   :  { %v4919_v20 = vmul.f32 0.03125, %v4915_v49 }
0x20df   :  { %v4921_v51 = vsub.f32 %v7299_v42, %v4919_v20 }
0x20e0   :  { %v4918_v52 = vpop.xlane.xlu0 %4917 }
0x20e1   :  { %v4920_v54 = vmul.f32 0.03125, %v4918_v52  ;;  %v4923_v55 = vmul.f32 %v4921_v51, %v4921_v51 }
0x20e3   :  { %v4922_v56 = vsub.f32 %v7305_v47, %v4920_v54  ;;  %v4925_v25 = vsel %vm217_vm2, %v4923_v55, 0.0 }
0x20e4   :  { %4926 = vadd.xlane.f32.xlu0 %v4925_v25 }
0x20e5   :  { %v4924_v57 = vmul.f32 %v4922_v56, %v4922_v56 }
0x20e7   :  { %v4928_v58 = vsel %vm217_vm2, %v4924_v57, 0.0 }
0x20e8   :  { %4929 = vadd.xlane.f32.xlu1 %v4928_v58 }
0x2171   :  { %v4927_v5 = vpop.xlane.xlu0 %4926 }
0x2172   :  { %v4931_v6 = vmul.f32 0.03125, %v4927_v5 }
0x2174   :  { %v4933_v7 = vadd.f32 1e-06, %v4931_v6 }
0x2175   :  { %v4930_v8 = vpop.xlane.xlu1 %4929 }
0x2176   :  { %6522 = vrsqrt.f32 %v4933_v7  ;;  %v4932_v9 = vmul.f32 0.03125, %v4930_v8 }
0x2178   :  { %v4934_v53 = vadd.f32 1e-06, %v4932_v9 }
0x217a   :  { %6524 = vrsqrt.f32 %v4934_v53 }
0x2180   :  { %v6523_v11 = vpop.eup %6522 }
0x2181   :  { %v4937_v14 = vmul.f32 %v6523_v11, %v4921_v51 }
0x2183   :  { %v4945_v16 = vmul.f32 %v5654_v13, %v4937_v14 }
0x2184   :  { %v6525_v17 = vpop.eup %6524 }
0x2185   :  { %v4938_v18 = vmul.f32 %v6525_v17, %v4922_v56  ;;  %v4953_v50 = vadd.f32 %v5655_v15, %v4945_v16 }
0x2187   :  { %6233 = vmatmul.mubr.msk.f32.vlgmr.msra.gmra.mrb[58].mxu0 %vm272_vm3, %v4953_v50  ;;  %v4946_v19 = vmul.f32 %v5654_v13, %v4938_v18 }
0x2188   :  { %6262 = vmatprep.mubr.msk.f32.mxu0 %vm6563_vm0, %v6564_v4  ;;  %6386 = vmatpush3.bf16.msra.mxu0 %v6385_v24 }
0x2189   :  { %v4954_v21 = vadd.f32 %v5655_v15, %v4946_v19  ;;  %6387 = vmatprep.subr.bf16.mxu0 %v6562_v2 }
0x218b   :  { %6244 = vmatmul.mubr.msk.f32.vlgmr.msra.gmra.mrb[58].mxu1 %vm272_vm3, %v4954_v21 }
0x218c   :  { %6281 = vmatprep.mubr.msk.f32.mxu1 %vm6563_vm0, %v6564_v4  ;;  %6398 = vmatpush3.bf16.msra.mxu1 %v6385_v24 }
0x218d   :  { %6399 = vmatprep.subr.bf16.mxu1 %v6562_v2  ;;  %6389 = vmatpush3.bf16.msra.mxu0 %v6388_v28 }
0x218e   :  { %6390 = vmatprep.subr.bf16.mxu0 %v6562_v2 }
0x2190   :  { %6401 = vmatpush3.bf16.msra.mxu1 %v6388_v28 }
0x2191   :  { %6402 = vmatprep.subr.bf16.mxu1 %v6562_v2  ;;  %6392 = vmatpush3.bf16.msra.mxu0 %v6391_v31 }
0x2192   :  { %6393 = vmatprep.subr.bf16.mxu0 %v6562_v2 }
0x2194   :  { %6404 = vmatpush3.bf16.msra.mxu1 %v6391_v31 }
0x2195   :  { %6405 = vmatprep.subr.bf16.mxu1 %v6562_v2  ;;  %6395 = vmatpush3.bf16.msra.mxu0 %v6394_v62 }
0x2196   :  { %6408 = vmatprep.subr.bf16.mxu0 %v6562_v2 }
0x2198   :  { %6407 = vmatpush3.bf16.msra.mxu1 %v6394_v62 }
0x2199   :  { %6414 = vmatprep.subr.bf16.mxu1 %v6562_v2 }
0x225a   :  { %v5037_v35 = vpop.f32.mrb[58].mxu0 }
0x225b   :  { %v5038_v36 = vadd.f32 %v5661_v34, %v5037_v35  ;;  %v6234_v10 = vpop.f32.mrb[59].mxu0 }
0x225d   :  { %v5116_v37 = vmul.f32 0.70710677, %v5038_v36  ;;  %v5114_v23 = vmul.f32 0.5, %v5038_v36 }
0x225e   :  { %v5110_v38 = vpop.f32.mrb[58].mxu1 }
0x225f   :  { %vm5118_vm11 = vcmp.ge.f32.partialorder %v5116_v37, 0.0  ;;  %v5111_v39 = vadd.f32 %v5661_v34, %v5110_v38  ;;  %v6245_v40 = vpop.f32.mrb[59].mxu1 }
0x2260   :  { %v5120_v41 = vsel %vm5118_vm11, 1.0, %v6576_v26 }
0x2261   :  { %v5122_v12 = vmul.f32 %v5120_v41, %v5116_v37  ;;  %v5117_v43 = vmul.f32 0.70710677, %v5111_v39  ;;  %v5115_v30 = vmul.f32 0.5, %v5111_v39 }
0x2263   :  { %v5124_v44 = vmul.f32 0.3275911, %v5122_v12  ;;  %vm5119_vm12 = vcmp.ge.f32.partialorder %v5117_v43, 0.0  ;;  %v5150_v51 = vmul.f32 %v5122_v12, %v5122_v12 }
0x2264   :  { %v5121_v45 = vsel %vm5119_vm12, 1.0, %v6576_v26 }
0x2265   :  { %v5126_v46 = vadd.f32 1.0, %v5124_v44  ;;  %v5123_v48 = vmul.f32 %v5121_v45, %v5117_v43  ;;  %v5152_v54 = vsub.f32 0.0, %v5150_v51 }
0x2267   :  { %6526 = vrcp.f32 %v5126_v46  ;;  %v5125_v49 = vmul.f32 0.3275911, %v5123_v48  ;;  %v5151_v55 = vmul.f32 %v5123_v48, %v5123_v48  ;;  %v5154_v58 = vmul.f32 1.442695, %v5152_v54  ;;  %v5371_v54 = vld [vmem:[%s7447_s17 + $0x18] sm:$0xff] }
0x2269   :  { %v5127_v20 = vadd.f32 1.0, %v5125_v49  ;;  %v5153_v59 = vsub.f32 0.0, %v5151_v55  ;;  %v5368_v49 = vld [vmem:[%s7447_s17] sm:$0xff] }
0x226b   :  { %6528 = vrcp.f32 %v5127_v20  ;;  %v5156_v26 = vmul.f32 1.442695, %v5153_v59  ;;  %v5369_v20 = vld [vmem:[%s7447_s17 + $0x8] sm:$0xff] }
0x226c   :  { %6530 = vpow2.f32 %v5154_v58  ;;  %v6409_v51 = vpack.c.bf16 %v5369_v20, %v5368_v49 }
0x226d   :  { %6532 = vpow2.f32 %v5156_v26 }
0x2271   :  { %v6527_v52 = vpop.eup %6526 }
0x2272   :  { %v5132_v56 = vmul.f32 1.0614054, %v6527_v52 }
0x2274   :  { %v5134_v25 = vadd.f32 -1.4531521, %v5132_v56 }
0x2275   :  { %v6529_v57 = vpop.eup %6528 }
0x2276   :  { %v5136_v60 = vmul.f32 %v6527_v52, %v5134_v25  ;;  %v5133_v61 = vmul.f32 1.0614054, %v6529_v57  ;;  %v6531_v15 = vpop.eup %6530 }
0x2277   :  { %v6533_v19 = vpop.eup %6532 }
0x2278   :  { %v5138_v63 = vadd.f32 1.4214138, %v5136_v60  ;;  %v5135_v0 = vadd.f32 -1.4531521, %v5133_v61 }
0x227a   :  { %v5140_v3 = vmul.f32 %v6527_v52, %v5138_v63  ;;  %v5137_v5 = vmul.f32 %v6529_v57, %v5135_v0  ;;  %v5335_v63 = vld [vmem:[%s7445_s15] sm:$0x1]  ;;  %s6577_s15 = smov [#allocation2]  }
0x227c   :  { %v5142_v6 = vadd.f32 -0.28449672, %v5140_v3  ;;  %v5139_v7 = vadd.f32 1.4214138, %v5137_v5 }
0x227e   :  { %v5144_v8 = vmul.f32 %v6527_v52, %v5142_v6  ;;  %v5141_v9 = vmul.f32 %v6529_v57, %v5139_v7 }
0x2280   :  { %v5146_v53 = vadd.f32 0.2548296, %v5144_v8  ;;  %v5143_v11 = vadd.f32 -0.28449672, %v5141_v9  ;;  %v5372_v9 = vld [vmem:[%s7448_s18] sm:$0x1] }
0x2282   :  { %v5148_v13 = vmul.f32 %v6527_v52, %v5146_v53  ;;  %v5145_v14 = vmul.f32 %v6529_v57, %v5143_v11  ;;  %v5370_v52 = vld [vmem:[%s7447_s17 + $0x10] sm:$0xff] }
0x2283   :  { %v6412_v55 = vpack.c.bf16 %v5371_v54, %v5370_v52 }
0x2284   :  { %v5158_v16 = vmul.f32 %v6531_v15, %v5148_v13  ;;  %v5147_v17 = vadd.f32 0.2548296, %v5145_v14 }
0x2286   :  { %v5160_v18 = vsub.f32 1.0, %v5158_v16  ;;  %v5149_v50 = vmul.f32 %v6529_v57, %v5147_v17 }
0x2288   :  { %v5162_v21 = vmul.f32 %v5160_v18, %v5120_v41  ;;  %v5159_v22 = vmul.f32 %v6533_v19, %v5149_v50 }
0x228a   :  { %v5164_v24 = vadd.f32 1.0, %v5162_v21  ;;  %v5161_v1 = vsub.f32 1.0, %v5159_v22 }
0x228c   :  { %v5166_v27 = vmul.f32 %v5164_v24, %v5114_v23  ;;  %v5163_v28 = vmul.f32 %v5161_v1, %v5121_v45 }
0x228e   :  { %v5165_v29 = vadd.f32 1.0, %v5163_v28  ;;  %6263 = vmatmul.mubr.msk.f32.vlgmr.msra.gmra.mrb[60].mxu0 %vm2615_vm10, %v5166_v27 }
0x228f   :  { %6292 = vmatprep.mubr.msk.f32.mxu0 %vm6563_vm0, %v6564_v4  ;;  %6410 = vmatpush3.bf16.msra.mxu0 %v6409_v51 }
0x2290   :  { %v5167_v31 = vmul.f32 %v5165_v29, %v5115_v30  ;;  %6411 = vmatprep.subr.bf16.mxu0 %v6562_v2 }
0x2292   :  { %6282 = vmatmul.mubr.msk.f32.vlgmr.msra.gmra.mrb[60].mxu1 %vm2615_vm10, %v5167_v31 }
0x2293   :  { %6303 = vmatprep.mubr.msk.f32.mxu1 %vm6563_vm0, %v6564_v4  ;;  %6416 = vmatpush3.bf16.msra.mxu1 %v6409_v51 }
0x2294   :  { %6417 = vmatprep.subr.bf16.mxu1 %v6562_v2  ;;  %6413 = vmatpush3.bf16.msra.mxu0 %v6412_v55  ;;  %v5336_v2 = vld [vmem:[%s7446_s16] sm:$0x1]  ;;  %s5527_s16 = sshll.u32 %s6577_s15, 4  ;;  %s5528_s16 = int_to_ptr.vmem [resolvable:$true] %s5527_s16 }
0x2295   :  { %s6538_s25 = scalar_lea.vmem %s5528_s16, 32  ;;  %p6543_p1 = scmp.lt.s32.totalorder %s5528_s16, %s5528_s16 }
0x2296   :  { %p6539_p0 = scmp.ne.s32.totalorder %s5528_s16, %s6538_s25  ;;  %p6544_p2 = scmp.lt.s32.totalorder %s6538_s25, %s6538_s25 }
0x2297   :  { %6419 = vmatpush3.bf16.msra.mxu1 %v6412_v55 }
0x2298   :  { %p6545_p3 = por %p6544_p2, %p6543_p1 }
0x229a   :  { %p6546_p4 = pnand %p6545_p3, %p6539_p0 }
0x2361   :  { %v5246_v32 = vpop.f32.mrb[60].mxu0 }
0x2362   :  { %v5323_v62 = vadd.f32 %v5246_v32, %v7299_v42  ;;  %v6264_v34 = vpop.f32.mrb[61].mxu0 }
0x2364   :  { %v5333_v35 = vadd.f32 %v5675_v33, %v5323_v62 }
0x2365   :  { %v5319_v36 = vpop.f32.mrb[60].mxu1 }
0x2366   :  { %v5324_v10 = vadd.f32 %v5319_v36, %v7305_v47  ;;  %v6283_v37 = vpop.f32.mrb[61].mxu1  ;;  %v5338_v38 = vsel %vm5337_vm13, %v5333_v35, 0.0 }
0x2367   :  { %5339 = vadd.xlane.f32.xlu0 %v5338_v38 }
0x2368   :  { %v5334_v39 = vadd.f32 %v5675_v33, %v5324_v10 }
0x236a   :  { %v5341_v4 = vsel %vm5337_vm13, %v5334_v39, 0.0 }
0x236b   :  { %5342 = vadd.xlane.f32.xlu1 %v5341_v4 }
0x23f4   :  { %v5340_v40 = vpop.xlane.xlu0 %5339 }
0x23f5   :  { %v5344_v41 = vmul.f32 0.03125, %v5340_v40 }
0x23f7   :  { %v5346_v12 = vsub.f32 %v5333_v35, %v5344_v41 }
0x23f8   :  { %v5343_v43 = vpop.xlane.xlu1 %5342 }
0x23f9   :  { %v5345_v44 = vmul.f32 0.03125, %v5343_v43  ;;  %v5348_v42 = vmul.f32 %v5346_v12, %v5346_v12 }
0x23fb   :  { %v5347_v45 = vsub.f32 %v5334_v39, %v5345_v44  ;;  %v5350_v46 = vsel %vm5337_vm13, %v5348_v42, 0.0 }
0x23fc   :  { %5351 = vadd.xlane.f32.xlu0 %v5350_v46 }
0x23fd   :  { %v5349_v48 = vmul.f32 %v5347_v45, %v5347_v45 }
0x23ff   :  { %v5353_v47 = vsel %vm5337_vm13, %v5349_v48, 0.0 }
0x2400   :  { %5354 = vadd.xlane.f32.xlu1 %v5353_v47 }
0x2489   :  { %v5352_v56 = vpop.xlane.xlu0 %5351 }
0x248a   :  { %v5356_v25 = vmul.f32 0.03125, %v5352_v56 }
0x248c   :  { %v5358_v57 = vadd.f32 1e-06, %v5356_v25 }
0x248d   :  { %v5355_v58 = vpop.xlane.xlu1 %5354 }
0x248e   :  { %6534 = vrsqrt.f32 %v5358_v57  ;;  %v5357_v59 = vmul.f32 0.03125, %v5355_v58 }
0x2490   :  { %v5359_v60 = vadd.f32 1e-06, %v5357_v59 }
0x2492   :  { %6536 = vrsqrt.f32 %v5359_v60 }
0x2498   :  { %v6535_v61 = vpop.eup %6534 }
0x2499   :  { %v5362_v0 = vmul.f32 %v6535_v61, %v5346_v12 }
0x249b   :  { %v5364_v26 = vmul.f32 %v5362_v0, %v5335_v63 }
0x249c   :  { %v6537_v3 = vpop.eup %6536 }
0x249d   :  { %v5363_v5 = vmul.f32 %v6537_v3, %v5347_v45  ;;  %v5366_v6 = vadd.f32 %v5364_v26, %v5336_v2 }
0x249f   :  { %v5365_v7 = vmul.f32 %v5363_v5, %v5335_v63  ;;  %6293 = vmatmul.mubr.msk.f32.vlgmr.msra.gmra.mrb[62].mxu0 %vm272_vm3, %v5366_v6 }
0x24a1   :  { %v5367_v8 = vadd.f32 %v5365_v7, %v5336_v2 }
0x24a3   :  { %6304 = vmatmul.mubr.msk.f32.vlgmr.msra.gmra.mrb[62].mxu1 %vm272_vm3, %v5367_v8 }
0x2572   :  { %v5442_v53 = vpop.f32.mrb[62].mxu0 }
0x2573   :  { %v5443_v11 = vadd.f32 %v5442_v53, %v5372_v9  ;;  %v6294_v13 = vpop.f32.mrb[63].mxu0 }
0x2575   :  { %5520 = vst.msk [vmem:[#allocation2] sm:$0x1] %vm5519_vm14, %v5443_v11 }
0x2576   :  { %v5515_v14 = vpop.f32.mrb[62].mxu1 }
0x2577   :  { %v5516_v15 = vadd.f32 %v5515_v14, %v5372_v9  ;;  %v6305_v16 = vpop.f32.mrb[63].mxu1 }
0x2579   :  { %5521 = vst.msk [vmem:[#allocation2 + $0x1] sm:$0x1] %vm5519_vm14, %v5516_v15 }
0x257a   :  { %6549 = shalt.err (!%p6546_p4)
}
0x257b   :  { %s6550_s7 = scalar_lea.hbm %s7449_s19, 32 }
0x257c   :  { %p6551_p5 = scmp.ne.s32.totalorder %s7449_s19, %s6550_s7  ;;  %p6554_p6 = scmp.lt.u32.totalorder %s6550_s7, %s7449_s19 }
0x257e   :  { %p6556_p7 = pnand %p6554_p6, %p6551_p5 }
0x2580   :  { %6559 = shalt.err (!%p6556_p7)
}
0x2581   :  { %s6578_s24 = smov 16   ;;  %s6579_s27 = smov 1  }
0x2582   :  { %5533 = dma.vmem_to_hbm [thread:$0]  %s5528_s16, 32, %s7449_s19, [#allocation3], %s6578_s24, %s6578_s24, %s6579_s27  }
0x2583   :  { %6560 = dma.done.wait [#allocation3], 32  }
0x2584   :  { %6561 = vsyncadd [#allocation3], 4294967264 }
0x2585   :  { %5537 = vsyncpa [#allocation3], 1 }

</bundles_post_ra>
